<compile_context>
chip_gen: v6e
topology: v6e:2x2x1
jax: 0.10.0
libtpu: 0.0.40
codegen_flags: <defaults>
</compile_context>

<pallas_src>
import jax
import jax.numpy as jnp
from jax.experimental import pallas as pl
from jax.experimental.pallas import tpu as pltpu

# ---------------- synthetic MiniGPT dimensions (downsized) ----------------
B = 1
C, H, W = 3, 16, 16
PATCH = 2
N_PATCH = (H // PATCH) * (W // PATCH)   # 64 image tokens (64 <ImageHere> slots)
P_FEAT = C * PATCH * PATCH              # 12 features per patch
D = 32                                  # hidden size
F = 64                                  # MLP size
V = 256                                 # vocab size
SEG1 = 4                                # tokens before <ImageHere>
SEG2 = 8                                # tokens after (prompt tail + target)
S = SEG1 + N_PATCH + SEG2               # 76  == target_len
S_PAD = 80                              # padded to a multiple of 8 sublanes (f32)
K = 3                                   # number of conversations ("train_num")
IGNORE = -200                           # CrossEntropyLoss ignore_index


# ---------------- fused kernel: encode_img + llama block + lm-head + CE ----------------
# TODO(synk): the real encode_img is a ViT + Q-Former + linear projector and the real
# llama_model is a full transformer; the hot matmul path is represented by a patch-embed
# projection and a single MLP block with residual.
def _minigpt_fused_kernel(txt_ref, patches_ref, wp_ref,
                          w1_ref, wlm_ref, w2wlm_ref, lab_ref, loss_ref):
    # --- encode_img: rows outside the 64 image slots are zero in patches, so the
    #     result is the per-position image contribution for all S_PAD rows.
    #     (Patch-embed bias is pre-folded into txt_ref at init.)
    img = jnp.dot(patches_ref[...], wp_ref[...],
                  preferred_element_type=jnp.float32)                        # [S_PAD, D] f32

    # --- get_context_emb: text embeddings (+bias; zeros at image/pad rows) + image emb
    x = txt_ref[...] + img[None, :, :]                                       # [K, S_PAD, D]
    x = x.reshape(K * S_PAD, D)                                              # stack conversations
    xb = x.astype(jnp.bfloat16)

    # --- tiny "llama": one MLP block with residual (bf16 operands, f32 accum)
    h = jnp.maximum(
        jnp.dot(xb, w1_ref[...], preferred_element_type=jnp.float32), 0.0)   # [K*S_PAD, F]

    # --- lm head:  (x + h@w2) @ wlm  ==  x @ wlm + h @ (w2@wlm)
    #     The two MXU pushes are independent -> they overlap instead of
    #     serializing through the residual.
    logits = (jnp.dot(xb, wlm_ref[...], preferred_element_type=jnp.float32)
              + jnp.dot(h.astype(jnp.bfloat16), w2wlm_ref[...],
                        preferred_element_type=jnp.float32))                 # [K*S_PAD, V]
    logits3 = logits.reshape(K, S_PAD, V)

    # --- CrossEntropy(ignore_index=-200) over shifted positions, per conversation.
    # labels[k, i] is the target of logits[k, i] (i.e. token i+1); position S-1,
    # the 64 image-token positions and the padding rows carry IGNORE — identical
    # to CE(shift_logits, shift_labels) in the PyTorch forward.
    labels3 = lab_ref[...]                                                   # [K, S_PAD, 1] int32
    m = jnp.max(logits3, axis=-1, keepdims=True)
    lse = m + jnp.log(jnp.sum(jnp.exp(logits3 - m), axis=-1, keepdims=True)) # [K, S_PAD, 1]
    # broadcast a (1,1,V) iota instead of materializing a full [K,S_PAD,V] int32 tensor
    ids = jax.lax.broadcasted_iota(jnp.int32, (1, 1, V), 2)
    picked = jnp.sum(jnp.where(ids == labels3, logits3, 0.0),
                     axis=-1, keepdims=True)                                 # [K, S_PAD, 1]
    row_ce = lse - picked                                                    # -log p(label)

    valid = labels3 != IGNORE
    num = jnp.sum(jnp.where(valid, row_ce, 0.0), axis=1)                     # [K, 1]
    den = jnp.sum(valid.astype(jnp.float32), axis=1)                         # [K, 1]
    loss_ref[...] = num / jnp.maximum(den, 1.0)                              # guard 0/0


# ---------------- glue ----------------
def _patchify(img_nchw):
    # [1, C, H, W] -> [64, C*PATCH*PATCH]
    x = img_nchw[0]
    x = x.reshape(C, H // PATCH, PATCH, W // PATCH, PATCH)
    x = jnp.transpose(x, (1, 3, 0, 2, 4))           # [H/P, W/P, C, P, P]
    return x.reshape(N_PATCH, P_FEAT).astype(jnp.float32)


class MiniGPTPallas:
    """Synthetic stand-in for MiniGPT (deterministic weights, no checkpoints)."""

    def __init__(self, key, num_convs=K):
        assert num_convs == K
        ks = jax.random.split(key, 8)
        sc = 0.1
        # matmul-operand weights stored in bf16 (MXU-native); accumulation stays f32
        self.w_patch = (jax.random.normal(ks[0], (P_FEAT, D), jnp.float32) * sc).astype(jnp.bfloat16)
        self.b_patch = jax.random.normal(ks[1], (1, D), jnp.float32) * sc
        self.embed = jax.random.normal(ks[2], (V, D), jnp.float32) * sc
        w1_f32 = jax.random.normal(ks[3], (D, F), jnp.float32) * sc
        w2_f32 = jax.random.normal(ks[4], (F, D), jnp.float32) * sc
        wlm_f32 = jax.random.normal(ks[5], (D, V), jnp.float32) * sc
        self.w1 = w1_f32.astype(jnp.bfloat16)
        self.w2 = w2_f32.astype(jnp.bfloat16)            # kept for reference only
        self.wlm = wlm_f32.astype(jnp.bfloat16)
        # precomputed (w2 @ wlm) so the lm-head matmuls are independent in-kernel
        self.w2wlm = jnp.dot(w2_f32, wlm_f32).astype(jnp.bfloat16)   # [F, V]

        # deterministic "tokenized conversations" (TODO(synk): real tokenizer /
        # conv templates / advbench CSV have no Pallas equivalent)
        self.K = num_convs
        self.seg1_ids = jax.random.randint(ks[6], (1, SEG1), 0, V, jnp.int32)
        self.seg2_ids = jax.random.randint(ks[7], (self.K, 1, SEG2), 0, V, jnp.int32)

        # patch-embed bias placed only at the 64 image-token rows; folded into txt embs
        bias_full = jnp.zeros((S_PAD, D), jnp.float32).at[
            SEG1:SEG1 + N_PATCH].set(jnp.broadcast_to(self.b_patch, (N_PATCH, D)))

        # precompute inputs_tokens / shift_labels per conversation (as in __init__),
        # plus the padded, stacked labels and text embeddings used by the fused kernel
        self.target_len = []
        self.shift_labels = []
        labels_list, txt_list = [], []
        for k in range(self.K):
            toks = jnp.concatenate(
                [self.seg1_ids,
                 jnp.full((1, N_PATCH), IGNORE, jnp.int32),
                 self.seg2_ids[k]], axis=1)                       # [1, S]
            self.target_len.append(int(toks.shape[1]))            # == S
            self.shift_labels.append(toks[:, 1:])                 # [1, S-1]

            # labels[i] = token i+1; final position + padding rows carry IGNORE
            labels_row = jnp.concatenate(
                [toks[0, 1:], jnp.full((S_PAD - S + 1,), IGNORE, jnp.int32)])
            labels_list.append(labels_row.reshape(S_PAD, 1))

            # text-token embeddings with zeros at image-token rows and pad rows,
            # plus the pre-folded patch-embed bias on the image rows
            seg1_emb = jnp.take(self.embed, self.seg1_ids[0], axis=0)      # [SEG1, D]
            seg2_emb = jnp.take(self.embed, self.seg2_ids[k][0], axis=0)   # [SEG2, D]
            txt = jnp.concatenate(
                [seg1_emb,
                 jnp.zeros((N_PATCH, D), jnp.float32),
                 seg2_emb,
                 jnp.zeros((S_PAD - S, D), jnp.float32)], axis=0)          # [S_PAD, D]
            txt_list.append(txt + bias_full)

        self.labels_all = jnp.stack(labels_list)                  # [K, S_PAD, 1] int32
        self.txt_embs_all = jnp.stack(txt_list)                   # [K, S_PAD, D] f32

        self._loss_all = jax.jit(self._compute_losses)

    # ----- fused forward over all K conversations: one pallas_call, [K,1] losses -----
    def _compute_losses(self, images):
        patches = _patchify(images)                               # [64, P_FEAT]
        # place patch rows at the image-token positions; zero elsewhere (rows padded to S_PAD)
        patches_full = jnp.zeros((S_PAD, P_FEAT), jnp.float32).at[
            SEG1:SEG1 + N_PATCH].set(patches).astype(jnp.bfloat16)

        losses = pl.pallas_call(
            _minigpt_fused_kernel,
            out_shape=jax.ShapeDtypeStruct((self.K, 1), jnp.float32),
            in_specs=[pl.BlockSpec(memory_space=pltpu.MemorySpace.VMEM)] * 7,
            out_specs=pl.BlockSpec(memory_space=pltpu.MemorySpace.VMEM),
        )(self.txt_embs_all, patches_full, self.w_patch,
          self.w1, self.wlm, self.w2wlm, self.labels_all)
        return losses                                             # [K, 1] f32

    # ----- forward((images, k)) -> -loss -----
    def forward(self, inp):
        images, k = inp
        # max-length truncation logic of the original forward is a no-op at these
        # sizes (S + 300 < 2000), kept only as a comment for parity.
        losses = self._loss_all(images)                           # fused kernel, all K convs
        return -losses[k, 0]


if __name__ == "__main__":
    key = jax.random.PRNGKey(0)
    k_img, k_model = jax.random.split(key)

    model = MiniGPTPallas(k_model)

    images = jax.random.normal(k_img, (B, C, H, W), jnp.float32)   # NCHW, like PyTorch
    out = model.forward((images, 0))
    out = jax.block_until_ready(out)

    assert out.shape == () and jnp.isfinite(out)
    print("KERNEL_OK")
</pallas_src>

<mosaic_0001>
module attributes {stable_mosaic.version = 11 : i64} {
  func.func @_minigpt_fused_kernel(%arg0: memref<3x80x32xf32, #tpu.memory_space<vmem>>, %arg1: memref<80x12xbf16, #tpu.memory_space<vmem>>, %arg2: memref<12x32xbf16, #tpu.memory_space<vmem>>, %arg3: memref<32x64xbf16, #tpu.memory_space<vmem>>, %arg4: memref<32x256xbf16, #tpu.memory_space<vmem>>, %arg5: memref<64x256xbf16, #tpu.memory_space<vmem>>, %arg6: memref<3x80x1xi32, #tpu.memory_space<vmem>>, %arg7: memref<3x1xf32, #tpu.memory_space<vmem>>) attributes {dimension_semantics = [], scalar_prefetch = 0 : i64, scratch_operands = 0 : i64, tpu.core_type = #tpu.core_type<tc>} {
    %c0 = arith.constant 0 : index
    %c0_0 = arith.constant 0 : index
    %0 = vector.load %arg1[%c0, %c0_0] : memref<80x12xbf16, #tpu.memory_space<vmem>>, vector<80x12xbf16>
    %c0_1 = arith.constant 0 : index
    %c0_2 = arith.constant 0 : index
    %1 = vector.load %arg2[%c0_1, %c0_2] : memref<12x32xbf16, #tpu.memory_space<vmem>>, vector<12x32xbf16>
    %cst = arith.constant dense<0.000000e+00> : vector<80x32xf32>
    %2 = tpu.matmul %0, %1, %cst {dimension_numbers = #tpu.dot_dimension_numbers<[1], [0], [0], [1], [0, 0, 1, 1], [], []>} : vector<80x12xbf16>, vector<12x32xbf16>, vector<80x32xf32> -> vector<80x32xf32>
    %c0_3 = arith.constant 0 : index
    %c0_4 = arith.constant 0 : index
    %c0_5 = arith.constant 0 : index
    %3 = vector.load %arg0[%c0_3, %c0_4, %c0_5] : memref<3x80x32xf32, #tpu.memory_space<vmem>>, vector<3x80x32xf32>
    %4 = vector.shape_cast %2 : vector<80x32xf32> to vector<1x80x32xf32>
    %5 = vector.broadcast %4 : vector<1x80x32xf32> to vector<3x80x32xf32>
    %6 = arith.addf %3, %5 : vector<3x80x32xf32>
    %7 = vector.shape_cast %6 : vector<3x80x32xf32> to vector<240x32xf32>
    %8 = arith.truncf %7 : vector<240x32xf32> to vector<240x32xbf16>
    %c0_6 = arith.constant 0 : index
    %c0_7 = arith.constant 0 : index
    %9 = vector.load %arg3[%c0_6, %c0_7] : memref<32x64xbf16, #tpu.memory_space<vmem>>, vector<32x64xbf16>
    %cst_8 = arith.constant dense<0.000000e+00> : vector<240x64xf32>
    %10 = tpu.matmul %8, %9, %cst_8 {dimension_numbers = #tpu.dot_dimension_numbers<[1], [0], [0], [1], [0, 0, 1, 1], [], []>} : vector<240x32xbf16>, vector<32x64xbf16>, vector<240x64xf32> -> vector<240x64xf32>
    %cst_9 = arith.constant 0.000000e+00 : f32
    %11 = vector.broadcast %cst_9 : f32 to vector<240x64xf32>
    %12 = arith.maximumf %10, %11 : vector<240x64xf32>
    %c0_10 = arith.constant 0 : index
    %c0_11 = arith.constant 0 : index
    %13 = vector.load %arg4[%c0_10, %c0_11] : memref<32x256xbf16, #tpu.memory_space<vmem>>, vector<32x256xbf16>
    %cst_12 = arith.constant dense<0.000000e+00> : vector<240x256xf32>
    %14 = tpu.matmul %8, %13, %cst_12 {dimension_numbers = #tpu.dot_dimension_numbers<[1], [0], [0], [1], [0, 0, 1, 1], [], []>} : vector<240x32xbf16>, vector<32x256xbf16>, vector<240x256xf32> -> vector<240x256xf32>
    %15 = arith.truncf %12 : vector<240x64xf32> to vector<240x64xbf16>
    %c0_13 = arith.constant 0 : index
    %c0_14 = arith.constant 0 : index
    %16 = vector.load %arg5[%c0_13, %c0_14] : memref<64x256xbf16, #tpu.memory_space<vmem>>, vector<64x256xbf16>
    %cst_15 = arith.constant dense<0.000000e+00> : vector<240x256xf32>
    %17 = tpu.matmul %15, %16, %cst_15 {dimension_numbers = #tpu.dot_dimension_numbers<[1], [0], [0], [1], [0, 0, 1, 1], [], []>} : vector<240x64xbf16>, vector<64x256xbf16>, vector<240x256xf32> -> vector<240x256xf32>
    %18 = arith.addf %14, %17 : vector<240x256xf32>
    %19 = vector.shape_cast %18 : vector<240x256xf32> to vector<3x80x256xf32>
    %c0_16 = arith.constant 0 : index
    %c0_17 = arith.constant 0 : index
    %c0_18 = arith.constant 0 : index
    %20 = vector.load %arg6[%c0_16, %c0_17, %c0_18] : memref<3x80x1xi32, #tpu.memory_space<vmem>>, vector<3x80x1xi32>
    %cst_19 = arith.constant dense<0xFF800000> : vector<3x80xf32>
    %21 = vector.multi_reduction <maximumf>, %19, %cst_19 [2] : vector<3x80x256xf32> to vector<3x80xf32>
    %22 = vector.shape_cast %21 : vector<3x80xf32> to vector<3x80x1xf32>
    %23 = vector.broadcast %22 : vector<3x80x1xf32> to vector<3x80x256xf32>
    %24 = arith.subf %19, %23 : vector<3x80x256xf32>
    %25 = math.exp %24 : vector<3x80x256xf32>
    %cst_20 = arith.constant dense<0.000000e+00> : vector<3x80xf32>
    %26 = vector.multi_reduction <add>, %25, %cst_20 [2] : vector<3x80x256xf32> to vector<3x80xf32>
    %27 = vector.shape_cast %26 : vector<3x80xf32> to vector<3x80x1xf32>
    %28 = math.log %27 : vector<3x80x1xf32>
    %29 = arith.addf %22, %28 : vector<3x80x1xf32>
    %30 = tpu.iota {dimensions = array<i32: 2>} : vector<1x1x256xi32>
    %31 = vector.broadcast %30 : vector<1x1x256xi32> to vector<3x80x256xi32>
    %32 = vector.broadcast %20 : vector<3x80x1xi32> to vector<3x80x256xi32>
    %33 = arith.cmpi eq, %31, %32 : vector<3x80x256xi32>
    %cst_21 = arith.constant 0.000000e+00 : f32
    %34 = vector.broadcast %cst_21 : f32 to vector<3x80x256xf32>
    %35 = arith.select %33, %19, %34 : vector<3x80x256xi1>, vector<3x80x256xf32>
    %cst_22 = arith.constant dense<0.000000e+00> : vector<3x80xf32>
    %36 = vector.multi_reduction <add>, %35, %cst_22 [2] : vector<3x80x256xf32> to vector<3x80xf32>
    %37 = vector.shape_cast %36 : vector<3x80xf32> to vector<3x80x1xf32>
    %38 = arith.subf %29, %37 : vector<3x80x1xf32>
    %c-200_i32 = arith.constant -200 : i32
    %39 = vector.broadcast %c-200_i32 : i32 to vector<3x80x1xi32>
    %40 = arith.cmpi ne, %20, %39 : vector<3x80x1xi32>
    %cst_23 = arith.constant 0.000000e+00 : f32
    %41 = vector.broadcast %cst_23 : f32 to vector<3x80x1xf32>
    %42 = arith.select %40, %38, %41 : vector<3x80x1xi1>, vector<3x80x1xf32>
    %cst_24 = arith.constant dense<0.000000e+00> : vector<3x1xf32>
    %43 = vector.multi_reduction <add>, %42, %cst_24 [1] : vector<3x80x1xf32> to vector<3x1xf32>
    %44 = arith.extui %40 : vector<3x80x1xi1> to vector<3x80x1xi32>
    %45 = arith.sitofp %44 : vector<3x80x1xi32> to vector<3x80x1xf32>
    %cst_25 = arith.constant dense<0.000000e+00> : vector<3x1xf32>
    %46 = vector.multi_reduction <add>, %45, %cst_25 [1] : vector<3x80x1xf32> to vector<3x1xf32>
    %cst_26 = arith.constant 1.000000e+00 : f32
    %47 = vector.broadcast %cst_26 : f32 to vector<3x1xf32>
    %48 = arith.maximumf %46, %47 : vector<3x1xf32>
    %49 = arith.divf %43, %48 : vector<3x1xf32>
    %c0_27 = arith.constant 0 : index
    %c0_28 = arith.constant 0 : index
    %50 = vector.load %arg7[%c0_27, %c0_28] : memref<3x1xf32, #tpu.memory_space<vmem>>, vector<3x1xf32>
    tpu.vector_store %arg7[%c0_27, %c0_28], %49 {strides = array<i32>} : memref<3x1xf32, #tpu.memory_space<vmem>>, vector<3x1xf32>,
    return
  }
}

</mosaic_0001>

<bundles_post_ra>
// kernel: squeeze.0
= control target key start
LH: loop header
LB: loop body
LE: loop exit
PB: predicated region body
PF: predicated region fallthrough
CT: control target
= control target key end

     0   :  { %vm99_vm0 = vcmask 15360   ;;  %s1265_s12 = smov 124   ;;  %s1266_s13 = smov 122   ;;  %s1458_s0 = inlined_call_operand.vmem [shape: bf16[1,3,16,16], index: 0, kind: input, shape index: {}]   ;;  %s1459_s1 = inlined_call_operand.vmem [shape: bf16[3,8,2,8,2], index: 1, kind: output, shape index: {}]  }
   0x1   :  { %v1004_v0 = vld [vmem:[%s1458_s0] sm:$0xff]   ;;  %v1127_v1 = vld [vmem:[%s1458_s0 + $0x10] sm:$0xff]   ;;  %v1128_v2 = vld [vmem:[%s1458_s0 + $0x8] sm:$0xff]   ;;  %s1264_s0 = smov 126   ;;  %s1267_s14 = smov 120  }
   0x2   :  { %v1005_v3 = vunpack.c.l.bf16 %v1004_v0  ;;  %v1006_v4 = vunpack.c.h.bf16 %v1004_v0  ;;  %v997_v5 = vunpack.c.l.bf16 %v1127_v1  ;;  %v998_v6 = vunpack.c.h.bf16 %v1127_v1  ;;  %s1268_s15 = smov 118   ;;  %s1269_s16 = smov 116  }
   0x3   :  { %v1001_v7 = vunpack.c.l.bf16 %v1128_v2  ;;  %v1002_v8 = vunpack.c.h.bf16 %v1128_v2  ;;  %s1270_s17 = smov 114  }
   0x4   :  { %106 = vst.msk [vmem:[#allocation0 + $0x40] ss:$8 sm:$0xf] %vm99_vm0, %v1006_v4   ;;  %108 = vst.msk [vmem:[#allocation0 + $0x40] ss:$8 sm:$0xf0] %vm99_vm0, %v1006_v4   ;;  %v1159_v9 = vpack.i.bf16 %v1006_v4, %v1005_v3  ;;  %v1169_v10 = vpack.i.bf16 %v998_v6, %v997_v5 }
   0x5   :  { %100 = vst.msk [vmem:[#allocation0] ss:$8 sm:$0xf] %vm99_vm0, %v1005_v3   ;;  %101 = vst.msk [vmem:[#allocation0] ss:$8 sm:$0xf0] %vm99_vm0, %v1005_v3   ;;  %v1164_v11 = vpack.i.bf16 %v1002_v8, %v1001_v7 }
   0x6   :  { %134 = vst.msk [vmem:[#allocation0 + $0x140] ss:$8 sm:$0xf] %vm99_vm0, %v998_v6   ;;  %136 = vst.msk [vmem:[#allocation0 + $0x140] ss:$8 sm:$0xf0] %vm99_vm0, %v998_v6   ;;  %1160 = vrot.lane.b32.xlu0 %v1159_v9, %s1264_s0  ;;  %1170 = vrot.lane.b32.xlu1 %v1169_v10, %s1264_s0 }
   0x7   :  { %127 = vst.msk [vmem:[#allocation0 + $0x100] ss:$8 sm:$0xf] %vm99_vm0, %v997_v5   ;;  %129 = vst.msk [vmem:[#allocation0 + $0x100] ss:$8 sm:$0xf0] %vm99_vm0, %v997_v5  }
   0x8   :  { %113 = vst.msk [vmem:[#allocation0 + $0x80] ss:$8 sm:$0xf] %vm99_vm0, %v1001_v7   ;;  %115 = vst.msk [vmem:[#allocation0 + $0x80] ss:$8 sm:$0xf0] %vm99_vm0, %v1001_v7  }
   0x9   :  { %120 = vst.msk [vmem:[#allocation0 + $0xc0] ss:$8 sm:$0xf] %vm99_vm0, %v1002_v8   ;;  %122 = vst.msk [vmem:[#allocation0 + $0xc0] ss:$8 sm:$0xf0] %vm99_vm0, %v1002_v8  }
   0xa   :  { %1165 = vrot.lane.b32.xlu0 %v1164_v11, %s1264_s0  ;;  %1175 = vrot.lane.b32.xlu1 %v1159_v9, %s1265_s12 }
   0xe   :  { %1180 = vrot.lane.b32.xlu0 %v1164_v11, %s1265_s12  ;;  %1185 = vrot.lane.b32.xlu1 %v1169_v10, %s1265_s12 }
  0x12   :  { %1190 = vrot.lane.b32.xlu0 %v1159_v9, %s1266_s13  ;;  %1195 = vrot.lane.b32.xlu1 %v1164_v11, %s1266_s13 }
  0x16   :  { %1200 = vrot.lane.b32.xlu0 %v1169_v10, %s1266_s13  ;;  %1205 = vrot.lane.b32.xlu1 %v1159_v9, %s1267_s14 }
  0x1a   :  { %1210 = vrot.lane.b32.xlu0 %v1164_v11, %s1267_s14  ;;  %1215 = vrot.lane.b32.xlu1 %v1169_v10, %s1267_s14 }
  0x1e   :  { %1220 = vrot.lane.b32.xlu0 %v1159_v9, %s1268_s15  ;;  %1225 = vrot.lane.b32.xlu1 %v1164_v11, %s1268_s15 }
  0x22   :  { %1230 = vrot.lane.b32.xlu0 %v1169_v10, %s1268_s15  ;;  %1235 = vrot.lane.b32.xlu1 %v1159_v9, %s1269_s16 }
  0x26   :  { %1240 = vrot.lane.b32.xlu0 %v1164_v11, %s1269_s16  ;;  %1245 = vrot.lane.b32.xlu1 %v1169_v10, %s1269_s16 }
  0x2a   :  { %1250 = vrot.lane.b32.xlu0 %v1159_v9, %s1270_s17  ;;  %1255 = vrot.lane.b32.xlu1 %v1164_v11, %s1270_s17 }
  0x2e   :  { %1260 = vrot.lane.b32.xlu0 %v1169_v10, %s1270_s17 }
  0x78   :  { %v1161_v12 = vpop.permute.xlu0 %1160  ;;  %v1171_v13 = vpop.permute.xlu1 %1170 }
  0x79   :  { %v1163_v14 = vunpack.i.h.bf16 %v1161_v12  ;;  %v1162_v15 = vunpack.i.l.bf16 %v1161_v12  ;;  %v1173_v16 = vunpack.i.h.bf16 %v1171_v13  ;;  %v1172_v17 = vunpack.i.l.bf16 %v1171_v13 }
  0x7b   :  { %151 = vst.msk [vmem:[#allocation0 + $0x41] ss:$8 sm:$0xf] %vm99_vm0, %v1163_v14   ;;  %153 = vst.msk [vmem:[#allocation0 + $0x41] ss:$8 sm:$0xf0] %vm99_vm0, %v1163_v14  }
  0x7c   :  { %142 = vst.msk [vmem:[#allocation0 + $0x1] ss:$8 sm:$0xf] %vm99_vm0, %v1162_v15   ;;  %144 = vst.msk [vmem:[#allocation0 + $0x1] ss:$8 sm:$0xf0] %vm99_vm0, %v1162_v15   ;;  %v1166_v18 = vpop.permute.xlu0 %1165  ;;  %v1176_v19 = vpop.permute.xlu1 %1175 }
  0x7d   :  { %187 = vst.msk [vmem:[#allocation0 + $0x141] ss:$8 sm:$0xf] %vm99_vm0, %v1173_v16   ;;  %189 = vst.msk [vmem:[#allocation0 + $0x141] ss:$8 sm:$0xf0] %vm99_vm0, %v1173_v16   ;;  %v1168_v20 = vunpack.i.h.bf16 %v1166_v18  ;;  %v1167_v21 = vunpack.i.l.bf16 %v1166_v18  ;;  %v1178_v22 = vunpack.i.h.bf16 %v1176_v19  ;;  %v1177_v23 = vunpack.i.l.bf16 %v1176_v19 }
  0x7e   :  { %178 = vst.msk [vmem:[#allocation0 + $0x101] ss:$8 sm:$0xf] %vm99_vm0, %v1172_v17   ;;  %180 = vst.msk [vmem:[#allocation0 + $0x101] ss:$8 sm:$0xf0] %vm99_vm0, %v1172_v17  }
  0x7f   :  { %169 = vst.msk [vmem:[#allocation0 + $0xc1] ss:$8 sm:$0xf] %vm99_vm0, %v1168_v20   ;;  %171 = vst.msk [vmem:[#allocation0 + $0xc1] ss:$8 sm:$0xf0] %vm99_vm0, %v1168_v20  }
  0x80   :  { %160 = vst.msk [vmem:[#allocation0 + $0x81] ss:$8 sm:$0xf] %vm99_vm0, %v1167_v21   ;;  %162 = vst.msk [vmem:[#allocation0 + $0x81] ss:$8 sm:$0xf0] %vm99_vm0, %v1167_v21   ;;  %v1181_v24 = vpop.permute.xlu0 %1180  ;;  %v1186_v25 = vpop.permute.xlu1 %1185 }
  0x81   :  { %204 = vst.msk [vmem:[#allocation0 + $0x42] ss:$8 sm:$0xf] %vm99_vm0, %v1178_v22   ;;  %206 = vst.msk [vmem:[#allocation0 + $0x42] ss:$8 sm:$0xf0] %vm99_vm0, %v1178_v22   ;;  %v1183_v26 = vunpack.i.h.bf16 %v1181_v24  ;;  %v1182_v27 = vunpack.i.l.bf16 %v1181_v24  ;;  %v1188_v28 = vunpack.i.h.bf16 %v1186_v25  ;;  %v1187_v29 = vunpack.i.l.bf16 %v1186_v25 }
  0x82   :  { %195 = vst.msk [vmem:[#allocation0 + $0x2] ss:$8 sm:$0xf] %vm99_vm0, %v1177_v23   ;;  %197 = vst.msk [vmem:[#allocation0 + $0x2] ss:$8 sm:$0xf0] %vm99_vm0, %v1177_v23  }
  0x83   :  { %222 = vst.msk [vmem:[#allocation0 + $0xc2] ss:$8 sm:$0xf] %vm99_vm0, %v1183_v26   ;;  %224 = vst.msk [vmem:[#allocation0 + $0xc2] ss:$8 sm:$0xf0] %vm99_vm0, %v1183_v26  }
  0x84   :  { %213 = vst.msk [vmem:[#allocation0 + $0x82] ss:$8 sm:$0xf] %vm99_vm0, %v1182_v27   ;;  %215 = vst.msk [vmem:[#allocation0 + $0x82] ss:$8 sm:$0xf0] %vm99_vm0, %v1182_v27   ;;  %v1191_v30 = vpop.permute.xlu0 %1190  ;;  %v1196_v31 = vpop.permute.xlu1 %1195 }
  0x85   :  { %240 = vst.msk [vmem:[#allocation0 + $0x142] ss:$8 sm:$0xf] %vm99_vm0, %v1188_v28   ;;  %242 = vst.msk [vmem:[#allocation0 + $0x142] ss:$8 sm:$0xf0] %vm99_vm0, %v1188_v28   ;;  %v1193_v32 = vunpack.i.h.bf16 %v1191_v30  ;;  %v1192_v33 = vunpack.i.l.bf16 %v1191_v30  ;;  %v1198_v34 = vunpack.i.h.bf16 %v1196_v31  ;;  %v1197_v35 = vunpack.i.l.bf16 %v1196_v31 }
  0x86   :  { %231 = vst.msk [vmem:[#allocation0 + $0x102] ss:$8 sm:$0xf] %vm99_vm0, %v1187_v29   ;;  %233 = vst.msk [vmem:[#allocation0 + $0x102] ss:$8 sm:$0xf0] %vm99_vm0, %v1187_v29  }
  0x87   :  { %257 = vst.msk [vmem:[#allocation0 + $0x43] ss:$8 sm:$0xf] %vm99_vm0, %v1193_v32   ;;  %259 = vst.msk [vmem:[#allocation0 + $0x43] ss:$8 sm:$0xf0] %vm99_vm0, %v1193_v32  }
  0x88   :  { %248 = vst.msk [vmem:[#allocation0 + $0x3] ss:$8 sm:$0xf] %vm99_vm0, %v1192_v33   ;;  %250 = vst.msk [vmem:[#allocation0 + $0x3] ss:$8 sm:$0xf0] %vm99_vm0, %v1192_v33   ;;  %v1201_v36 = vpop.permute.xlu0 %1200  ;;  %v1206_v37 = vpop.permute.xlu1 %1205 }
  0x89   :  { %275 = vst.msk [vmem:[#allocation0 + $0xc3] ss:$8 sm:$0xf] %vm99_vm0, %v1198_v34   ;;  %277 = vst.msk [vmem:[#allocation0 + $0xc3] ss:$8 sm:$0xf0] %vm99_vm0, %v1198_v34   ;;  %v1203_v38 = vunpack.i.h.bf16 %v1201_v36  ;;  %v1202_v39 = vunpack.i.l.bf16 %v1201_v36  ;;  %v1208_v40 = vunpack.i.h.bf16 %v1206_v37  ;;  %v1207_v41 = vunpack.i.l.bf16 %v1206_v37 }
  0x8a   :  { %266 = vst.msk [vmem:[#allocation0 + $0x83] ss:$8 sm:$0xf] %vm99_vm0, %v1197_v35   ;;  %268 = vst.msk [vmem:[#allocation0 + $0x83] ss:$8 sm:$0xf0] %vm99_vm0, %v1197_v35  }
  0x8b   :  { %293 = vst.msk [vmem:[#allocation0 + $0x143] ss:$8 sm:$0xf] %vm99_vm0, %v1203_v38   ;;  %295 = vst.msk [vmem:[#allocation0 + $0x143] ss:$8 sm:$0xf0] %vm99_vm0, %v1203_v38  }
  0x8c   :  { %284 = vst.msk [vmem:[#allocation0 + $0x103] ss:$8 sm:$0xf] %vm99_vm0, %v1202_v39   ;;  %286 = vst.msk [vmem:[#allocation0 + $0x103] ss:$8 sm:$0xf0] %vm99_vm0, %v1202_v39   ;;  %v1211_v42 = vpop.permute.xlu0 %1210  ;;  %v1216_v43 = vpop.permute.xlu1 %1215 }
  0x8d   :  { %310 = vst.msk [vmem:[#allocation0 + $0x44] ss:$8 sm:$0xf] %vm99_vm0, %v1208_v40   ;;  %312 = vst.msk [vmem:[#allocation0 + $0x44] ss:$8 sm:$0xf0] %vm99_vm0, %v1208_v40   ;;  %v1213_v44 = vunpack.i.h.bf16 %v1211_v42  ;;  %v1212_v45 = vunpack.i.l.bf16 %v1211_v42  ;;  %v1218_v46 = vunpack.i.h.bf16 %v1216_v43  ;;  %v1217_v47 = vunpack.i.l.bf16 %v1216_v43 }
  0x8e   :  { %301 = vst.msk [vmem:[#allocation0 + $0x4] ss:$8 sm:$0xf] %vm99_vm0, %v1207_v41   ;;  %303 = vst.msk [vmem:[#allocation0 + $0x4] ss:$8 sm:$0xf0] %vm99_vm0, %v1207_v41  }
  0x8f   :  { %328 = vst.msk [vmem:[#allocation0 + $0xc4] ss:$8 sm:$0xf] %vm99_vm0, %v1213_v44   ;;  %330 = vst.msk [vmem:[#allocation0 + $0xc4] ss:$8 sm:$0xf0] %vm99_vm0, %v1213_v44  }
  0x90   :  { %319 = vst.msk [vmem:[#allocation0 + $0x84] ss:$8 sm:$0xf] %vm99_vm0, %v1212_v45   ;;  %321 = vst.msk [vmem:[#allocation0 + $0x84] ss:$8 sm:$0xf0] %vm99_vm0, %v1212_v45   ;;  %v1221_v48 = vpop.permute.xlu0 %1220  ;;  %v1226_v49 = vpop.permute.xlu1 %1225 }
  0x91   :  { %346 = vst.msk [vmem:[#allocation0 + $0x144] ss:$8 sm:$0xf] %vm99_vm0, %v1218_v46   ;;  %348 = vst.msk [vmem:[#allocation0 + $0x144] ss:$8 sm:$0xf0] %vm99_vm0, %v1218_v46   ;;  %v1223_v50 = vunpack.i.h.bf16 %v1221_v48  ;;  %v1222_v51 = vunpack.i.l.bf16 %v1221_v48  ;;  %v1228_v52 = vunpack.i.h.bf16 %v1226_v49  ;;  %v1227_v53 = vunpack.i.l.bf16 %v1226_v49 }
  0x92   :  { %337 = vst.msk [vmem:[#allocation0 + $0x104] ss:$8 sm:$0xf] %vm99_vm0, %v1217_v47   ;;  %339 = vst.msk [vmem:[#allocation0 + $0x104] ss:$8 sm:$0xf0] %vm99_vm0, %v1217_v47  }
  0x93   :  { %363 = vst.msk [vmem:[#allocation0 + $0x45] ss:$8 sm:$0xf] %vm99_vm0, %v1223_v50   ;;  %365 = vst.msk [vmem:[#allocation0 + $0x45] ss:$8 sm:$0xf0] %vm99_vm0, %v1223_v50  }
  0x94   :  { %354 = vst.msk [vmem:[#allocation0 + $0x5] ss:$8 sm:$0xf] %vm99_vm0, %v1222_v51   ;;  %356 = vst.msk [vmem:[#allocation0 + $0x5] ss:$8 sm:$0xf0] %vm99_vm0, %v1222_v51   ;;  %v1231_v54 = vpop.permute.xlu0 %1230  ;;  %v1236_v55 = vpop.permute.xlu1 %1235 }
  0x95   :  { %381 = vst.msk [vmem:[#allocation0 + $0xc5] ss:$8 sm:$0xf] %vm99_vm0, %v1228_v52   ;;  %383 = vst.msk [vmem:[#allocation0 + $0xc5] ss:$8 sm:$0xf0] %vm99_vm0, %v1228_v52   ;;  %v1233_v56 = vunpack.i.h.bf16 %v1231_v54  ;;  %v1232_v57 = vunpack.i.l.bf16 %v1231_v54  ;;  %v1238_v58 = vunpack.i.h.bf16 %v1236_v55  ;;  %v1237_v59 = vunpack.i.l.bf16 %v1236_v55 }
  0x96   :  { %372 = vst.msk [vmem:[#allocation0 + $0x85] ss:$8 sm:$0xf] %vm99_vm0, %v1227_v53   ;;  %374 = vst.msk [vmem:[#allocation0 + $0x85] ss:$8 sm:$0xf0] %vm99_vm0, %v1227_v53  }
  0x97   :  { %399 = vst.msk [vmem:[#allocation0 + $0x145] ss:$8 sm:$0xf] %vm99_vm0, %v1233_v56   ;;  %401 = vst.msk [vmem:[#allocation0 + $0x145] ss:$8 sm:$0xf0] %vm99_vm0, %v1233_v56  }
  0x98   :  { %390 = vst.msk [vmem:[#allocation0 + $0x105] ss:$8 sm:$0xf] %vm99_vm0, %v1232_v57   ;;  %392 = vst.msk [vmem:[#allocation0 + $0x105] ss:$8 sm:$0xf0] %vm99_vm0, %v1232_v57   ;;  %v1241_v60 = vpop.permute.xlu0 %1240  ;;  %v1246_v61 = vpop.permute.xlu1 %1245 }
  0x99   :  { %416 = vst.msk [vmem:[#allocation0 + $0x46] ss:$8 sm:$0xf] %vm99_vm0, %v1238_v58   ;;  %418 = vst.msk [vmem:[#allocation0 + $0x46] ss:$8 sm:$0xf0] %vm99_vm0, %v1238_v58   ;;  %v1243_v62 = vunpack.i.h.bf16 %v1241_v60  ;;  %v1242_v63 = vunpack.i.l.bf16 %v1241_v60  ;;  %v1248_v0 = vunpack.i.h.bf16 %v1246_v61  ;;  %v1247_v1 = vunpack.i.l.bf16 %v1246_v61 }
  0x9a   :  { %407 = vst.msk [vmem:[#allocation0 + $0x6] ss:$8 sm:$0xf] %vm99_vm0, %v1237_v59   ;;  %409 = vst.msk [vmem:[#allocation0 + $0x6] ss:$8 sm:$0xf0] %vm99_vm0, %v1237_v59  }
  0x9b   :  { %434 = vst.msk [vmem:[#allocation0 + $0xc6] ss:$8 sm:$0xf] %vm99_vm0, %v1243_v62   ;;  %436 = vst.msk [vmem:[#allocation0 + $0xc6] ss:$8 sm:$0xf0] %vm99_vm0, %v1243_v62  }
  0x9c   :  { %425 = vst.msk [vmem:[#allocation0 + $0x86] ss:$8 sm:$0xf] %vm99_vm0, %v1242_v63   ;;  %427 = vst.msk [vmem:[#allocation0 + $0x86] ss:$8 sm:$0xf0] %vm99_vm0, %v1242_v63   ;;  %v1251_v2 = vpop.permute.xlu0 %1250  ;;  %v1256_v3 = vpop.permute.xlu1 %1255 }
  0x9d   :  { %452 = vst.msk [vmem:[#allocation0 + $0x146] ss:$8 sm:$0xf] %vm99_vm0, %v1248_v0   ;;  %454 = vst.msk [vmem:[#allocation0 + $0x146] ss:$8 sm:$0xf0] %vm99_vm0, %v1248_v0   ;;  %v1253_v4 = vunpack.i.h.bf16 %v1251_v2  ;;  %v1252_v5 = vunpack.i.l.bf16 %v1251_v2  ;;  %v1258_v6 = vunpack.i.h.bf16 %v1256_v3  ;;  %v1257_v7 = vunpack.i.l.bf16 %v1256_v3 }
  0x9e   :  { %443 = vst.msk [vmem:[#allocation0 + $0x106] ss:$8 sm:$0xf] %vm99_vm0, %v1247_v1   ;;  %445 = vst.msk [vmem:[#allocation0 + $0x106] ss:$8 sm:$0xf0] %vm99_vm0, %v1247_v1  }
  0x9f   :  { %469 = vst.msk [vmem:[#allocation0 + $0x47] ss:$8 sm:$0xf] %vm99_vm0, %v1253_v4   ;;  %471 = vst.msk [vmem:[#allocation0 + $0x47] ss:$8 sm:$0xf0] %vm99_vm0, %v1253_v4  }
  0xa0   :  { %460 = vst.msk [vmem:[#allocation0 + $0x7] ss:$8 sm:$0xf] %vm99_vm0, %v1252_v5   ;;  %462 = vst.msk [vmem:[#allocation0 + $0x7] ss:$8 sm:$0xf0] %vm99_vm0, %v1252_v5   ;;  %v1261_v8 = vpop.permute.xlu0 %1260 }
  0xa1   :  { %487 = vst.msk [vmem:[#allocation0 + $0xc7] ss:$8 sm:$0xf] %vm99_vm0, %v1258_v6   ;;  %489 = vst.msk [vmem:[#allocation0 + $0xc7] ss:$8 sm:$0xf0] %vm99_vm0, %v1258_v6   ;;  %v1263_v9 = vunpack.i.h.bf16 %v1261_v8  ;;  %v1262_v10 = vunpack.i.l.bf16 %v1261_v8 }
  0xa2   :  { %478 = vst.msk [vmem:[#allocation0 + $0x87] ss:$8 sm:$0xf] %vm99_vm0, %v1257_v7   ;;  %480 = vst.msk [vmem:[#allocation0 + $0x87] ss:$8 sm:$0xf0] %vm99_vm0, %v1257_v7  }
  0xa3   :  { %505 = vst.msk [vmem:[#allocation0 + $0x147] ss:$8 sm:$0xf] %vm99_vm0, %v1263_v9   ;;  %507 = vst.msk [vmem:[#allocation0 + $0x147] ss:$8 sm:$0xf0] %vm99_vm0, %v1263_v9  }
  0xa4   :  { %496 = vst.msk [vmem:[#allocation0 + $0x107] ss:$8 sm:$0xf] %vm99_vm0, %v1262_v10   ;;  %498 = vst.msk [vmem:[#allocation0 + $0x107] ss:$8 sm:$0xf0] %vm99_vm0, %v1262_v10  }
  0xa6   :  { %v574_v20 = vld [vmem:[#allocation0 + $0x40] sm:$0xff]  ;;  %v582_v23 = vld [vmem:[#allocation0 + $0x48] sm:$0xff]  ;;  %v590_v24 = vld [vmem:[#allocation0 + $0x50] sm:$0xff] }
  0xa7   :  { %v513_v11 = vld [vmem:[#allocation0] sm:$0xff]  ;;  %v519_v12 = vld [vmem:[#allocation0 + $0x8] sm:$0xff]  ;;  %v526_v13 = vld [vmem:[#allocation0 + $0x10] sm:$0xff]  ;;  %v1030_v30 = vpack.c.bf16 %v582_v23, %v574_v20 }
  0xa8   :  { %v534_v14 = vld [vmem:[#allocation0 + $0x18] sm:$0xff]  ;;  %v542_v15 = vld [vmem:[#allocation0 + $0x20] sm:$0xff]  ;;  %v550_v16 = vld [vmem:[#allocation0 + $0x28] sm:$0xff]  ;;  %v1010_v17 = vpack.c.bf16 %v519_v12, %v513_v11 }
  0xa9   :  { %v558_v18 = vld [vmem:[#allocation0 + $0x30] sm:$0xff]  ;;  %v566_v19 = vld [vmem:[#allocation0 + $0x38] sm:$0xff]  ;;  %v1015_v21 = vpack.c.bf16 %v534_v14, %v526_v13  ;;  %v1020_v22 = vpack.c.bf16 %v550_v16, %v542_v15  ;;  %v606_v27 = vld [vmem:[#allocation0 + $0x60] sm:$0xff]  ;;  %1132 = vst [vmem:[%s1459_s1 + $0x20] sm:$0xff] %v1030_v30  }
  0xaa   :  { %v598_v25 = vld [vmem:[#allocation0 + $0x58] sm:$0xff]  ;;  %v1025_v26 = vpack.c.bf16 %v566_v19, %v558_v18  ;;  %1011 = vst [vmem:[%s1459_s1] sm:$0xff] %v1010_v17   ;;  %v614_v28 = vld [vmem:[#allocation0 + $0x68] sm:$0xff]  ;;  %v622_v29 = vld [vmem:[#allocation0 + $0x70] sm:$0xff] }
  0xab   :  { %v1035_v31 = vpack.c.bf16 %v598_v25, %v590_v24  ;;  %1129 = vst [vmem:[%s1459_s1 + $0x8] sm:$0xff] %v1015_v21   ;;  %1130 = vst [vmem:[%s1459_s1 + $0x10] sm:$0xff] %v1020_v22   ;;  %v630_v32 = vld [vmem:[#allocation0 + $0x78] sm:$0xff]  ;;  %v638_v33 = vld [vmem:[#allocation0 + $0x80] sm:$0xff]  ;;  %v1040_v35 = vpack.c.bf16 %v614_v28, %v606_v27 }
  0xac   :  { %v646_v34 = vld [vmem:[#allocation0 + $0x88] sm:$0xff]  ;;  %1131 = vst [vmem:[%s1459_s1 + $0x18] sm:$0xff] %v1025_v26   ;;  %v654_v37 = vld [vmem:[#allocation0 + $0x90] sm:$0xff]  ;;  %v662_v38 = vld [vmem:[#allocation0 + $0x98] sm:$0xff]  ;;  %v1045_v40 = vpack.c.bf16 %v630_v32, %v622_v29 }
  0xad   :  { %v1050_v36 = vpack.c.bf16 %v646_v34, %v638_v33  ;;  %v670_v39 = vld [vmem:[#allocation0 + $0xa0] sm:$0xff]  ;;  %1133 = vst [vmem:[%s1459_s1 + $0x28] sm:$0xff] %v1035_v31   ;;  %v1055_v41 = vpack.c.bf16 %v662_v38, %v654_v37  ;;  %v678_v42 = vld [vmem:[#allocation0 + $0xa8] sm:$0xff]  ;;  %v686_v43 = vld [vmem:[#allocation0 + $0xb0] sm:$0xff] }
  0xae   :  { %v694_v44 = vld [vmem:[#allocation0 + $0xb8] sm:$0xff]  ;;  %1134 = vst [vmem:[%s1459_s1 + $0x30] sm:$0xff] %v1040_v35   ;;  %v1060_v45 = vpack.c.bf16 %v678_v42, %v670_v39  ;;  %v702_v47 = vld [vmem:[#allocation0 + $0xc0] sm:$0xff]  ;;  %v710_v48 = vld [vmem:[#allocation0 + $0xc8] sm:$0xff] }
  0xaf   :  { %1136 = vst [vmem:[%s1459_s1 + $0x40] sm:$0xff] %v1050_v36   ;;  %v1065_v46 = vpack.c.bf16 %v694_v44, %v686_v43  ;;  %v718_v49 = vld [vmem:[#allocation0 + $0xd0] sm:$0xff]  ;;  %1135 = vst [vmem:[%s1459_s1 + $0x38] sm:$0xff] %v1045_v40   ;;  %v1070_v50 = vpack.c.bf16 %v710_v48, %v702_v47  ;;  %v726_v51 = vld [vmem:[#allocation0 + $0xd8] sm:$0xff] }
  0xb0   :  { %1137 = vst [vmem:[%s1459_s1 + $0x48] sm:$0xff] %v1055_v41   ;;  %v734_v52 = vld [vmem:[#allocation0 + $0xe0] sm:$0xff]  ;;  %v742_v53 = vld [vmem:[#allocation0 + $0xe8] sm:$0xff]  ;;  %1138 = vst [vmem:[%s1459_s1 + $0x50] sm:$0xff] %v1060_v45   ;;  %v1075_v54 = vpack.c.bf16 %v726_v51, %v718_v49 }
  0xb1   :  { %1139 = vst [vmem:[%s1459_s1 + $0x58] sm:$0xff] %v1065_v46   ;;  %v1080_v55 = vpack.c.bf16 %v742_v53, %v734_v52  ;;  %v750_v56 = vld [vmem:[#allocation0 + $0xf0] sm:$0xff]  ;;  %v758_v57 = vld [vmem:[#allocation0 + $0xf8] sm:$0xff]  ;;  %v766_v58 = vld [vmem:[#allocation0 + $0x100] sm:$0xff] }
  0xb2   :  { %1140 = vst [vmem:[%s1459_s1 + $0x60] sm:$0xff] %v1070_v50   ;;  %v1085_v59 = vpack.c.bf16 %v758_v57, %v750_v56  ;;  %v774_v60 = vld [vmem:[#allocation0 + $0x108] sm:$0xff]  ;;  %v782_v61 = vld [vmem:[#allocation0 + $0x110] sm:$0xff]  ;;  %v790_v62 = vld [vmem:[#allocation0 + $0x118] sm:$0xff] }
  0xb3   :  { %1141 = vst [vmem:[%s1459_s1 + $0x68] sm:$0xff] %v1075_v54   ;;  %1142 = vst [vmem:[%s1459_s1 + $0x70] sm:$0xff] %v1080_v55   ;;  %v1090_v63 = vpack.c.bf16 %v774_v60, %v766_v58  ;;  %v1095_v0 = vpack.c.bf16 %v790_v62, %v782_v61  ;;  %v798_v1 = vld [vmem:[#allocation0 + $0x120] sm:$0xff]  ;;  %v806_v2 = vld [vmem:[#allocation0 + $0x128] sm:$0xff] }
  0xb4   :  { %v814_v3 = vld [vmem:[#allocation0 + $0x130] sm:$0xff]  ;;  %1143 = vst [vmem:[%s1459_s1 + $0x78] sm:$0xff] %v1085_v59   ;;  %v1100_v4 = vpack.c.bf16 %v806_v2, %v798_v1  ;;  %v822_v5 = vld [vmem:[#allocation0 + $0x138] sm:$0xff]  ;;  %v830_v6 = vld [vmem:[#allocation0 + $0x140] sm:$0xff] }
  0xb5   :  { %v838_v7 = vld [vmem:[#allocation0 + $0x148] sm:$0xff]  ;;  %1144 = vst [vmem:[%s1459_s1 + $0x80] sm:$0xff] %v1090_v63   ;;  %1145 = vst [vmem:[%s1459_s1 + $0x88] sm:$0xff] %v1095_v0   ;;  %v1105_v8 = vpack.c.bf16 %v822_v5, %v814_v3  ;;  %v846_v10 = vld [vmem:[#allocation0 + $0x150] sm:$0xff] }
  0xb6   :  { %v1110_v9 = vpack.c.bf16 %v838_v7, %v830_v6  ;;  %v854_v11 = vld [vmem:[#allocation0 + $0x158] sm:$0xff]  ;;  %v862_v12 = vld [vmem:[#allocation0 + $0x160] sm:$0xff]  ;;  %1146 = vst [vmem:[%s1459_s1 + $0x90] sm:$0xff] %v1100_v4   ;;  %v870_v14 = vld [vmem:[#allocation0 + $0x168] sm:$0xff] }
  0xb7   :  { %v1115_v13 = vpack.c.bf16 %v854_v11, %v846_v10  ;;  %v878_v15 = vld [vmem:[#allocation0 + $0x170] sm:$0xff]  ;;  %v886_v16 = vld [vmem:[#allocation0 + $0x178] sm:$0xff]  ;;  %1147 = vst [vmem:[%s1459_s1 + $0x98] sm:$0xff] %v1105_v8   ;;  %v1120_v17 = vpack.c.bf16 %v870_v14, %v862_v12 }
  0xb8   :  { %1148 = vst [vmem:[%s1459_s1 + $0xa0] sm:$0xff] %v1110_v9   ;;  %v1125_v18 = vpack.c.bf16 %v886_v16, %v878_v15 }
  0xb9   :  { %1149 = vst [vmem:[%s1459_s1 + $0xa8] sm:$0xff] %v1115_v13   ;;  %1150 = vst [vmem:[%s1459_s1 + $0xb0] sm:$0xff] %v1120_v17  }
  0xba   :  { %1151 = vst [vmem:[%s1459_s1 + $0xb8] sm:$0xff] %v1125_v18  }

// kernel: _compute_losses.1
= control target key start
LH: loop header
LB: loop body
LE: loop exit
PB: predicated region body
PF: predicated region fallthrough
CT: control target
= control target key end

     0   :  { %vm85_vm0 = vcmask 1045504   ;;  %v2518_v0 = vmov 0.0   ;;  %vm2519_vm1 = vmmov 0   ;;  %vm69_vm2 = vcmask 97280   ;;  %s4385_s2 = inlined_call_operand.vmem [shape: bf16[12,32], index: 2, kind: input, shape index: {}]   ;;  %s4386_s1 = inlined_call_operand.vmem [shape: bf16[80,12], index: 1, kind: input, shape index: {}]   ;;  %s4387_s3 = inlined_call_operand.vmem [shape: bf16[32,64], index: 3, kind: input, shape index: {}]   ;;  %s4388_s4 = inlined_call_operand.vmem [shape: bf16[32,256], index: 4, kind: input, shape index: {}]   ;;  %s4389_s0 = inlined_call_operand.vmem [shape: f32[3,80,32], index: 0, kind: input, shape index: {}]   ;;  %s4390_s5 = inlined_call_operand.vmem [shape: bf16[64,256], index: 5, kind: input, shape index: {}]   ;;  %s4391_s6 = inlined_call_operand.vmem [shape: s32[3,80,1], index: 6, kind: input, shape index: {}]   ;;  %s4392_s7 = inlined_call_operand.vmem [shape: f32[3,1], index: 7, kind: output, shape index: {}]  }
   0x1   :  { %2211 = vmatprep.subr.bf16.mxu0 %v2518_v0  ;;  %v2306_v1 = vld [vmem:[%s4385_s2] sm:$0x3f]   ;;  %2213 = vmatprep.mubr.msk.bf16.mxu0 %vm2519_vm1, %v2518_v0  ;;  %v2312_v4 = vld [vmem:[%s4387_s3 + $0x8] sm:$0xff]   ;;  %v2309_v7 = vld [vmem:[%s4386_s1 + $0x10] sm:$0xff]   ;;  %v4428_v11 = vmov 0   ;;  %vm253_vm3 = vcmask 261120  }
   0x2   :  { %2297 = vmatprep.subr.bf16.mxu1 %v2518_v0  ;;  %2257 = vmatprep.mubr.msk.bf16.mxu1 %vm2519_vm1, %v2518_v0  ;;  %v87_v2 = vsel %vm85_vm0, %v2306_v1, 0  ;;  %v2307_v3 = vld [vmem:[%s4386_s1] sm:$0xff]   ;;  %v2308_v6 = vld [vmem:[%s4386_s1 + $0x8] sm:$0xff]   ;;  %v2310_v8 = vld [vmem:[%s4386_s1 + $0x18] sm:$0xff]   ;;  %vm4455_vm5 = vcmask 7168  }
   0x3   :  { %2212 = vmatpush3.bf16.msra.mxu0 %v87_v2  ;;  %v2313_v5 = vld [vmem:[%s4387_s3] sm:$0xff]   ;;  %2299 = vmatpush3.bf16.msra.mxu1 %v2312_v4  ;;  %v2316_v10 = vld [vmem:[%s4388_s4 + $0x14] ss:$8 sps:$4 sm:$0xff]   ;;  %v163_v16 = vld [vmem:[%s4389_s0 + $0x8] sm:$0xff] }
   0x4   :  { %2233 = vmatprep.subr.bf16.mxu0 %v2518_v0  ;;  %2298 = vmatprep.subr.bf16.mxu1 %v2518_v0  ;;  %v2311_v9 = vld [vmem:[%s4386_s1 + $0x20] sm:$0xff]   ;;  %v172_v14 = vld [vmem:[%s4389_s0 + $0x50] sm:$0xff]  ;;  %v173_v17 = vld [vmem:[%s4389_s0 + $0x58] sm:$0xff] }
   0x5   :  { %2305 = vset.pattern.permute.xlu1 %v4428_v11  ;;  %2304 = vset.pattern.permute.xlu0 %v4428_v11  ;;  %v162_v13 = vld [vmem:[%s4389_s0] sm:$0xff]  ;;  %v2314_v26 = vld [vmem:[%s4388_s4 + $0x10] ss:$8 sps:$4 sm:$0xff]   ;;  %v175_v33 = vld [vmem:[%s4389_s0 + $0x68] sm:$0xff] }
   0x6   :  { %2214 = vmatmul.mubr.msk.bf16.vlgmr.msra.gmra.mxu0 %vm69_vm2, %v2307_v3  ;;  %v2319_v28 = vld [vmem:[%s4388_s4 + $0x4] ss:$8 sps:$4 sm:$0xff]   ;;  %v164_v29 = vld [vmem:[%s4389_s0 + $0x10] sm:$0xff]  ;;  %v165_v32 = vld [vmem:[%s4389_s0 + $0x18] sm:$0xff] }
   0x7   :  { %2217 = vmatprep.mubr.msk.bf16.mxu0 %vm2519_vm1, %v2518_v0  ;;  %2234 = vmatpush3.bf16.msra.mxu0 %v2312_v4  ;;  %v174_v30 = vld [vmem:[%s4389_s0 + $0x60] sm:$0xff]  ;;  %v176_v45 = vld [vmem:[%s4389_s0 + $0x70] sm:$0xff]  ;;  %v167_v47 = vld [vmem:[%s4389_s0 + $0x28] sm:$0xff] }
   0x8   :  { %2235 = vmatprep.subr.bf16.mxu0 %v2518_v0  ;;  %2300 = vmatpush3.bf16.msra.mxu1 %v2313_v5  ;;  %v2317_v34 = vld [vmem:[%s4388_s4] ss:$8 sps:$4 sm:$0xff]   ;;  %v177_v48 = vld [vmem:[%s4389_s0 + $0x78] sm:$0xff]  ;;  %v168_v58 = vld [vmem:[%s4389_s0 + $0x30] sm:$0xff] }
   0x9   :  { %810 = vmatprep.subr.bf16.mxu1 %v2316_v10  ;;  %v166_v44 = vld [vmem:[%s4389_s0 + $0x20] sm:$0xff]  ;;  %v169_v61 = vld [vmem:[%s4389_s0 + $0x38] sm:$0xff]  ;;  %v179_v62 = vld [vmem:[%s4389_s0 + $0x88] sm:$0xff] }
   0xa   :  { %v178_v59 = vld [vmem:[%s4389_s0 + $0x80] sm:$0xff]  ;;  %v180_v10 = vld [vmem:[%s4389_s0 + $0x90] sm:$0xff] }
   0xb   :  { %2236 = vmatpush3.bf16.msra.mxu0 %v2313_v5 }
   0xe   :  { %2218 = vmatmul.mubr.msk.bf16.gmra.mxu0 %vm69_vm2, %v2308_v6 }
   0xf   :  { %2221 = vmatprep.mubr.msk.bf16.mxu0 %vm2519_vm1, %v2518_v0 }
  0x16   :  { %2222 = vmatmul.mubr.msk.bf16.gmra.mxu0 %vm69_vm2, %v2309_v7 }
  0x17   :  { %2225 = vmatprep.mubr.msk.bf16.mxu0 %vm2519_vm1, %v2518_v0 }
  0x1e   :  { %2226 = vmatmul.mubr.msk.bf16.gmra.mxu0 %vm69_vm2, %v2310_v8 }
  0x1f   :  { %2229 = vmatprep.mubr.msk.bf16.mxu0 %vm2519_vm1, %v2518_v0 }
  0x26   :  { %2230 = vmatmul.mubr.msk.bf16.gmra.mxu0 %vm69_vm2, %v2311_v9  ;;  %v170_v9 = vld [vmem:[%s4389_s0 + $0x40] sm:$0xff] }
  0x27   :  { %2237 = vmatprep.mubr.msk.bf16.mxu0 %vm2519_vm1, %v2518_v0 }
  0xc6   :  { %v2614_v12 = vpop.f32.mrf.mxu0 }
  0xc7   :  { %v192_v19 = vadd.f32 %v162_v13, %v2614_v12  ;;  %v202_v20 = vadd.f32 %v172_v14, %v2614_v12  ;;  %v171_v14 = vld [vmem:[%s4389_s0 + $0x48] sm:$0xff] }
  0xc8   :  { %v2215_v15 = vpop.f32.mrf.mxu0 }
  0xc9   :  { %v181_v15 = vld [vmem:[%s4389_s0 + $0x98] sm:$0xff] }
  0xca   :  { %v2628_v18 = vpop.f32.mrf.mxu0 }
  0xcb   :  { %v193_v21 = vadd.f32 %v163_v16, %v2628_v18  ;;  %v203_v22 = vadd.f32 %v173_v17, %v2628_v18  ;;  %v2320_v16 = vld [vmem:[%s4390_s5 + $0x30] ss:$8 sps:$4 sm:$0xff]  }
  0xcc   :  { %v2216_v23 = vpop.f32.mrf.mxu0 }
  0xcd   :  { %v2634_v24 = vpack.c.bf16 %v193_v21, %v192_v19  ;;  %v2636_v25 = vpack.c.bf16 %v203_v22, %v202_v20  ;;  %v2322_v19 = vld [vmem:[%s4390_s5 + $0x34] ss:$8 sps:$4 sm:$0xff]  }
  0xce   :  { %v2641_v27 = vpop.f32.mrf.mxu0  ;;  %603 = vmatprep.subr.bf16.mxu0 %v2322_v19  ;;  %v2974_v19 = vld [vmem:[%s4391_s6 + $0xa8] sm:$0xff] }
  0xcf   :  { %2238 = vmatmul.mubr.msk.bf16.vlgmr.msra.gmra.mxu0 %vm253_vm3, %v2634_v24  ;;  %2258 = vmatmul.mubr.msk.bf16.vlgmr.msra.gmra.mxu1 %vm253_vm3, %v2636_v25  ;;  %v194_v36 = vadd.f32 %v164_v29, %v2641_v27  ;;  %v204_v37 = vadd.f32 %v174_v30, %v2641_v27  ;;  %v183_v30 = vld [vmem:[%s4389_s0 + $0xa8] sm:$0xff]  ;;  %4500 = vst [vmem:[#allocation10_spill] sm:$0xff] %v2974_v19  ;;  %vm4396_vm12 = vcmp.ne.s32.totalorder %v2974_v19, 4294967096 }
  0xd0   :  { %v2219_v31 = vpop.f32.mrf.mxu0  ;;  %2241 = vmatprep.mubr.msk.bf16.mxu0 %vm2519_vm1, %v2518_v0  ;;  %2261 = vmatprep.mubr.msk.bf16.mxu1 %vm2519_vm1, %v2518_v0 }
  0xd1   :  { %811 = vmatpush1.bf16.msra.mxu1 %v2314_v26  ;;  %604 = vmatpush1.bf16.msra.mxu0 %v2320_v16  ;;  %v182_v31 = vld [vmem:[%s4389_s0 + $0xa0] sm:$0xff] }
  0xd2   :  { %v2669_v35 = vpop.f32.mrf.mxu0  ;;  %812 = vmatprep.subr.bf16.mxu1 %v2319_v28 }
  0xd3   :  { %v195_v38 = vadd.f32 %v165_v32, %v2669_v35  ;;  %v205_v39 = vadd.f32 %v175_v33, %v2669_v35  ;;  %v213_v32 = vadd.f32 %v183_v30, %v2628_v18  ;;  %v212_v33 = vadd.f32 %v182_v31, %v2614_v12  ;;  %v184_v12 = vld [vmem:[%s4389_s0 + $0xb0] sm:$0xff] }
  0xd4   :  { %v2220_v40 = vpop.f32.mrf.mxu0 }
  0xd5   :  { %v2675_v41 = vpack.c.bf16 %v195_v38, %v194_v36  ;;  %v2677_v42 = vpack.c.bf16 %v205_v39, %v204_v37  ;;  %813 = vmatpush1.bf16.msra.mxu1 %v2317_v34  ;;  %v2789_v34 = vpack.c.bf16 %v213_v32, %v212_v33  ;;  %v185_v36 = vld [vmem:[%s4389_s0 + $0xb8] sm:$0xff]  ;;  %v2323_v37 = vld [vmem:[%s4390_s5 + $0x20] ss:$8 sps:$4 sm:$0xff]   ;;  %v2325_v38 = vld [vmem:[%s4390_s5 + $0x24] ss:$8 sps:$4 sm:$0xff]   ;;  %v214_v39 = vadd.f32 %v184_v12, %v2641_v27 }
  0xd6   :  { %v2679_v43 = vpop.f32.mrf.mxu0  ;;  %v215_v18 = vadd.f32 %v185_v36, %v2669_v35  ;;  %605 = vmatprep.subr.bf16.mxu0 %v2325_v38  ;;  %v2328_v35 = vld [vmem:[%s4390_s5 + $0x14] ss:$8 sps:$4 sm:$0xff]   ;;  %v186_v27 = vld [vmem:[%s4389_s0 + $0xc0] sm:$0xff] }
  0xd7   :  { %2242 = vmatmul.mubr.msk.bf16.gmra.mxu0 %vm253_vm3, %v2675_v41  ;;  %2262 = vmatmul.mubr.msk.bf16.gmra.mxu1 %vm253_vm3, %v2677_v42  ;;  %v196_v50 = vadd.f32 %v166_v44, %v2679_v43  ;;  %v206_v51 = vadd.f32 %v176_v45, %v2679_v43  ;;  %v187_v44 = vld [vmem:[%s4389_s0 + $0xc8] sm:$0xff]  ;;  %v2326_v45 = vld [vmem:[%s4390_s5 + $0x10] ss:$8 sps:$4 sm:$0xff]  }
  0xd8   :  { %v2223_v46 = vpop.f32.mrf.mxu0  ;;  %2245 = vmatprep.mubr.msk.bf16.mxu0 %vm2519_vm1, %v2518_v0  ;;  %2265 = vmatprep.mubr.msk.bf16.mxu1 %vm2519_vm1, %v2518_v0  ;;  %v2809_v40 = vpack.c.bf16 %v215_v18, %v214_v39 }
  0xd9   :  { %606 = vmatpush1.bf16.msra.mxu0 %v2323_v37  ;;  %v3006_v37 = vld [vmem:[%s4391_s6 + $0x68] sm:$0xff] }
  0xda   :  { %v2701_v49 = vpop.f32.mrf.mxu0  ;;  %607 = vmatprep.subr.bf16.mxu0 %v2328_v35  ;;  %4503 = vst [vmem:[#allocation13_spill] sm:$0xff] %v3006_v37  ;;  %vm4422_vm0 = vcmp.ne.s32.totalorder %v3006_v37, 4294967096 }
  0xdb   :  { %v197_v52 = vadd.f32 %v167_v47, %v2701_v49  ;;  %v207_v53 = vadd.f32 %v177_v48, %v2701_v49  ;;  %v217_v46 = vadd.f32 %v187_v44, %v2701_v49  ;;  %v216_v47 = vadd.f32 %v186_v27, %v2679_v43  ;;  %v2331_v49 = vld [vmem:[%s4390_s5 + $0x4] ss:$8 sps:$4 sm:$0xff]   ;;  %v188_v43 = vld [vmem:[%s4389_s0 + $0xd0] sm:$0xff]  ;;  %v3027_v27 = vld [vmem:[%s4391_s6 + $0xb8] sm:$0xff] }
  0xdc   :  { %v2224_v54 = vpop.f32.mrf.mxu0  ;;  %v2171_v18 = vsel %vm4422_vm0, 1.0, %v2518_v0  ;;  %4504 = vst [vmem:[#allocation14_spill] sm:$0xff] %v3027_v27 }
  0xdd   :  { %v2707_v55 = vpack.c.bf16 %v197_v52, %v196_v50  ;;  %v2709_v56 = vpack.c.bf16 %v207_v53, %v206_v51  ;;  %608 = vmatpush1.bf16.msra.mxu0 %v2326_v45  ;;  %v2829_v48 = vpack.c.bf16 %v217_v46, %v216_v47  ;;  %v189_v50 = vld [vmem:[%s4389_s0 + $0xd8] sm:$0xff]  ;;  %v2329_v51 = vld [vmem:[%s4390_s5] ss:$8 sps:$4 sm:$0xff]   ;;  %v2020_v44 = vsel %vm4455_vm5, %v2171_v18, 0.0  ;;  %v3032_v46 = vld [vmem:[%s4391_s6 + $0x70] sm:$0xff] }
  0xde   :  { %v2711_v57 = vpop.f32.mrf.mxu0  ;;  %609 = vmatprep.subr.bf16.mxu0 %v2331_v49  ;;  %4505 = vst [vmem:[#allocation15_spill] sm:$0xff] %v3032_v46  ;;  %vm4405_vm2 = vcmp.ne.s32.totalorder %v3032_v46, 4294967096 }
  0xdf   :  { %2246 = vmatmul.mubr.msk.bf16.gmra.mxu0 %vm253_vm3, %v2707_v55  ;;  %2266 = vmatmul.mubr.msk.bf16.gmra.mxu1 %vm253_vm3, %v2709_v56  ;;  %v198_v1 = vadd.f32 %v168_v58, %v2711_v57  ;;  %v208_v2 = vadd.f32 %v178_v59, %v2711_v57  ;;  %v218_v53 = vadd.f32 %v188_v43, %v2711_v57  ;;  %v191_v58 = vld [vmem:[%s4389_s0 + $0xe8] sm:$0xff]  ;;  %v190_v59 = vld [vmem:[%s4389_s0 + $0xe0] sm:$0xff] }
  0xe0   :  { %v2227_v60 = vpop.f32.mrf.mxu0  ;;  %2249 = vmatprep.mubr.msk.bf16.mxu0 %vm2519_vm1, %v2518_v0  ;;  %2269 = vmatprep.mubr.msk.bf16.mxu1 %vm2519_vm1, %v2518_v0 }
  0xe1   :  { %610 = vmatpush1.bf16.msra.mxu0 %v2329_v51  ;;  %v2172_v51 = vsel %vm4405_vm2, 1.0, %v2518_v0 }
  0xe2   :  { %v2733_v63 = vpop.f32.mrf.mxu0  ;;  %v2022_v43 = vsel %vm4455_vm5, %v2172_v51, 0.0 }
  0xe3   :  { %v199_v3 = vadd.f32 %v169_v61, %v2733_v63  ;;  %v209_v4 = vadd.f32 %v179_v62, %v2733_v63  ;;  %v219_v52 = vadd.f32 %v189_v50, %v2733_v63  ;;  %v2905_v62 = vld [vmem:[%s4391_s6 + $0x20] sm:$0xff] }
  0xe4   :  { %v2228_v5 = vpop.f32.mrf.mxu0  ;;  %4495 = vst [vmem:[#allocation5_spill] sm:$0xff] %v2905_v62  ;;  %vm4431_vm14 = vcmp.ne.s32.totalorder %v2905_v62, 4294967096 }
  0xe5   :  { %v2739_v6 = vpack.c.bf16 %v199_v3, %v198_v1  ;;  %v2741_v7 = vpack.c.bf16 %v209_v4, %v208_v2  ;;  %v2849_v54 = vpack.c.bf16 %v219_v52, %v218_v53  ;;  %v2162_v38 = vsel %vm4431_vm14, 1.0, %v2518_v0 }
  0xe6   :  { %v2743_v8 = vpop.f32.mrf.mxu0  ;;  %v1997_v47 = vsel %vm4455_vm5, %v2162_v38, 0.0 }
  0xe7   :  { %2250 = vmatmul.mubr.msk.bf16.gmra.mxu0 %vm253_vm3, %v2739_v6  ;;  %2270 = vmatmul.mubr.msk.bf16.gmra.mxu1 %vm253_vm3, %v2741_v7  ;;  %v200_v20 = vadd.f32 %v170_v9, %v2743_v8  ;;  %v210_v21 = vadd.f32 %v180_v10, %v2743_v8  ;;  %v220_v61 = vadd.f32 %v190_v59, %v2743_v8  ;;  %v2952_v8 = vld [vmem:[%s4391_s6] sm:$0xff] }
  0xe8   :  { %v2231_v13 = vpop.f32.mrf.mxu0  ;;  %2253 = vmatprep.mubr.msk.bf16.mxu0 %vm2519_vm1, %v2518_v0  ;;  %2273 = vmatprep.mubr.msk.bf16.mxu1 %vm2519_vm1, %v2518_v0  ;;  %4499 = vst [vmem:[#allocation9_spill] sm:$0xff] %v2952_v8  ;;  %vm4467_vm11 = vcmp.ne.s32.totalorder %v2952_v8, 4294967096 }
  0xe9   :  { %1465 = vperm.xlu0 %2304, %v2952_v8  }
  0xea   :  { %v158_v17 = vpop.f32.mrf.mxu0 }
  0xeb   :  { %v201_v22 = vadd.f32 %v171_v14, %v158_v17  ;;  %v211_v23 = vadd.f32 %v181_v15, %v158_v17  ;;  %v221_v60 = vadd.f32 %v191_v58, %v158_v17  ;;  %v2158_v14 = vsel %vm4467_vm11, 1.0, %v2518_v0  ;;  %v3058_v58 = vld [vmem:[%s4391_s6 + $0x28] sm:$0xff] }
  0xec   :  { %v2232_v26 = vpop.f32.mrf.mxu0  ;;  %v1990_v16 = vsel %vm4455_vm5, %v2158_v14, 0.0  ;;  %4507 = vst [vmem:[#allocation17_spill] sm:$0xff] %v3058_v58 }
  0xed   :  { %v226_v28 = vpack.c.bf16 %v201_v22, %v200_v20  ;;  %v2773_v29 = vpack.c.bf16 %v211_v23, %v210_v21  ;;  %v2862_v57 = vpack.c.bf16 %v221_v60, %v220_v61  ;;  %v2979_v20 = vld [vmem:[%s4391_s6 + $0x60] sm:$0xff]  ;;  %v2179_v26 = vsel %vm4396_vm12, 1.0, %v2518_v0 }
  0xee   :  { %4501 = vst [vmem:[#allocation11_spill] sm:$0xff] %v2979_v20  ;;  %vm4423_vm13 = vcmp.ne.s32.totalorder %v2979_v20, 4294967096  ;;  %1501 = vperm.xlu0 %2304, %v2979_v20   ;;  %v2041_v30 = vsel %vm4455_vm5, %v2179_v26, 0.0 }
  0xef   :  { %2254 = vmatmul.mubr.msk.bf16.gmra.mxu0 %vm253_vm3, %v226_v28  ;;  %2274 = vmatmul.mubr.msk.bf16.gmra.mxu1 %vm253_vm3, %v2773_v29 }
  0xf0   :  { %2277 = vmatprep.mubr.msk.bf16.mxu1 %vm2519_vm1, %v2518_v0  ;;  %627 = vmatprep.mubr.bf16.mxu0 %v4428_v11 }
  0xf2   :  { %1504 = vperm.xlu0 %2304, %v3006_v37  }
  0xf6   :  { %1507 = vperm.xlu0 %2304, %v3032_v46  }
  0xf7   :  { %2278 = vmatmul.mubr.msk.bf16.gmra.mxu1 %vm253_vm3, %v2789_v34 }
  0xf8   :  { %2281 = vmatprep.mubr.msk.bf16.mxu1 %vm2519_vm1, %v2518_v0 }
  0xfa   :  { %1480 = vperm.xlu0 %2304, %v3058_v58  }
  0xff   :  { %2282 = vmatmul.mubr.msk.bf16.gmra.mxu1 %vm253_vm3, %v2809_v40 }
 0x100   :  { %2285 = vmatprep.mubr.msk.bf16.mxu1 %vm2519_vm1, %v2518_v0 }
 0x107   :  { %2286 = vmatmul.mubr.msk.bf16.gmra.mxu1 %vm253_vm3, %v2829_v48 }
 0x108   :  { %2289 = vmatprep.mubr.msk.bf16.mxu1 %vm2519_vm1, %v2518_v0 }
 0x10f   :  { %2290 = vmatmul.mubr.msk.bf16.gmra.mxu1 %vm253_vm3, %v2849_v54 }
 0x110   :  { %2293 = vmatprep.mubr.msk.bf16.mxu1 %vm2519_vm1, %v2518_v0  ;;  %vm4393_vm1 = vcmp.ne.s32.totalorder %v3027_v27, 4294967096 }
 0x111   :  { %v2181_v50 = vsel %vm4393_vm1, 1.0, %v2518_v0 }
 0x112   :  { %v2045_v49 = vsel %vm4455_vm5, %v2181_v50, 0.0 }
 0x117   :  { %2294 = vmatmul.mubr.msk.bf16.gmra.mxu1 %vm253_vm3, %v2862_v57 }
 0x118   :  { %830 = vmatprep.mubr.bf16.mxu1 %v4428_v11 }
 0x11f   :  { %2143 = vmatmul.mubr.msk.bf16.vlgmr.msra.gmra.mxu1 %vm253_vm3, %v2634_v24  ;;  %v2884_v24 = vld [vmem:[%s4391_s6 + $0x8] sm:$0xff] }
 0x120   :  { %840 = vmatprep.mubr.bf16.mxu1 %v4428_v11  ;;  %4492 = vst [vmem:[#allocation2_spill] sm:$0xff] %v2884_v24  ;;  %1468 = vperm.xlu1 %2305, %v2884_v24   ;;  %vm4464_vm6 = vcmp.ne.s32.totalorder %v2884_v24, 4294967096 }
 0x121   :  { %v2159_v2 = vsel %vm4464_vm6, 1.0, %v2518_v0 }
 0x122   :  { %v1991_v9 = vsel %vm4455_vm5, %v2159_v2, 0.0 }
 0x123   :  { %v1992_v17 = vadd.f32 %v1991_v9, %v1990_v16  ;;  %v3105_v16 = vld [vmem:[%s4391_s6 + $0x80] sm:$0xff] }
 0x124   :  { %4511 = vst [vmem:[#allocation21_spill] sm:$0xff] %v3105_v16 }
 0x127   :  { %2144 = vmatmul.mubr.msk.bf16.gmra.mxu1 %vm253_vm3, %v2675_v41  ;;  %v2890_v41 = vld [vmem:[%s4391_s6 + $0x10] sm:$0xff] }
 0x128   :  { %850 = vmatprep.mubr.bf16.mxu1 %v4428_v11  ;;  %4493 = vst [vmem:[#allocation3_spill] sm:$0xff] %v2890_v41  ;;  %1471 = vperm.xlu1 %2305, %v2890_v41   ;;  %vm4439_vm8 = vcmp.ne.s32.totalorder %v2890_v41, 4294967096 }
 0x129   :  { %v2160_v5 = vsel %vm4439_vm8, 1.0, %v2518_v0 }
 0x12a   :  { %v1993_v15 = vsel %vm4455_vm5, %v2160_v5, 0.0  ;;  %v3080_v5 = vld [vmem:[%s4391_s6 + $0xc8] sm:$0xff] }
 0x12b   :  { %v1994_v23 = vadd.f32 %v1993_v15, %v1992_v17  ;;  %4509 = vst [vmem:[#allocation19_spill] sm:$0xff] %v3080_v5  ;;  %vm4397_vm12 = vcmp.ne.s32.totalorder %v3080_v5, 4294967096  ;;  %1540 = vperm.xlu0 %2304, %v3080_v5  }
 0x12c   :  { %v2183_v9 = vsel %vm4397_vm12, 1.0, %v2518_v0 }
 0x12f   :  { %2145 = vmatmul.mubr.msk.bf16.gmra.mxu1 %vm253_vm3, %v2707_v55  ;;  %v2899_v55 = vld [vmem:[%s4391_s6 + $0x18] sm:$0xff]  ;;  %1513 = vperm.xlu0 %2304, %v3105_v16  }
 0x130   :  { %860 = vmatprep.mubr.bf16.mxu1 %v4428_v11  ;;  %4494 = vst [vmem:[#allocation4_spill] sm:$0xff] %v2899_v55  ;;  %1474 = vperm.xlu1 %2305, %v2899_v55   ;;  %vm4438_vm9 = vcmp.ne.s32.totalorder %v2899_v55, 4294967096 }
 0x131   :  { %v2161_v10 = vsel %vm4438_vm9, 1.0, %v2518_v0 }
 0x132   :  { %v1995_v21 = vsel %vm4455_vm5, %v2161_v10, 0.0 }
 0x133   :  { %v1996_v32 = vadd.f32 %v1995_v21, %v1994_v23 }
 0x134   :  { %1477 = vperm.xlu1 %2305, %v2905_v62  }
 0x135   :  { %v1998_v59 = vadd.f32 %v1997_v47, %v1996_v32 }
 0x137   :  { %2146 = vmatmul.mubr.msk.bf16.gmra.mxu1 %vm253_vm3, %v2739_v6 }
 0x138   :  { %870 = vmatprep.mubr.bf16.mxu1 %v4428_v11 }
 0x13f   :  { %2147 = vmatmul.mubr.msk.bf16.gmra.mxu1 %vm253_vm3, %v226_v28  ;;  %v2170_v28 = vsel %vm4423_vm13, 1.0, %v2518_v0 }
 0x140   :  { %880 = vmatprep.mubr.bf16.mxu1 %v4428_v11  ;;  %v2018_v31 = vsel %vm4455_vm5, %v2170_v28, 0.0 }
 0x147   :  { %2148 = vmatmul.mubr.msk.bf16.gmra.mxu1 %vm253_vm3, %v2636_v25  ;;  %v2914_v25 = vld [vmem:[%s4391_s6 + $0x50] sm:$0xff] }
 0x148   :  { %890 = vmatprep.mubr.bf16.mxu1 %v4428_v11  ;;  %4496 = vst [vmem:[#allocation6_spill] sm:$0xff] %v2914_v25  ;;  %vm4426_vm4 = vcmp.ne.s32.totalorder %v2914_v25, 4294967096  ;;  %1495 = vperm.xlu1 %2305, %v2914_v25  }
 0x149   :  { %v2168_v63 = vsel %vm4426_vm4, 1.0, %v2518_v0 }
 0x14a   :  { %v2015_v1 = vsel %vm4455_vm5, %v2168_v63, 0.0 }
 0x14f   :  { %2149 = vmatmul.mubr.msk.bf16.gmra.mxu1 %vm253_vm3, %v2677_v42  ;;  %v2924_v42 = vld [vmem:[%s4391_s6 + $0x58] sm:$0xff] }
 0x150   :  { %900 = vmatprep.mubr.bf16.mxu1 %v4428_v11  ;;  %4497 = vst [vmem:[#allocation7_spill] sm:$0xff] %v2924_v42  ;;  %vm4424_vm7 = vcmp.ne.s32.totalorder %v2924_v42, 4294967096  ;;  %1498 = vperm.xlu1 %2305, %v2924_v42  }
 0x151   :  { %v2169_v3 = vsel %vm4424_vm7, 1.0, %v2518_v0 }
 0x152   :  { %v2016_v4 = vsel %vm4455_vm5, %v2169_v3, 0.0 }
 0x153   :  { %v2017_v6 = vadd.f32 %v2016_v4, %v2015_v1  ;;  %v3075_v4 = vld [vmem:[%s4391_s6 + $0x78] sm:$0xff] }
 0x154   :  { %4508 = vst [vmem:[#allocation18_spill] sm:$0xff] %v3075_v4 }
 0x155   :  { %v2019_v36 = vadd.f32 %v2018_v31, %v2017_v6  ;;  %v3127_v31 = vld [vmem:[%s4391_s6 + $0x38] sm:$0xff] }
 0x156   :  { %4513 = vst [vmem:[#allocation23_spill] sm:$0xff] %v3127_v31  ;;  %1486 = vperm.xlu0 %2304, %v3127_v31  }
 0x157   :  { %2150 = vmatmul.mubr.msk.bf16.gmra.mxu1 %vm253_vm3, %v2709_v56  ;;  %v2947_v56 = vld [vmem:[%s4391_s6 + $0xa0] sm:$0xff]  ;;  %v2021_v35 = vadd.f32 %v2020_v44, %v2019_v36 }
 0x158   :  { %910 = vmatprep.mubr.bf16.mxu1 %v4428_v11  ;;  %4498 = vst [vmem:[#allocation8_spill] sm:$0xff] %v2947_v56  ;;  %vm4398_vm10 = vcmp.ne.s32.totalorder %v2947_v56, 4294967096  ;;  %1525 = vperm.xlu1 %2305, %v2947_v56  }
 0x159   :  { %v2178_v13 = vsel %vm4398_vm10, 1.0, %v2518_v0  ;;  %v2023_v53 = vadd.f32 %v2022_v43, %v2021_v35  ;;  %vm4400_vm10 = vcmp.ne.s32.totalorder %v3105_v16, 4294967096  ;;  %v3174_v43 = vld [vmem:[%s4391_s6 + $0x90] sm:$0xff] }
 0x15a   :  { %v2040_v22 = vsel %vm4455_vm5, %v2178_v13, 0.0  ;;  %v2049_v13 = vsel %vm4455_vm5, %v2183_v9, 0.0  ;;  %v2174_v21 = vsel %vm4400_vm10, 1.0, %v2518_v0  ;;  %vm4402_vm10 = vcmp.ne.s32.totalorder %v3127_v31, 4294967096  ;;  %4517 = vst [vmem:[#allocation27_spill] sm:$0xff] %v3174_v43 }
 0x15b   :  { %v2042_v33 = vadd.f32 %v2041_v30, %v2040_v22  ;;  %v2026_v23 = vsel %vm4455_vm5, %v2174_v21, 0.0  ;;  %v3122_v30 = vld [vmem:[%s4391_s6 + $0xd0] sm:$0xff] }
 0x15c   :  { %1528 = vperm.xlu1 %2305, %v2974_v19   ;;  %4512 = vst [vmem:[#allocation22_spill] sm:$0xff] %v3122_v30 }
 0x15f   :  { %2151 = vmatmul.mubr.msk.bf16.gmra.mxu1 %vm253_vm3, %v2741_v7  ;;  %v3001_v7 = vld [vmem:[%s4391_s6 + $0xb0] sm:$0xff] }
 0x160   :  { %920 = vmatprep.mubr.bf16.mxu1 %v4428_v11  ;;  %4502 = vst [vmem:[#allocation12_spill] sm:$0xff] %v3001_v7  ;;  %vm4394_vm15 = vcmp.ne.s32.totalorder %v3001_v7, 4294967096  ;;  %1531 = vperm.xlu1 %2305, %v3001_v7  }
 0x161   :  { %v2180_v12 = vsel %vm4394_vm15, 1.0, %v2518_v0  ;;  %vm4430_vm15 = vcmp.ne.s32.totalorder %v3058_v58, 4294967096 }
 0x162   :  { %v2043_v39 = vsel %vm4455_vm5, %v2180_v12, 0.0  ;;  %v2163_v61 = vsel %vm4430_vm15, 1.0, %v2518_v0 }
 0x163   :  { %v2044_v45 = vadd.f32 %v2043_v39, %v2042_v33  ;;  %v1999_v1 = vsel %vm4455_vm5, %v2163_v61, 0.0  ;;  %v2165_v33 = vsel %vm4402_vm10, 1.0, %v2518_v0  ;;  %v3152_v39 = vld [vmem:[%s4391_s6 + $0xd8] sm:$0xff] }
 0x164   :  { %1534 = vperm.xlu1 %2305, %v3027_v27   ;;  %v2000_v3 = vadd.f32 %v1999_v1, %v1998_v59  ;;  %v2003_v38 = vsel %vm4455_vm5, %v2165_v33, 0.0  ;;  %4515 = vst [vmem:[#allocation25_spill] sm:$0xff] %v3152_v39  ;;  %vm4404_vm10 = vcmp.ne.s32.totalorder %v3152_v39, 4294967096  ;;  %1546 = vperm.xlu0 %2304, %v3152_v39   ;;  %v4530_v27 = vmov 0  }
 0x165   :  { %v2046_v52 = vadd.f32 %v2045_v49, %v2044_v45  ;;  %v2185_v45 = vsel %vm4404_vm10, 1.0, %v2518_v0  ;;  %v3169_v49 = vld [vmem:[%s4391_s6 + $0x40] sm:$0xff]  ;;  %vm4406_vm10 = vcmp.ne.s32.totalorder %v3174_v43, 4294967096 }
 0x166   :  { %v2053_v47 = vsel %vm4455_vm5, %v2185_v45, 0.0  ;;  %4516 = vst [vmem:[#allocation26_spill] sm:$0xff] %v3169_v49 }
 0x167   :  { %2152 = vmatmul.mubr.msk.bf16.gmra.mxu1 %vm253_vm3, %v2773_v29  ;;  %v3053_v29 = vld [vmem:[%s4391_s6 + $0xc0] sm:$0xff] }
 0x168   :  { %930 = vmatprep.mubr.bf16.mxu1 %v4428_v11  ;;  %4506 = vst [vmem:[#allocation16_spill] sm:$0xff] %v3053_v29  ;;  %vm4395_vm1 = vcmp.ne.s32.totalorder %v3053_v29, 4294967096  ;;  %1537 = vperm.xlu1 %2305, %v3053_v29  }
 0x169   :  { %v2182_v60 = vsel %vm4395_vm1, 1.0, %v2518_v0  ;;  %vm4399_vm1 = vcmp.ne.s32.totalorder %v3075_v4, 4294967096  ;;  %1519 = vperm.xlu0 %2304, %v3174_v43   ;;  %v1461_v43 = vlaneseq }
 0x16a   :  { %v2047_v63 = vsel %vm4455_vm5, %v2182_v60, 0.0  ;;  %v2173_v6 = vsel %vm4399_vm1, 1.0, %v2518_v0  ;;  %vm4401_vm1 = vcmp.ne.s32.totalorder %v3122_v30, 4294967096 }
 0x16b   :  { %v2048_v2 = vadd.f32 %v2047_v63, %v2046_v52  ;;  %v2024_v10 = vsel %vm4455_vm5, %v2173_v6, 0.0  ;;  %v2184_v32 = vsel %vm4401_vm1, 1.0, %v2518_v0  ;;  %v3210_v6 = vld [vmem:[%s4391_s6 + $0xe8] sm:$0xff] }
 0x16c   :  { %1510 = vperm.xlu1 %2305, %v3075_v4   ;;  %v2025_v14 = vadd.f32 %v2024_v10, %v2023_v53  ;;  %v2051_v36 = vsel %vm4455_vm5, %v2184_v32, 0.0  ;;  %v2176_v53 = vsel %vm4406_vm10, 1.0, %v2518_v0  ;;  %4520 = vst [vmem:[#allocation30_spill] sm:$0xff] %v3210_v6  ;;  %vm4408_vm10 = vcmp.ne.s32.totalorder %v3210_v6, 4294967096 }
 0x16d   :  { %v2050_v15 = vadd.f32 %v2049_v13, %v2048_v2  ;;  %v2030_v60 = vsel %vm4455_vm5, %v2176_v53, 0.0 }
 0x16e   :  { %v2027_v28 = vadd.f32 %v2026_v23, %v2025_v14 }
 0x16f   :  { %2153 = vmatmul.mubr.msk.bf16.gmra.mxu1 %vm253_vm3, %v2789_v34  ;;  %v3100_v34 = vld [vmem:[%s4391_s6 + $0x30] sm:$0xff]  ;;  %v2052_v12 = vadd.f32 %v2051_v36, %v2050_v15  ;;  %v3224_v15 = vld [vmem:[%s4391_s6 + $0xe0] sm:$0xff] }
 0x170   :  { %940 = vmatprep.mubr.bf16.mxu1 %v4428_v11  ;;  %4510 = vst [vmem:[#allocation20_spill] sm:$0xff] %v3100_v34  ;;  %vm4427_vm12 = vcmp.ne.s32.totalorder %v3100_v34, 4294967096  ;;  %1483 = vperm.xlu1 %2305, %v3100_v34   ;;  %4521 = vst [vmem:[#allocation31_spill] sm:$0xff] %v3224_v15 }
 0x171   :  { %v2164_v17 = vsel %vm4427_vm12, 1.0, %v2518_v0  ;;  %v2054_v51 = vadd.f32 %v2053_v47, %v2052_v12 }
 0x172   :  { %v2001_v22 = vsel %vm4455_vm5, %v2164_v17, 0.0 }
 0x173   :  { %v2002_v26 = vadd.f32 %v2001_v22, %v2000_v3 }
 0x174   :  { %1543 = vperm.xlu1 %2305, %v3122_v30  }
 0x175   :  { %v2004_v18 = vadd.f32 %v2003_v38, %v2002_v26  ;;  %v3238_v38 = vld [vmem:[%s4391_s6 + $0x98] sm:$0xff] }
 0x176   :  { %4522 = vst [vmem:[#allocation32_spill] sm:$0xff] %v3238_v38 }
 0x177   :  { %2154 = vmatmul.mubr.msk.bf16.gmra.mxu1 %vm253_vm3, %v2809_v40  ;;  %v3147_v40 = vld [vmem:[%s4391_s6 + $0x88] sm:$0xff] }
 0x178   :  { %950 = vmatprep.mubr.bf16.mxu1 %v4428_v11  ;;  %4514 = vst [vmem:[#allocation24_spill] sm:$0xff] %v3147_v40  ;;  %vm4403_vm1 = vcmp.ne.s32.totalorder %v3147_v40, 4294967096  ;;  %1516 = vperm.xlu1 %2305, %v3147_v40  }
 0x179   :  { %v2175_v44 = vsel %vm4403_vm1, 1.0, %v2518_v0  ;;  %vm4421_vm1 = vcmp.ne.s32.totalorder %v3169_v49, 4294967096 }
 0x17a   :  { %v2028_v35 = vsel %vm4455_vm5, %v2175_v44, 0.0  ;;  %v2166_v52 = vsel %vm4421_vm1, 1.0, %v2518_v0 }
 0x17b   :  { %v2029_v50 = vadd.f32 %v2028_v35, %v2027_v28  ;;  %v2005_v59 = vsel %vm4455_vm5, %v2166_v52, 0.0 }
 0x17c   :  { %1489 = vperm.xlu1 %2305, %v3169_v49   ;;  %v2006_v61 = vadd.f32 %v2005_v59, %v2004_v18 }
 0x17d   :  { %v2031_v63 = vadd.f32 %v2030_v60, %v2029_v50 }
 0x17f   :  { %2155 = vmatmul.mubr.msk.bf16.gmra.mxu1 %vm253_vm3, %v2829_v48  ;;  %v3194_v48 = vld [vmem:[%s4391_s6 + $0x48] sm:$0xff] }
 0x180   :  { %960 = vmatprep.mubr.bf16.mxu1 %v4428_v11  ;;  %4518 = vst [vmem:[#allocation28_spill] sm:$0xff] %v3194_v48  ;;  %vm4407_vm2 = vcmp.ne.s32.totalorder %v3194_v48, 4294967096  ;;  %1492 = vperm.xlu0 %2304, %v3194_v48  }
 0x181   :  { %v2167_v1 = vsel %vm4407_vm2, 1.0, %v2518_v0  ;;  %vm4420_vm2 = vcmp.ne.s32.totalorder %v3224_v15, 4294967096  ;;  %1549 = vperm.xlu1 %2305, %v3224_v15  }
 0x182   :  { %v2007_v2 = vsel %vm4455_vm5, %v2167_v1, 0.0 }
 0x183   :  { %v3202_v3 = vadd.f32 %v2007_v2, %v2006_v61 }
 0x184   :  { %1552 = vperm.xlu0 %2304, %v3210_v6  }
 0x185   :  { %4519 = vst [vmem:[#allocation29_spill] sm:$0xff] %v3202_v3  ;;  %1522 = vperm.xlu1 %2305, %v3238_v38  }
 0x187   :  { %2156 = vmatmul.mubr.msk.bf16.gmra.mxu1 %vm253_vm3, %v2849_v54  ;;  %v2187_v54 = vsel %vm4408_vm10, 1.0, %v2518_v0  ;;  %vm4419_vm10 = vcmp.ne.s32.totalorder %v3238_v38, 4294967096 }
 0x188   :  { %970 = vmatprep.mubr.bf16.mxu1 %v4428_v11  ;;  %v2057_v26 = vsel %vm4455_vm5, %v2187_v54, 0.0  ;;  %v2177_v35 = vsel %vm4419_vm10, 1.0, %v2518_v0 }
 0x189   :  { %v2032_v47 = vsel %vm4455_vm5, %v2177_v35, 0.0 }
 0x18a   :  { %v3252_v52 = vadd.f32 %v2032_v47, %v2031_v63 }
 0x18c   :  { %4524 = vst [vmem:[#allocation34_spill] sm:$0xff] %v3252_v52 }
 0x18f   :  { %v333_v9 = vpop.f32.mrf.mxu0  ;;  %v3214_v10 = vpop.f32.mrf.mxu1  ;;  %2157 = vmatmul.mubr.msk.bf16.gmra.mxu1 %vm253_vm3, %v2862_v57  ;;  %v2186_v57 = vsel %vm4420_vm2, 1.0, %v2518_v0  ;;  %vm549_vm3 = vcmask 523264  }
 0x190   :  { %v452_v22 = vmax.f32 %v333_v9, 0.0  ;;  %v2055_v28 = vsel %vm4455_vm5, %v2186_v57, 0.0 }
 0x191   :  { %v2239_v13 = vpop.f32.mrf.mxu0  ;;  %v2259_v14 = vpop.f32.mrf.mxu1  ;;  %v2056_v36 = vadd.f32 %v2055_v28, %v2054_v51 }
 0x193   :  { %v336_v17 = vpop.f32.mrf.mxu0  ;;  %v3228_v21 = vpop.f32.mrf.mxu1  ;;  %v3244_v45 = vadd.f32 %v2057_v26, %v2056_v36 }
 0x194   :  { %v453_v23 = vmax.f32 %v336_v17, 0.0 }
 0x195   :  { %v2240_v32 = vpop.f32.mrf.mxu0  ;;  %v2260_v33 = vpop.f32.mrf.mxu1  ;;  %4523 = vst [vmem:[#allocation33_spill] sm:$0xff] %v3244_v45 }
 0x196   :  { %v486_v12 = vpack.c.bf16 %v453_v23, %v452_v22 }
 0x197   :  { %v341_v18 = vpop.f32.mrf.mxu0  ;;  %v3242_v44 = vpop.f32.mrf.mxu1 }
 0x198   :  { %2124 = vmatmul.mubr.msk.bf16.vlgmr.msra.gmra.mxu0 %vm549_vm3, %v486_v12  ;;  %v454_v60 = vmax.f32 %v341_v18, 0.0 }
 0x199   :  { %v2243_v50 = vpop.f32.mrf.mxu0  ;;  %v2263_v51 = vpop.f32.mrf.mxu1  ;;  %637 = vmatprep.mubr.bf16.mxu0 %v4428_v11 }
 0x19b   :  { %v344_v53 = vpop.f32.mrf.mxu0  ;;  %v3254_v59 = vpop.f32.mrf.mxu1 }
 0x19c   :  { %v455_v61 = vmax.f32 %v344_v53, 0.0 }
 0x19d   :  { %v2244_v1 = vpop.f32.mrf.mxu0  ;;  %v2264_v2 = vpop.f32.mrf.mxu1 }
 0x19e   :  { %v487_v9 = vpack.c.bf16 %v455_v61, %v454_v60 }
 0x19f   :  { %v349_v13 = vpop.f32.mrf.mxu0  ;;  %v3256_v0 = vpop.f32.mrf.mxu1 }
 0x1a0   :  { %2125 = vmatmul.mubr.msk.bf16.gmra.mxu0 %vm549_vm3, %v487_v9  ;;  %v456_v57 = vmax.f32 %v349_v13, 0.0 }
 0x1a1   :  { %v2247_v14 = vpop.f32.mrf.mxu0  ;;  %v2267_v54 = vpop.f32.mrf.mxu1  ;;  %647 = vmatprep.mubr.bf16.mxu0 %v4428_v11 }
 0x1a3   :  { %v352_v17 = vpop.f32.mrf.mxu0  ;;  %v3260_v63 = vpop.f32.mrf.mxu1 }
 0x1a4   :  { %v457_v22 = vmax.f32 %v352_v17, 0.0 }
 0x1a5   :  { %v2248_v23 = vpop.f32.mrf.mxu0  ;;  %v2268_v26 = vpop.f32.mrf.mxu1 }
 0x1a6   :  { %v488_v28 = vpack.c.bf16 %v457_v22, %v456_v57 }
 0x1a7   :  { %v357_v32 = vpop.f32.mrf.mxu0  ;;  %v3262_v33 = vpop.f32.mrf.mxu1 }
 0x1a8   :  { %2126 = vmatmul.mubr.msk.bf16.gmra.mxu0 %vm549_vm3, %v488_v28  ;;  %v458_v47 = vmax.f32 %v357_v32, 0.0  ;;  %v463_v32 = vmax.f32 %v3228_v21, 0.0  ;;  %v464_v21 = vmax.f32 %v3242_v44, 0.0 }
 0x1a9   :  { %v2251_v36 = vpop.f32.mrf.mxu0  ;;  %v2271_v12 = vpop.f32.mrf.mxu1  ;;  %657 = vmatprep.mubr.bf16.mxu0 %v4428_v11 }
 0x1aa   :  { %v462_v12 = vmax.f32 %v3214_v10, 0.0 }
 0x1ab   :  { %v360_v18 = vpop.f32.mrf.mxu0  ;;  %v400_v35 = vpop.f32.mrf.mxu1 }
 0x1ac   :  { %v459_v50 = vmax.f32 %v360_v18, 0.0 }
 0x1ad   :  { %v2252_v51 = vpop.f32.mrf.mxu0  ;;  %v2272_v53 = vpop.f32.mrf.mxu1 }
 0x1ae   :  { %v489_v60 = vpack.c.bf16 %v459_v50, %v458_v47  ;;  %v3276_v47 = vpop.permute.xlu1 %1468  ;;  %v491_v50 = vpack.c.bf16 %v463_v32, %v462_v12 }
 0x1af   :  { %v365_v61 = vpop.f32.mrf.mxu0  ;;  %v3266_v1 = vpop.f32.mrf.mxu1 }
 0x1b0   :  { %2127 = vmatmul.mubr.msk.bf16.gmra.mxu0 %vm549_vm3, %v489_v60  ;;  %v460_v54 = vmax.f32 %v365_v61, 0.0  ;;  %v465_v61 = vmax.f32 %v3254_v59, 0.0  ;;  %v466_v59 = vmax.f32 %v3256_v0, 0.0 }
 0x1b1   :  { %v2255_v2 = vpop.f32.mrf.mxu0  ;;  %v2275_v9 = vpop.f32.mrf.mxu1  ;;  %667 = vmatprep.mubr.bf16.mxu0 %v4428_v11 }
 0x1b2   :  { %v3282_v60 = vpop.permute.xlu1 %1471 }
 0x1b3   :  { %v368_v13 = vpop.f32.mrf.mxu0  ;;  %v408_v14 = vpop.f32.mrf.mxu1 }
 0x1b4   :  { %v461_v17 = vmax.f32 %v368_v13, 0.0  ;;  %v492_v13 = vpack.c.bf16 %v465_v61, %v464_v21 }
 0x1b5   :  { %v2256_v57 = vpop.f32.mrf.mxu0  ;;  %v2276_v22 = vpop.f32.mrf.mxu1 }
 0x1b6   :  { %v490_v23 = vpack.c.bf16 %v461_v17, %v460_v54  ;;  %v3286_v10 = vpop.permute.xlu1 %1474  ;;  %v467_v22 = vmax.f32 %v3260_v63, 0.0  ;;  %v468_v63 = vmax.f32 %v3262_v33, 0.0  ;;  %v470_v33 = vmax.f32 %v3266_v1, 0.0 }
 0x1b7   :  { %v3270_v26 = vpop.f32.mrf.mxu1 }
 0x1b8   :  { %2128 = vmatmul.mubr.msk.bf16.gmra.mxu0 %vm549_vm3, %v490_v23  ;;  %v493_v32 = vpack.c.bf16 %v467_v22, %v466_v59  ;;  %v472_v48 = vmax.f32 %v3270_v26, 0.0 }
 0x1b9   :  { %v2279_v28 = vpop.f32.mrf.mxu1  ;;  %677 = vmatprep.mubr.bf16.mxu0 %v4428_v11 }
 0x1ba   :  { %v3292_v57 = vpop.permute.xlu1 %1477 }
 0x1bb   :  { %v416_v36 = vpop.f32.mrf.mxu1 }
 0x1bd   :  { %v2280_v18 = vpop.f32.mrf.mxu1 }
 0x1bf   :  { %v3278_v51 = vpop.f32.mrf.mxu1 }
 0x1c0   :  { %2129 = vmatmul.mubr.msk.bf16.gmra.mxu0 %vm549_vm3, %v491_v50  ;;  %v474_v26 = vmax.f32 %v3278_v51, 0.0 }
 0x1c1   :  { %v2283_v53 = vpop.f32.mrf.mxu1  ;;  %687 = vmatprep.mubr.bf16.mxu0 %v4428_v11 }
 0x1c2   :  { %v469_v53 = vmax.f32 %v400_v35, 0.0  ;;  %v471_v35 = vmax.f32 %v408_v14, 0.0 }
 0x1c3   :  { %v424_v2 = vpop.f32.mrf.mxu1  ;;  %v3298_v28 = vpop.permute.xlu1 %1495 }
 0x1c5   :  { %v2284_v9 = vpop.f32.mrf.mxu1 }
 0x1c6   :  { %v494_v9 = vpack.c.bf16 %v469_v53, %v468_v63  ;;  %v495_v63 = vpack.c.bf16 %v471_v35, %v470_v33 }
 0x1c7   :  { %v3288_v54 = vpop.f32.mrf.mxu1 }
 0x1c8   :  { %2130 = vmatmul.mubr.msk.bf16.gmra.mxu0 %vm549_vm3, %v492_v13  ;;  %v3311_v13 = vpop.permute.xlu0 %1465 }
 0x1c9   :  { %v2287_v17 = vpop.f32.mrf.mxu1  ;;  %697 = vmatprep.mubr.bf16.mxu0 %v4428_v11 }
 0x1cb   :  { %v3295_v23 = vpop.f32.mrf.mxu1  ;;  %v3304_v50 = vpop.permute.xlu1 %1498 }
 0x1cc   :  { %v477_v30 = vmax.f32 %v3295_v23, 0.0 }
 0x1cd   :  { %v2288_v44 = vpop.f32.mrf.mxu1 }
 0x1ce   :  { %v3319_v44 = vpop.permute.xlu0 %1501 }
 0x1cf   :  { %v3300_v12 = vpop.f32.mrf.mxu1 }
 0x1d0   :  { %2131 = vmatmul.mubr.msk.bf16.gmra.mxu0 %vm549_vm3, %v493_v32 }
 0x1d1   :  { %v2291_v18 = vpop.f32.mrf.mxu1  ;;  %707 = vmatprep.mubr.bf16.mxu0 %v4428_v11 }
 0x1d3   :  { %v3306_v61 = vpop.f32.mrf.mxu1  ;;  %v3309_v0 = vpop.permute.xlu1 %1525 }
 0x1d5   :  { %v2292_v21 = vpop.f32.mrf.mxu1 }
 0x1d6   :  { %v3326_v21 = vpop.permute.xlu0 %1504 }
 0x1d7   :  { %v3313_v17 = vpop.f32.mrf.mxu1  ;;  %v3317_v59 = vpop.permute.xlu1 %1528 }
 0x1d8   :  { %2132 = vmatmul.mubr.msk.bf16.gmra.mxu0 %vm549_vm3, %v494_v9 }
 0x1d9   :  { %v2295_v22 = vpop.f32.mrf.mxu1  ;;  %717 = vmatprep.mubr.bf16.mxu0 %v4428_v11 }
 0x1da   :  { %v473_v22 = vmax.f32 %v416_v36, 0.0  ;;  %v3334_v6 = vpop.permute.xlu0 %1507  ;;  %v475_v36 = vmax.f32 %v424_v2, 0.0 }
 0x1db   :  { %v3321_v32 = vpop.f32.mrf.mxu1  ;;  %v3324_v53 = vpop.permute.xlu1 %1531 }
 0x1dc   :  { %v481_v7 = vmax.f32 %v3321_v32, 0.0 }
 0x1dd   :  { %v2296_v18 = vpop.f32.mrf.mxu1 }
 0x1de   :  { %v496_v18 = vpack.c.bf16 %v473_v22, %v472_v48  ;;  %v3341_v35 = vpop.permute.xlu0 %1480  ;;  %v497_v48 = vpack.c.bf16 %v475_v36, %v474_v26  ;;  %v476_v36 = vmax.f32 %v3288_v54, 0.0  ;;  %v479_v54 = vmax.f32 %v3306_v61, 0.0 }
 0x1df   :  { %v3330_v9 = vpop.permute.xlu1 %1534  ;;  %v3332_v14 = vpop.f32.mrf.mxu1 }
 0x1e0   :  { %2133 = vmatmul.mubr.msk.bf16.gmra.mxu0 %vm549_vm3, %v495_v63  ;;  %4525 = vst [vmem:[#allocation35_spill] sm:$0xff] %v3330_v9 }
 0x1e1   :  { %727 = vmatprep.mubr.bf16.mxu0 %v4428_v11  ;;  %v3339_v38 = vpop.f32.mrf.mxu1 }
 0x1e2   :  { %v3349_v15 = vpop.permute.xlu0 %1540 }
 0x1e3   :  { %v3337_v1 = vpop.permute.xlu1 %1537  ;;  %v3347_v63 = vpop.f32.mrf.mxu1  ;;  %4527 = vst [vmem:[#allocation37_spill] sm:$0xff] %v3349_v15 }
 0x1e4   :  { %4526 = vst [vmem:[#allocation36_spill] sm:$0xff] %v3337_v1 }
 0x1e5   :  { %v3354_v22 = vpop.f32.mrf.mxu1 }
 0x1e6   :  { %v3356_v49 = vpop.permute.xlu0 %1513 }
 0x1e7   :  { %v3345_v33 = vpop.permute.xlu1 %1510  ;;  %v3365_v31 = vpop.f32.mrf.mxu1 }
 0x1e8   :  { %2134 = vmatmul.mubr.msk.bf16.gmra.mxu0 %vm549_vm3, %v496_v18  ;;  %v3359_v18 = vand.u32 127, %v1461_v43 }
 0x1e9   :  { %737 = vmatprep.mubr.bf16.mxu0 %v4428_v11  ;;  %v3375_v43 = vpop.f32.mrf.mxu1 }
 0x1ea   :  { %v3367_v51 = vpop.permute.xlu0 %1486  ;;  %v3371_v26 = vadd.s32 128, %v3359_v18 }
 0x1eb   :  { %v3352_v39 = vpop.permute.xlu1 %1483 }
 0x1ec   :  { %vm1555_vm5 = vcmp.eq.s32.totalorder %v3371_v26, %v3311_v13  ;;  %vm1557_vm6 = vcmp.eq.s32.totalorder %v3371_v26, %v3276_v47  ;;  %vm1559_vm11 = vcmp.eq.s32.totalorder %v3371_v26, %v3282_v60 }
 0x1ee   :  { %v3381_v23 = vpop.permute.xlu0 %1546 }
 0x1ef   :  { %v3362_v2 = vpop.permute.xlu1 %1543  ;;  %4529 = vst [vmem:[#allocation39_spill] sm:$0xff] %v3381_v23  ;;  %vm1608_vm1 = vcmp.eq.s32.totalorder %v3359_v18, %v3381_v23  ;;  %vm1609_vm0 = vcmp.eq.s32.totalorder %v3371_v26, %v3381_v23 }
 0x1f0   :  { %2135 = vmatmul.mubr.msk.bf16.gmra.mxu0 %vm549_vm3, %v497_v48  ;;  %4528 = vst [vmem:[#allocation38_spill] sm:$0xff] %v3362_v2  ;;  %v498_v48 = vpack.c.bf16 %v477_v30, %v476_v36  ;;  %v3392_v36 = vpop.f32.mrf.mxu1 }
 0x1f1   :  { %747 = vmatprep.mubr.bf16.mxu0 %v4428_v11 }
 0x1f2   :  { %v3398_v5 = vpop.permute.xlu0 %1519  ;;  %v3405_v61 = vpop.f32.mrf.mxu1 }
 0x1f3   :  { %v3373_v40 = vpop.permute.xlu1 %1516  ;;  %vm1590_vm4 = vcmp.eq.s32.totalorder %v3359_v18, %v3398_v5  ;;  %vm1591_vm12 = vcmp.eq.s32.totalorder %v3371_v26, %v3398_v5 }
 0x1f4   :  { %vm1588_vm10 = vcmp.eq.s32.totalorder %v3359_v18, %v3373_v40  ;;  %vm1589_vm2 = vcmp.eq.s32.totalorder %v3371_v26, %v3373_v40  ;;  %v3416_v45 = vpop.f32.mrf.mxu1 }
 0x1f7   :  { %v3389_v30 = vpop.permute.xlu1 %1489 }
 0x1f8   :  { %2136 = vmatmul.mubr.msk.bf16.gmra.mxu0 %vm549_vm3, %v498_v48  ;;  %vm1570_vm13 = vcmp.eq.s32.totalorder %v3359_v18, %v3389_v30  ;;  %vm1571_vm7 = vcmp.eq.s32.totalorder %v3371_v26, %v3389_v30  ;;  %v478_v48 = vmax.f32 %v3300_v12, 0.0  ;;  %v480_v12 = vmax.f32 %v3313_v17, 0.0 }
 0x1f9   :  { %757 = vmatprep.mubr.bf16.mxu0 %v4428_v11 }
 0x1fa   :  { %v499_v11 = vpack.c.bf16 %v479_v54, %v478_v48  ;;  %v500_v54 = vpack.c.bf16 %v481_v7, %v480_v12  ;;  %v3419_v48 = vpop.f32.mrf.mxu1 }
 0x1fb   :  { %v3407_v29 = vpop.permute.xlu0 %1492 }
 0x1fc   :  { %vm1572_vm15 = vcmp.eq.s32.totalorder %v3359_v18, %v3407_v29  ;;  %vm1573_vm14 = vcmp.eq.s32.totalorder %v3371_v26, %v3407_v29  ;;  %v3422_v19 = vpop.f32.mrf.mxu1  ;;  %v3424_v52 = vpop.permute.xlu1 %1549 }
 0x1fd   :  { %4531 = vst [vmem:[#allocation40_spill] sm:$0xff] %v3424_v52  ;;  %vm1610_vm9 = vcmp.eq.s32.totalorder %v3359_v18, %v3424_v52  ;;  %vm1611_vm8 = vcmp.eq.s32.totalorder %v3371_v26, %v3424_v52 }
 0x1fe   :  { %v3426_v56 = vpop.f32.mrf.mxu1 }
 0x200   :  { %2137 = vmatmul.mubr.msk.bf16.gmra.mxu0 %vm549_vm3, %v499_v11  ;;  %v3432_v11 = vpop.f32.mrf.mxu1 }
 0x201   :  { %767 = vmatprep.mubr.bf16.mxu0 %v4530_v27 }
 0x202   :  { %v3434_v27 = vpop.f32.mrf.mxu1 }
 0x204   :  { %v3436_v7 = vpop.f32.mrf.mxu1 }
 0x206   :  { %v3438_v17 = vpop.f32.mrf.mxu1 }
 0x208   :  { %2138 = vmatmul.mubr.msk.bf16.gmra.mxu0 %vm549_vm3, %v500_v54  ;;  %v3440_v32 = vpop.f32.mrf.mxu1  ;;  %vm1554_vm3 = vcmp.eq.s32.totalorder %v3359_v18, %v3311_v13 }
 0x20a   :  { %v3442_v12 = vpop.f32.mrf.mxu1 }
 0x20c   :  { %v3444_v54 = vpop.f32.mrf.mxu1 }
 0x20e   :  { %v3446_v3 = vpop.f32.mrf.mxu1 }
 0x210   :  { %v3448_v16 = vpop.f32.mrf.mxu1 }
 0x212   :  { %v3450_v4 = vpop.f32.mrf.mxu1 }
 0x214   :  { %v3452_v46 = vpop.f32.mrf.mxu1 }
 0x216   :  { %v3454_v37 = vpop.f32.mrf.mxu1 }
 0x218   :  { %v3456_v20 = vpop.f32.mrf.mxu1 }
 0x21a   :  { %v3458_v42 = vpop.f32.mrf.mxu1 }
 0x21c   :  { %v3460_v25 = vpop.f32.mrf.mxu1 }
 0x21e   :  { %v3462_v34 = vpop.f32.mrf.mxu1 }
 0x220   :  { %v3464_v58 = vpop.f32.mrf.mxu1 }
 0x222   :  { %v3466_v62 = vpop.f32.mrf.mxu1 }
 0x224   :  { %v3471_v24 = vpop.f32.mrf.mxu1 }
 0x258   :  { %v629_v55 = vpop.f32.mrf.mxu0 }
 0x259   :  { %v3469_v41 = vadd.f32 %v3332_v14, %v629_v55  ;;  %v3484_v14 = vpop.f32.mrf.mxu1 }
 0x25a   :  { %v631_v8 = vpop.f32.mrf.mxu0 }
 0x25b   :  { %4532 = vst [vmem:[#allocation41_spill] sm:$0xff] %v3469_v41  ;;  %v3478_v52 = vadd.f32 %v3339_v38, %v631_v8  ;;  %v1614_v15 = vsel %vm1554_vm3, %v3469_v41, 0.0  ;;  %vm1556_vm3 = vcmp.eq.s32.totalorder %v3359_v18, %v3276_v47 }
 0x25c   :  { %v633_v23 = vpop.f32.mrf.mxu0 }
 0x25d   :  { %4533 = vst [vmem:[#allocation42_spill] sm:$0xff] %v3478_v52  ;;  %v1011_v2 = vmax.f32 %v3469_v41, %v3478_v52  ;;  %v1615_v55 = vsel %vm1555_vm5, %v3478_v52, 0.0  ;;  %v3489_v13 = vadd.f32 %v3347_v63, %v633_v23  ;;  %v3502_v41 = vpop.f32.mrf.mxu1  ;;  %vm1558_vm5 = vcmp.eq.s32.totalorder %v3359_v18, %v3282_v60 }
 0x25e   :  { %v635_v1 = vpop.f32.mrf.mxu0  ;;  %v1674_v9 = vadd.f32 %v1615_v55, %v1614_v15 }
 0x25f   :  { %v3492_v8 = vadd.f32 %v3354_v22, %v635_v1  ;;  %1012 = vmax.xlane.f32.xlu0 %v1011_v2 }
 0x260   :  { %1675 = vadd.xlane.f32.xlu1 %v1674_v9  ;;  %v639_v38 = vpop.f32.mrf.mxu0 }
 0x261   :  { %4534 = vst [vmem:[#allocation43_spill] sm:$0xff] %v3492_v8  ;;  %v3497_v52 = vadd.f32 %v3365_v31, %v639_v38  ;;  %v1014_v15 = vmax.f32 %v3489_v13, %v3492_v8  ;;  %v1617_v55 = vsel %vm1557_vm6, %v3492_v8, 0.0  ;;  %v1616_v31 = vsel %vm1556_vm3, %v3489_v13, 0.0  ;;  %v3519_v8 = vpop.f32.mrf.mxu1 }
 0x262   :  { %v641_v63 = vpop.f32.mrf.mxu0  ;;  %v1677_v1 = vadd.f32 %v1617_v55, %v1616_v31  ;;  %vm1560_vm6 = vcmp.eq.s32.totalorder %v3359_v18, %v3286_v10  ;;  %vm1561_vm3 = vcmp.eq.s32.totalorder %v3371_v26, %v3286_v10 }
 0x263   :  { %v3509_v9 = vadd.f32 %v3375_v43, %v641_v63  ;;  %1015 = vmax.xlane.f32.xlu0 %v1014_v15  ;;  %v1618_v23 = vsel %vm1558_vm5, %v3497_v52, 0.0  ;;  %vm1563_vm5 = vcmp.eq.s32.totalorder %v3371_v26, %v3292_v57 }
 0x264   :  { %v643_v47 = vpop.f32.mrf.mxu0 }
 0x265   :  { %v3513_v22 = vadd.f32 %v3392_v36, %v643_v47  ;;  %v1017_v2 = vmax.f32 %v3497_v52, %v3509_v9  ;;  %v1619_v38 = vsel %vm1559_vm11, %v3509_v9, 0.0  ;;  %vm1562_vm11 = vcmp.eq.s32.totalorder %v3359_v18, %v3292_v57 }
 0x266   :  { %v645_v60 = vpop.f32.mrf.mxu0  ;;  %v3521_v43 = vadd.f32 %v1619_v38, %v1618_v23  ;;  %v3537_v23 = vpop.f32.mrf.mxu1 }
 0x267   :  { %v3528_v36 = vadd.f32 %v3405_v61, %v645_v60  ;;  %1678 = vadd.xlane.f32.xlu0 %v1677_v1  ;;  %1018 = vmax.xlane.f32.xlu1 %v1017_v2  ;;  %v1620_v31 = vsel %vm1560_vm6, %v3513_v22, 0.0  ;;  %vm1564_vm6 = vcmp.eq.s32.totalorder %v3359_v18, %v3341_v35 }
 0x268   :  { %v649_v15 = vpop.f32.mrf.mxu0 }
 0x269   :  { %4535 = vst [vmem:[#allocation44_spill] sm:$0xff] %v3528_v36  ;;  %v3531_v55 = vadd.f32 %v3416_v45, %v649_v15  ;;  %v1020_v63 = vmax.f32 %v3513_v22, %v3528_v36  ;;  %v1621_v47 = vsel %vm1561_vm3, %v3528_v36, 0.0  ;;  %vm1565_vm3 = vcmp.eq.s32.totalorder %v3371_v26, %v3341_v35 }
 0x26a   :  { %v651_v38 = vpop.f32.mrf.mxu0  ;;  %v3539_v10 = vadd.f32 %v1621_v47, %v1620_v31  ;;  %v3555_v31 = vpop.f32.mrf.mxu1 }
 0x26b   :  { %v3546_v45 = vadd.f32 %v3419_v48, %v651_v38  ;;  %1021 = vmax.xlane.f32.xlu1 %v1020_v63  ;;  %v1622_v60 = vsel %vm1562_vm11, %v3531_v55, 0.0  ;;  %vm1566_vm11 = vcmp.eq.s32.totalorder %v3359_v18, %v3352_v39 }
 0x26c   :  { %v653_v61 = vpop.f32.mrf.mxu0 }
 0x26d   :  { %4536 = vst [vmem:[#allocation45_spill] sm:$0xff] %v3546_v45  ;;  %v3549_v1 = vadd.f32 %v3422_v19, %v653_v61  ;;  %v1023_v2 = vmax.f32 %v3531_v55, %v3546_v45  ;;  %v1623_v15 = vsel %vm1563_vm5, %v3546_v45, 0.0  ;;  %vm1567_vm5 = vcmp.eq.s32.totalorder %v3371_v26, %v3352_v39 }
 0x26e   :  { %v655_v47 = vpop.f32.mrf.mxu0  ;;  %v3557_v36 = vadd.f32 %v1623_v15, %v1622_v60  ;;  %v3573_v60 = vpop.f32.mrf.mxu1 }
 0x26f   :  { %v3564_v19 = vadd.f32 %v3426_v56, %v655_v47  ;;  %1024 = vmax.xlane.f32.xlu0 %v1023_v2  ;;  %v1624_v38 = vsel %vm1564_vm6, %v3549_v1, 0.0  ;;  %vm1568_vm6 = vcmp.eq.s32.totalorder %v3359_v18, %v3367_v51 }
 0x270   :  { %v659_v57 = vpop.f32.mrf.mxu0 }
 0x271   :  { %v3567_v48 = vadd.f32 %v3432_v11, %v659_v57  ;;  %v1026_v63 = vmax.f32 %v3549_v1, %v3564_v19  ;;  %v1625_v61 = vsel %vm1565_vm3, %v3564_v19, 0.0  ;;  %vm1569_vm3 = vcmp.eq.s32.totalorder %v3371_v26, %v3367_v51 }
 0x272   :  { %v661_v15 = vpop.f32.mrf.mxu0  ;;  %v3575_v45 = vadd.f32 %v1625_v61, %v1624_v38  ;;  %v3591_v38 = vpop.f32.mrf.mxu1 }
 0x273   :  { %4537 = vst [vmem:[#allocation46_spill] sm:$0xff] %v3567_v48  ;;  %v3582_v56 = vadd.f32 %v3434_v27, %v661_v15  ;;  %1027 = vmax.xlane.f32.xlu1 %v1026_v63  ;;  %v1626_v47 = vsel %vm1566_vm11, %v3567_v48, 0.0  ;;  %vm1578_vm11 = vcmp.eq.s32.totalorder %v3359_v18, %v3319_v44 }
 0x274   :  { %v663_v35 = vpop.f32.mrf.mxu0 }
 0x275   :  { %4538 = vst [vmem:[#allocation47_spill] sm:$0xff] %v3582_v56  ;;  %v3585_v11 = vadd.f32 %v3436_v7, %v663_v35  ;;  %v1029_v2 = vmax.f32 %v3567_v48, %v3582_v56  ;;  %v1627_v57 = vsel %vm1567_vm5, %v3582_v56, 0.0  ;;  %v3609_v48 = vpop.f32.mrf.mxu1  ;;  %vm1579_vm5 = vcmp.eq.s32.totalorder %v3371_v26, %v3319_v44 }
 0x276   :  { %v665_v39 = vpop.f32.mrf.mxu0  ;;  %v3597_v27 = vadd.f32 %v1627_v57, %v1626_v47 }
 0x277   :  { %v3600_v7 = vadd.f32 %v3438_v17, %v665_v39  ;;  %1030 = vmax.xlane.f32.xlu0 %v1029_v2  ;;  %v1628_v35 = vsel %vm1568_vm6, %v3585_v11, 0.0  ;;  %vm1580_vm6 = vcmp.eq.s32.totalorder %v3359_v18, %v3326_v21 }
 0x278   :  { %v669_v63 = vpop.f32.mrf.mxu0 }
 0x279   :  { %v3603_v61 = vadd.f32 %v3440_v32, %v669_v63  ;;  %v1032_v15 = vmax.f32 %v3585_v11, %v3600_v7  ;;  %v1629_v56 = vsel %vm1569_vm3, %v3600_v7, 0.0  ;;  %vm1581_vm3 = vcmp.eq.s32.totalorder %v3371_v26, %v3326_v21 }
 0x27a   :  { %v671_v51 = vpop.f32.mrf.mxu0  ;;  %v3611_v47 = vadd.f32 %v1629_v56, %v1628_v35 }
 0x27b   :  { %v3614_v17 = vadd.f32 %v3442_v12, %v671_v51  ;;  %1033 = vmax.xlane.f32.xlu1 %v1032_v15  ;;  %v1630_v32 = vsel %vm1570_vm13, %v3603_v61, 0.0  ;;  %v3629_v12 = vpop.f32.mrf.mxu1  ;;  %vm1574_vm13 = vcmp.eq.s32.totalorder %v3359_v18, %v3298_v28 }
 0x27c   :  { %4539 = vst [vmem:[#allocation48_spill] sm:$0xff] %v3611_v47  ;;  %v673_v2 = vpop.f32.mrf.mxu0 }
 0x27d   :  { %v3621_v57 = vadd.f32 %v3444_v54, %v673_v2  ;;  %v1035_v39 = vmax.f32 %v3603_v61, %v3614_v17  ;;  %v1631_v56 = vsel %vm1571_vm7, %v3614_v17, 0.0  ;;  %vm1575_vm7 = vcmp.eq.s32.totalorder %v3371_v26, %v3298_v28 }
 0x27e   :  { %v675_v63 = vpop.f32.mrf.mxu0  ;;  %v3631_v15 = vadd.f32 %v1631_v56, %v1630_v32  ;;  %v3646_v32 = vpop.f32.mrf.mxu1 }
 0x27f   :  { %v3634_v35 = vadd.f32 %v3446_v3, %v675_v63  ;;  %1036 = vmax.xlane.f32.xlu0 %v1035_v39  ;;  %v1632_v54 = vsel %vm1572_vm15, %v3621_v57, 0.0  ;;  %vm1576_vm15 = vcmp.eq.s32.totalorder %v3359_v18, %v3304_v50 }
 0x280   :  { %4540 = vst [vmem:[#allocation49_spill] sm:$0xff] %v3631_v15  ;;  %v679_v51 = vpop.f32.mrf.mxu0  ;;  %v3662_v47 = vpop.f32.mrf.mxu1 }
 0x281   :  { %v1038_v2 = vmax.f32 %v3621_v57, %v3634_v35  ;;  %v1633_v30 = vsel %vm1573_vm14, %v3634_v35, 0.0  ;;  %v3651_v39 = vadd.f32 %v3448_v16, %v679_v51  ;;  %vm1577_vm14 = vcmp.eq.s32.totalorder %v3371_v26, %v3304_v50 }
 0x282   :  { %v681_v56 = vpop.f32.mrf.mxu0  ;;  %v3648_v3 = vadd.f32 %v1633_v30, %v1632_v54 }
 0x283   :  { %v3654_v63 = vadd.f32 %v3450_v4, %v681_v56  ;;  %1039 = vmax.xlane.f32.xlu1 %v1038_v2  ;;  %v1634_v30 = vsel %vm1574_vm13, %v3651_v39, 0.0  ;;  %vm1583_vm13 = vcmp.eq.s32.totalorder %v3371_v26, %v3334_v6 }
 0x284   :  { %4541 = vst [vmem:[#allocation50_spill] sm:$0xff] %v3648_v3  ;;  %v683_v15 = vpop.f32.mrf.mxu0 }
 0x285   :  { %v1041_v29 = vmax.f32 %v3651_v39, %v3654_v63  ;;  %v1635_v16 = vsel %vm1575_vm7, %v3654_v63, 0.0  ;;  %v3668_v4 = vadd.f32 %v3452_v46, %v683_v15  ;;  %v3682_v15 = vpop.f32.mrf.mxu1  ;;  %vm1582_vm7 = vcmp.eq.s32.totalorder %v3359_v18, %v3334_v6 }
 0x286   :  { %v685_v54 = vpop.f32.mrf.mxu0  ;;  %v1704_v56 = vadd.f32 %v1635_v16, %v1634_v30 }
 0x287   :  { %v3671_v51 = vadd.f32 %v3454_v37, %v685_v54  ;;  %1042 = vmax.xlane.f32.xlu0 %v1041_v29  ;;  %v3699_v44 = vpop.f32.mrf.mxu1 }
 0x288   :  { %v689_v2 = vpop.f32.mrf.mxu0 }
 0x289   :  { %4542 = vst [vmem:[#allocation51_spill] sm:$0xff] %v3671_v51  ;;  %v3677_v28 = vadd.f32 %v3456_v20, %v689_v2  ;;  %v1044_v3 = vmax.f32 %v3668_v4, %v3671_v51  ;;  %v1637_v46 = vsel %vm1577_vm14, %v3671_v51, 0.0  ;;  %v1636_v20 = vsel %vm1576_vm15, %v3668_v4, 0.0 }
 0x28a   :  { %v691_v37 = vpop.f32.mrf.mxu0  ;;  %v1707_v54 = vadd.f32 %v1637_v46, %v1636_v20  ;;  %v3717_v20 = vpop.f32.mrf.mxu1  ;;  %vm1584_vm14 = vcmp.eq.s32.totalorder %v3359_v18, %v3345_v33  ;;  %vm1585_vm15 = vcmp.eq.s32.totalorder %v3371_v26, %v3345_v33 }
 0x28b   :  { %v3689_v50 = vadd.f32 %v3458_v42, %v691_v37  ;;  %1705 = vadd.xlane.f32.xlu0 %v1704_v56  ;;  %1045 = vmax.xlane.f32.xlu1 %v1044_v3  ;;  %v1638_v30 = vsel %vm1578_vm11, %v3677_v28, 0.0  ;;  %vm1586_vm11 = vcmp.eq.s32.totalorder %v3359_v18, %v3356_v49 }
 0x28c   :  { %v693_v29 = vpop.f32.mrf.mxu0 }
 0x28d   :  { %v3693_v16 = vadd.f32 %v3460_v25, %v693_v29  ;;  %v1047_v2 = vmax.f32 %v3677_v28, %v3689_v50  ;;  %v1639_v51 = vsel %vm1579_vm5, %v3689_v50, 0.0  ;;  %vm1587_vm5 = vcmp.eq.s32.totalorder %v3371_v26, %v3356_v49 }
 0x28e   :  { %v695_v42 = vpop.f32.mrf.mxu0  ;;  %v3701_v37 = vadd.f32 %v1639_v51, %v1638_v30 }
 0x28f   :  { %v3704_v3 = vadd.f32 %v3462_v34, %v695_v42  ;;  %1708 = vadd.xlane.f32.xlu1 %v1707_v54  ;;  %1048 = vmax.xlane.f32.xlu0 %v1047_v2  ;;  %v1640_v51 = vsel %vm1580_vm6, %v3693_v16, 0.0  ;;  %vm1596_vm6 = vcmp.eq.s32.totalorder %v3359_v18, %v3317_v59 }
 0x290   :  { %v699_v56 = vpop.f32.mrf.mxu0 }
 0x291   :  { %v3711_v25 = vadd.f32 %v3464_v58, %v699_v56  ;;  %v1050_v46 = vmax.f32 %v3693_v16, %v3704_v3  ;;  %v1641_v34 = vsel %vm1581_vm3, %v3704_v3, 0.0  ;;  %vm1597_vm3 = vcmp.eq.s32.totalorder %v3371_v26, %v3317_v59 }
 0x292   :  { %v701_v29 = vpop.f32.mrf.mxu0  ;;  %v3719_v54 = vadd.f32 %v1641_v34, %v1640_v51 }
 0x293   :  { %v3722_v2 = vadd.f32 %v3466_v62, %v701_v29  ;;  %1051 = vmax.xlane.f32.xlu1 %v1050_v46  ;;  %v1642_v42 = vsel %vm1582_vm7, %v3711_v25, 0.0  ;;  %v3735_v62 = vpop.f32.mrf.mxu1  ;;  %vm1598_vm7 = vcmp.eq.s32.totalorder %v3359_v18, %v3324_v53 }
 0x294   :  { %v703_v21 = vpop.f32.mrf.mxu0 }
 0x295   :  { %v3729_v58 = vadd.f32 %v3471_v24, %v703_v21  ;;  %v1053_v30 = vmax.f32 %v3711_v25, %v3722_v2  ;;  %v1643_v56 = vsel %vm1583_vm13, %v3722_v2, 0.0  ;;  %vm1599_vm13 = vcmp.eq.s32.totalorder %v3371_v26, %v3324_v53  ;;  %v4557_v53 = vld [vmem:[#allocation35_spill] sm:$0xff] }
 0x296   :  { %v705_v46 = vpop.f32.mrf.mxu0  ;;  %v3737_v51 = vadd.f32 %v1643_v56, %v1642_v42 }
 0x297   :  { %v3740_v34 = vadd.f32 %v3484_v14, %v705_v46  ;;  %1054 = vmax.xlane.f32.xlu0 %v1053_v30  ;;  %v1644_v21 = vsel %vm1584_vm14, %v3729_v58, 0.0  ;;  %v3753_v14 = vpop.f32.mrf.mxu1  ;;  %vm1600_vm14 = vcmp.eq.s32.totalorder %v3359_v18, %v4557_v53 }
 0x298   :  { %v709_v6 = vpop.f32.mrf.mxu0 }
 0x299   :  { %4543 = vst [vmem:[#allocation52_spill] sm:$0xff] %v3740_v34  ;;  %v3747_v24 = vadd.f32 %v3502_v41, %v709_v6  ;;  %v1056_v29 = vmax.f32 %v3729_v58, %v3740_v34  ;;  %v1645_v42 = vsel %vm1585_vm15, %v3740_v34, 0.0  ;;  %vm1601_vm15 = vcmp.eq.s32.totalorder %v3371_v26, %v4557_v53  ;;  %v4560_v53 = vld [vmem:[#allocation36_spill] sm:$0xff] }
 0x29a   :  { %v711_v30 = vpop.f32.mrf.mxu0  ;;  %v3755_v56 = vadd.f32 %v1645_v42, %v1644_v21 }
 0x29b   :  { %4544 = vst [vmem:[#allocation53_spill] sm:$0xff] %v3747_v24  ;;  %v3758_v46 = vadd.f32 %v3519_v8, %v711_v30  ;;  %1057 = vmax.xlane.f32.xlu1 %v1056_v29  ;;  %v1646_v21 = vsel %vm1586_vm11, %v3747_v24, 0.0  ;;  %v3771_v8 = vpop.f32.mrf.mxu1  ;;  %vm1602_vm11 = vcmp.eq.s32.totalorder %v3359_v18, %v4560_v53 }
 0x29c   :  { %v713_v33 = vpop.f32.mrf.mxu0 }
 0x29d   :  { %4545 = vst [vmem:[#allocation54_spill] sm:$0xff] %v3758_v46  ;;  %v3765_v41 = vadd.f32 %v3537_v23, %v713_v33  ;;  %v1059_v6 = vmax.f32 %v3747_v24, %v3758_v46  ;;  %v1647_v42 = vsel %vm1587_vm5, %v3758_v46, 0.0  ;;  %vm1603_vm5 = vcmp.eq.s32.totalorder %v3371_v26, %v4560_v53 }
 0x29e   :  { %v715_v29 = vpop.f32.mrf.mxu0  ;;  %v3773_v30 = vadd.f32 %v1647_v42, %v1646_v21 }
 0x29f   :  { %4546 = vst [vmem:[#allocation55_spill] sm:$0xff] %v3765_v41  ;;  %v3776_v34 = vadd.f32 %v3555_v31, %v715_v29  ;;  %1060 = vmax.xlane.f32.xlu0 %v1059_v6  ;;  %v1648_v46 = vsel %vm1588_vm10, %v3765_v41, 0.0  ;;  %v3791_v31 = vpop.f32.mrf.mxu1 }
 0x2a0   :  { %v719_v49 = vpop.f32.mrf.mxu0 }
 0x2a1   :  { %v3779_v23 = vadd.f32 %v3573_v60, %v719_v49  ;;  %v1062_v33 = vmax.f32 %v3765_v41, %v3776_v34  ;;  %v1649_v21 = vsel %vm1589_vm2, %v3776_v34, 0.0  ;;  %v1523_v49 = vpop.permute.xlu1 %1522 }
 0x2a2   :  { %v721_v6 = vpop.f32.mrf.mxu0  ;;  %v3793_v42 = vadd.f32 %v1649_v21, %v1648_v46  ;;  %v3811_v46 = vpop.f32.mrf.mxu1  ;;  %vm1592_vm10 = vcmp.eq.s32.totalorder %v3359_v18, %v1523_v49  ;;  %vm1593_vm2 = vcmp.eq.s32.totalorder %v3371_v26, %v1523_v49 }
 0x2a3   :  { %v3796_v60 = vadd.f32 %v3591_v38, %v721_v6  ;;  %1063 = vmax.xlane.f32.xlu1 %v1062_v33  ;;  %v1650_v40 = vsel %vm1590_vm4, %v3779_v23, 0.0  ;;  %vm1594_vm4 = vcmp.eq.s32.totalorder %v3359_v18, %v3309_v0 }
 0x2a4   :  { %4547 = vst [vmem:[#allocation56_spill] sm:$0xff] %v3793_v42  ;;  %v723_v29 = vpop.f32.mrf.mxu0 }
 0x2a5   :  { %v3799_v24 = vadd.f32 %v3609_v48, %v723_v29  ;;  %v1065_v41 = vmax.f32 %v3779_v23, %v3796_v60  ;;  %v1651_v38 = vsel %vm1591_vm12, %v3796_v60, 0.0  ;;  %vm1595_vm12 = vcmp.eq.s32.totalorder %v3371_v26, %v3309_v0 }
 0x2a6   :  { %v725_v33 = vpop.f32.mrf.mxu0  ;;  %v3813_v21 = vadd.f32 %v1651_v38, %v1650_v40  ;;  %v956_v38 = vpop.f32.mrf.mxu1 }
 0x2a7   :  { %v3816_v48 = vadd.f32 %v3629_v12, %v725_v33  ;;  %1066 = vmax.xlane.f32.xlu0 %v1065_v41  ;;  %v1652_v42 = vsel %vm1592_vm10, %v3799_v24, 0.0 }
 0x2a8   :  { %4548 = vst [vmem:[#allocation57_spill] sm:$0xff] %v3813_v21  ;;  %v729_v6 = vpop.f32.mrf.mxu0 }
 0x2a9   :  { %v3821_v29 = vadd.f32 %v3646_v32, %v729_v6  ;;  %v1068_v5 = vmax.f32 %v3799_v24, %v3816_v48  ;;  %v1653_v40 = vsel %vm1593_vm2, %v3816_v48, 0.0 }
 0x2aa   :  { %v731_v21 = vpop.f32.mrf.mxu0  ;;  %v3827_v12 = vadd.f32 %v1653_v40, %v1652_v42 }
 0x2ab   :  { %v3830_v41 = vadd.f32 %v3662_v47, %v731_v21  ;;  %1069 = vmax.xlane.f32.xlu1 %v1068_v5  ;;  %v1654_v42 = vsel %vm1594_vm4, %v3821_v29, 0.0  ;;  %v958_v47 = vpop.f32.mrf.mxu1 }
 0x2ac   :  { %4549 = vst [vmem:[#allocation58_spill] sm:$0xff] %v3827_v12  ;;  %v733_v49 = vpop.f32.mrf.mxu0 }
 0x2ad   :  { %4550 = vst [vmem:[#allocation59_spill] sm:$0xff] %v3830_v41  ;;  %v3837_v32 = vadd.f32 %v3682_v15, %v733_v49  ;;  %v1071_v33 = vmax.f32 %v3821_v29, %v3830_v41  ;;  %v1655_v6 = vsel %vm1595_vm12, %v3830_v41, 0.0 }
 0x2ae   :  { %v735_v21 = vpop.f32.mrf.mxu0  ;;  %v3843_v5 = vadd.f32 %v1655_v6, %v1654_v42 }
 0x2af   :  { %4551 = vst [vmem:[#allocation60_spill] sm:$0xff] %v3837_v32  ;;  %v3846_v40 = vadd.f32 %v3699_v44, %v735_v21  ;;  %1072 = vmax.xlane.f32.xlu0 %v1071_v33  ;;  %v1656_v49 = vsel %vm1596_vm6, %v3837_v32, 0.0  ;;  %v962_v44 = vpop.f32.mrf.mxu1  ;;  %vm4609_vm6 = vcmask 7168  }
 0x2b0   :  { %v739_v12 = vpop.f32.mrf.mxu0 }
 0x2b1   :  { %4552 = vst [vmem:[#allocation61_spill] sm:$0xff] %v3846_v40  ;;  %v3853_v0 = vadd.f32 %v3717_v20, %v739_v12  ;;  %v1074_v15 = vmax.f32 %v3837_v32, %v3846_v40  ;;  %v1657_v42 = vsel %vm1597_vm3, %v3846_v40, 0.0  ;;  %v4563_v32 = vld [vmem:[#allocation37_spill] sm:$0xff]  ;;  %vm4610_vm3 = vmmov %vm4609_vm6 }
 0x2b2   :  { %v741_v6 = vpop.f32.mrf.mxu0  ;;  %v3859_v33 = vadd.f32 %v1657_v42, %v1656_v49  ;;  %vm1604_vm10 = vcmp.eq.s32.totalorder %v3359_v18, %v4563_v32  ;;  %vm1605_vm2 = vcmp.eq.s32.totalorder %v3371_v26, %v4563_v32 }
 0x2b3   :  { %4553 = vst [vmem:[#allocation62_spill] sm:$0xff] %v3853_v0  ;;  %v3862_v21 = vadd.f32 %v3735_v62, %v741_v6  ;;  %1075 = vmax.xlane.f32.xlu1 %v1074_v15  ;;  %v1658_v12 = vsel %vm1598_vm7, %v3853_v0, 0.0  ;;  %v964_v62 = vpop.f32.mrf.mxu1 }
 0x2b4   :  { %v743_v41 = vpop.f32.mrf.mxu0 }
 0x2b5   :  { %4554 = vst [vmem:[#allocation63_spill] sm:$0xff] %v3862_v21  ;;  %v3869_v59 = vadd.f32 %v3753_v14, %v743_v41  ;;  %v1077_v20 = vmax.f32 %v3853_v0, %v3862_v21  ;;  %v1659_v49 = vsel %vm1599_vm13, %v3862_v21, 0.0  ;;  %vm4613_vm13 = vmmov %vm4610_vm3 }
 0x2b6   :  { %v745_v42 = vpop.f32.mrf.mxu0  ;;  %v3875_v15 = vadd.f32 %v1659_v49, %v1658_v12 }
 0x2b7   :  { %4555 = vst [vmem:[#allocation64_spill] sm:$0xff] %v3869_v59  ;;  %v3878_v6 = vadd.f32 %v3771_v8, %v745_v42  ;;  %1078 = vmax.xlane.f32.xlu0 %v1077_v20  ;;  %v1660_v12 = vsel %vm1600_vm14, %v3869_v59, 0.0  ;;  %v966_v8 = vpop.f32.mrf.mxu1 }
 0x2b8   :  { %v749_v40 = vpop.f32.mrf.mxu0 }
 0x2b9   :  { %4556 = vst [vmem:[#allocation65_spill] sm:$0xff] %v3878_v6  ;;  %v3885_v14 = vadd.f32 %v3791_v31, %v749_v40  ;;  %v1080_v41 = vmax.f32 %v3869_v59, %v3878_v6  ;;  %v1661_v49 = vsel %vm1601_vm15, %v3878_v6, 0.0  ;;  %vm4616_vm15 = vmmov %vm4610_vm3 }
 0x2ba   :  { %v751_v42 = vpop.f32.mrf.mxu0  ;;  %v3891_v20 = vadd.f32 %v1661_v49, %v1660_v12  ;;  %v968_v49 = vpop.f32.mrf.mxu1 }
 0x2bb   :  { %4558 = vst [vmem:[#allocation35_spill] sm:$0xff] %v3885_v14  ;;  %v3894_v21 = vadd.f32 %v3811_v46, %v751_v42  ;;  %1081 = vmax.xlane.f32.xlu1 %v1080_v41  ;;  %v1662_v6 = vsel %vm1602_vm11, %v3885_v14, 0.0 }
 0x2bc   :  { %v753_v0 = vpop.f32.mrf.mxu0 }
 0x2bd   :  { %4559 = vst [vmem:[#allocation66_spill] sm:$0xff] %v3894_v21  ;;  %v3900_v31 = vadd.f32 %v956_v38, %v753_v0  ;;  %v1083_v40 = vmax.f32 %v3885_v14, %v3894_v21  ;;  %v1663_v12 = vsel %vm1603_vm5, %v3894_v21, 0.0  ;;  %v4565_v21 = vld [vmem:[#allocation38_spill] sm:$0xff]  ;;  %vm4619_vm5 = vmmov %vm4610_vm3 }
 0x2be   :  { %v755_v46 = vpop.f32.mrf.mxu0  ;;  %v3906_v42 = vadd.f32 %v1663_v12, %v1662_v6  ;;  %v972_v12 = vpop.f32.mrf.mxu1  ;;  %vm1606_vm4 = vcmp.eq.s32.totalorder %v3359_v18, %v4565_v21  ;;  %vm1607_vm12 = vcmp.eq.s32.totalorder %v3371_v26, %v4565_v21 }
 0x2bf   :  { %4561 = vst [vmem:[#allocation36_spill] sm:$0xff] %v3900_v31  ;;  %v3908_v41 = vadd.f32 %v958_v47, %v755_v46  ;;  %1084 = vmax.xlane.f32.xlu0 %v1083_v40  ;;  %v1664_v53 = vsel %vm1604_vm10, %v3900_v31, 0.0 }
 0x2c0   :  { %v759_v59 = vpop.f32.mrf.mxu0 }
 0x2c1   :  { %4562 = vst [vmem:[#allocation67_spill] sm:$0xff] %v3908_v41  ;;  %v3914_v38 = vadd.f32 %v962_v44, %v759_v59  ;;  %v1086_v0 = vmax.f32 %v3900_v31, %v3908_v41  ;;  %v1665_v6 = vsel %vm1605_vm2, %v3908_v41, 0.0  ;;  %vm4622_vm2 = vmmov %vm4610_vm3 }
 0x2c2   :  { %v761_v47 = vpop.f32.mrf.mxu0  ;;  %v1749_v46 = vadd.f32 %v1665_v6, %v1664_v53  ;;  %v974_v53 = vpop.f32.mrf.mxu1 }
 0x2c3   :  { %v3920_v40 = vadd.f32 %v964_v62, %v761_v47  ;;  %1087 = vmax.xlane.f32.xlu1 %v1086_v0  ;;  %v1666_v41 = vsel %vm1606_vm4, %v3914_v38, 0.0 }
 0x2c4   :  { %v763_v32 = vpop.f32.mrf.mxu0 }
 0x2c5   :  { %4564 = vst [vmem:[#allocation37_spill] sm:$0xff] %v3920_v40  ;;  %v3926_v44 = vadd.f32 %v966_v8, %v763_v32  ;;  %v1089_v59 = vmax.f32 %v3914_v38, %v3920_v40  ;;  %v1667_v31 = vsel %vm1607_vm12, %v3920_v40, 0.0  ;;  %vm4625_vm12 = vmmov %vm4622_vm2 }
 0x2c6   :  { %v765_v62 = vpop.f32.mrf.mxu0  ;;  %v3932_v6 = vadd.f32 %v1667_v31, %v1666_v41  ;;  %v976_v41 = vpop.f32.mrf.mxu1 }
 0x2c7   :  { %4566 = vst [vmem:[#allocation38_spill] sm:$0xff] %v3926_v44  ;;  %v3934_v0 = vadd.f32 %v968_v49, %v765_v62  ;;  %1090 = vmax.xlane.f32.xlu0 %v1089_v59  ;;  %v1668_v32 = vsel %vm1608_vm1, %v3926_v44, 0.0 }
 0x2c8   :  { %4567 = vst [vmem:[#allocation68_spill] sm:$0xff] %v3932_v6  ;;  %v769_v47 = vpop.f32.mrf.mxu0 }
 0x2c9   :  { %v3936_v14 = vadd.f32 %v972_v12, %v769_v47  ;;  %v1092_v21 = vmax.f32 %v3926_v44, %v3934_v0  ;;  %v1669_v31 = vsel %vm1609_vm0, %v3934_v0, 0.0  ;;  %v1553_v47 = vpop.permute.xlu0 %1552 }
 0x2ca   :  { %v771_v49 = vpop.f32.mrf.mxu0  ;;  %v3948_v62 = vadd.f32 %v1669_v31, %v1668_v32  ;;  %vm1612_vm0 = vcmp.eq.s32.totalorder %v3359_v18, %v1553_v47  ;;  %vm1613_vm1 = vcmp.eq.s32.totalorder %v3371_v26, %v1553_v47  ;;  %v4571_v26 = vld [vmem:[#allocation41_spill] sm:$0xff] }
 0x2cb   :  { %v3950_v59 = vadd.f32 %v974_v53, %v771_v49  ;;  %1093 = vmax.xlane.f32.xlu1 %v1092_v21  ;;  %v1670_v8 = vsel %vm1610_vm9, %v3936_v14, 0.0  ;;  %v978_v53 = vpop.f32.mrf.mxu1 }
 0x2cc   :  { %4569 = vst [vmem:[#allocation39_spill] sm:$0xff] %v3948_v62  ;;  %v773_v12 = vpop.f32.mrf.mxu0 }
 0x2cd   :  { %v3952_v6 = vadd.f32 %v976_v41, %v773_v12  ;;  %v1095_v40 = vmax.f32 %v3936_v14, %v3950_v59  ;;  %v1671_v32 = vsel %vm1611_vm8, %v3950_v59, 0.0 }
 0x2ce   :  { %v775_v31 = vpop.f32.mrf.mxu0  ;;  %v3964_v21 = vadd.f32 %v1671_v32, %v1670_v8 }
 0x2cf   :  { %v3966_v49 = vadd.f32 %v978_v53, %v775_v31  ;;  %1738 = vadd.xlane.f32.xlu1 %v3859_v33  ;;  %1096 = vmax.xlane.f32.xlu0 %v1095_v40  ;;  %v1672_v12 = vsel %vm1612_vm0, %v3952_v6, 0.0  ;;  %v4573_v33 = vld [vmem:[#allocation43_spill] sm:$0xff] }
 0x2d1   :  { %v1098_v41 = vmax.f32 %v3952_v6, %v3966_v49  ;;  %v1673_v44 = vsel %vm1613_vm1, %v3966_v49, 0.0 }
 0x2d2   :  { %v3975_v62 = vadd.f32 %v1673_v44, %v1672_v12  ;;  %v4575_v12 = vld [vmem:[#allocation45_spill] sm:$0xff] }
 0x2d3   :  { %1735 = vadd.xlane.f32.xlu0 %v3843_v5  ;;  %1099 = vmax.xlane.f32.xlu1 %v1098_v41 }
 0x2d7   :  { %1681 = vadd.xlane.f32.xlu0 %v3521_v43  ;;  %1711 = vadd.xlane.f32.xlu1 %v3701_v37  ;;  %v4572_v37 = vld [vmem:[#allocation42_spill] sm:$0xff] }
 0x2db   :  { %1741 = vadd.xlane.f32.xlu0 %v3875_v15  ;;  %1684 = vadd.xlane.f32.xlu1 %v3539_v10 }
 0x2df   :  { %1714 = vadd.xlane.f32.xlu0 %v3719_v54  ;;  %1744 = vadd.xlane.f32.xlu1 %v3891_v20 }
 0x2e3   :  { %1687 = vadd.xlane.f32.xlu0 %v3557_v36  ;;  %1717 = vadd.xlane.f32.xlu1 %v3737_v51 }
 0x2e7   :  { %1747 = vadd.xlane.f32.xlu0 %v3906_v42  ;;  %1690 = vadd.xlane.f32.xlu1 %v3575_v45 }
 0x2e8   :  { %v3988_v18 = vpop.xlane.xlu0 %1012 }
 0x2e9   :  { %v1101_v43 = vsub.f32 %v4571_v26, %v3988_v18  ;;  %v1102_v10 = vsub.f32 %v4572_v37, %v3988_v18  ;;  %v3995_v36 = vpop.xlane.xlu1 %1675 }
 0x2eb   :  { %v1161_v5 = vmul.f32 1.442695, %v1101_v43  ;;  %v1163_v54 = vmul.f32 1.442695, %v1102_v10  ;;  %1720 = vadd.xlane.f32.xlu0 %v3755_v56  ;;  %1750 = vadd.xlane.f32.xlu1 %v1749_v46 }
 0x2ec   :  { %v3997_v51 = vpop.xlane.xlu0 %1015 }
 0x2ed   :  { %2332 = vpow2.f32 %v1161_v5  ;;  %v1103_v45 = vsub.f32 %v3489_v13, %v3997_v51  ;;  %v1104_v15 = vsub.f32 %v4573_v33, %v3997_v51 }
 0x2ee   :  { %2334 = vpow2.f32 %v1163_v54 }
 0x2ef   :  { %v1165_v20 = vmul.f32 1.442695, %v1103_v45  ;;  %v1167_v42 = vmul.f32 1.442695, %v1104_v15  ;;  %1693 = vadd.xlane.f32.xlu0 %v3597_v27  ;;  %1723 = vadd.xlane.f32.xlu1 %v3773_v30  ;;  %v4574_v30 = vld [vmem:[#allocation44_spill] sm:$0xff] }
 0x2f0   :  { %v4005_v56 = vpop.xlane.xlu1 %1018  ;;  %v4011_v8 = vpop.xlane.xlu0 %1678 }
 0x2f1   :  { %2336 = vpow2.f32 %v1165_v20  ;;  %v1105_v46 = vsub.f32 %v3497_v52, %v4005_v56  ;;  %v1106_v40 = vsub.f32 %v3509_v9, %v4005_v56 }
 0x2f2   :  { %2338 = vpow2.f32 %v1167_v42 }
 0x2f3   :  { %v1169_v13 = vmul.f32 1.442695, %v1105_v46  ;;  %v1171_v47 = vmul.f32 1.442695, %v1106_v40  ;;  %v4576_v40 = vld [vmem:[#allocation46_spill] sm:$0xff] }
 0x2f4   :  { %v4013_v32 = vpop.xlane.xlu1 %1021 }
 0x2f5   :  { %2340 = vpow2.f32 %v1169_v13  ;;  %v1107_v27 = vsub.f32 %v3513_v22, %v4013_v32  ;;  %v1108_v53 = vsub.f32 %v4574_v30, %v4013_v32 }
 0x2f6   :  { %2342 = vpow2.f32 %v1171_v47  ;;  %v4577_v47 = vld [vmem:[#allocation47_spill] sm:$0xff] }
 0x2f7   :  { %v1173_v31 = vmul.f32 1.442695, %v1107_v27  ;;  %v1175_v52 = vmul.f32 1.442695, %v1108_v53 }
 0x2f8   :  { %v4019_v41 = vpop.xlane.xlu0 %1024 }
 0x2f9   :  { %2344 = vpow2.f32 %v1173_v31  ;;  %v1109_v9 = vsub.f32 %v3531_v55, %v4019_v41  ;;  %v1110_v44 = vsub.f32 %v4575_v12, %v4019_v41 }
 0x2fa   :  { %v2333_v26 = vpop.eup %2332  ;;  %2346 = vpow2.f32 %v1175_v52 }
 0x2fb   :  { %v2335_v43 = vpop.eup %2334  ;;  %v1177_v37 = vmul.f32 1.442695, %v1109_v9  ;;  %v1179_v22 = vmul.f32 1.442695, %v1110_v44 }
 0x2fc   :  { %v4025_v10 = vpop.xlane.xlu1 %1027  ;;  %v1281_v5 = vadd.f32 %v2335_v43, %v2333_v26 }
 0x2fd   :  { %2348 = vpow2.f32 %v1177_v37  ;;  %v1111_v54 = vsub.f32 %v3549_v1, %v4025_v10  ;;  %v1112_v45 = vsub.f32 %v3564_v19, %v4025_v10 }
 0x2fe   :  { %v2337_v33 = vpop.eup %2336  ;;  %2350 = vpow2.f32 %v1179_v22  ;;  %1282 = vadd.xlane.f32.xlu0 %v1281_v5 }
 0x2ff   :  { %v2339_v55 = vpop.eup %2338  ;;  %v1181_v15 = vmul.f32 1.442695, %v1111_v54  ;;  %v1183_v20 = vmul.f32 1.442695, %v1112_v45 }
 0x300   :  { %v4031_v42 = vpop.xlane.xlu0 %1030  ;;  %v1284_v46 = vadd.f32 %v2339_v55, %v2337_v33 }
 0x301   :  { %2352 = vpow2.f32 %v1181_v15  ;;  %v1113_v13 = vsub.f32 %v4576_v40, %v4031_v42  ;;  %v1114_v27 = vsub.f32 %v4577_v47, %v4031_v42 }
 0x302   :  { %v2341_v1 = vpop.eup %2340  ;;  %2354 = vpow2.f32 %v1183_v20  ;;  %1285 = vadd.xlane.f32.xlu1 %v1284_v46 }
 0x303   :  { %v2343_v19 = vpop.eup %2342  ;;  %v1185_v30 = vmul.f32 1.442695, %v1113_v13  ;;  %v1187_v53 = vmul.f32 1.442695, %v1114_v27 }
 0x304   :  { %v4037_v31 = vpop.xlane.xlu1 %1033  ;;  %v1287_v52 = vadd.f32 %v2343_v19, %v2341_v1 }
 0x305   :  { %2356 = vpow2.f32 %v1185_v30  ;;  %v1115_v9 = vsub.f32 %v3585_v11, %v4037_v31  ;;  %v1116_v12 = vsub.f32 %v3600_v7, %v4037_v31 }
 0x306   :  { %v2345_v44 = vpop.eup %2344  ;;  %2358 = vpow2.f32 %v1187_v53  ;;  %1288 = vadd.xlane.f32.xlu0 %v1287_v52 }
 0x307   :  { %v2347_v26 = vpop.eup %2346  ;;  %v1189_v43 = vmul.f32 1.442695, %v1115_v9  ;;  %v1191_v37 = vmul.f32 1.442695, %v1116_v12 }
 0x308   :  { %v4043_v22 = vpop.xlane.xlu0 %1036  ;;  %v1290_v5 = vadd.f32 %v2347_v26, %v2345_v44 }
 0x309   :  { %2360 = vpow2.f32 %v1189_v43  ;;  %v1117_v54 = vsub.f32 %v3603_v61, %v4043_v22  ;;  %v1118_v45 = vsub.f32 %v3614_v17, %v4043_v22 }
 0x30a   :  { %v2349_v11 = vpop.eup %2348  ;;  %2362 = vpow2.f32 %v1191_v37  ;;  %1291 = vadd.xlane.f32.xlu1 %v1290_v5 }
 0x30b   :  { %v2351_v7 = vpop.eup %2350  ;;  %v1193_v33 = vmul.f32 1.442695, %v1117_v54  ;;  %v1195_v55 = vmul.f32 1.442695, %v1118_v45 }
 0x30c   :  { %v4049_v15 = vpop.xlane.xlu1 %1039  ;;  %v1293_v20 = vadd.f32 %v2351_v7, %v2349_v11 }
 0x30d   :  { %2364 = vpow2.f32 %v1193_v33  ;;  %v1119_v46 = vsub.f32 %v3621_v57, %v4049_v15  ;;  %v1120_v40 = vsub.f32 %v3634_v35, %v4049_v15 }
 0x30e   :  { %v2353_v61 = vpop.eup %2352  ;;  %2366 = vpow2.f32 %v1195_v55  ;;  %1294 = vadd.xlane.f32.xlu0 %v1293_v20 }
 0x30f   :  { %v2355_v17 = vpop.eup %2354  ;;  %v1197_v13 = vmul.f32 1.442695, %v1119_v46  ;;  %v1199_v47 = vmul.f32 1.442695, %v1120_v40 }
 0x310   :  { %v4055_v27 = vpop.xlane.xlu0 %1042  ;;  %v1296_v1 = vadd.f32 %v2355_v17, %v2353_v61 }
 0x311   :  { %2368 = vpow2.f32 %v1197_v13  ;;  %v1121_v19 = vsub.f32 %v3651_v39, %v4055_v27  ;;  %v1122_v30 = vsub.f32 %v3654_v63, %v4055_v27  ;;  %v4578_v39 = vld [vmem:[#allocation51_spill] sm:$0xff] }
 0x312   :  { %v2357_v57 = vpop.eup %2356  ;;  %2370 = vpow2.f32 %v1199_v47  ;;  %1297 = vadd.xlane.f32.xlu1 %v1296_v1 }
 0x313   :  { %v2359_v35 = vpop.eup %2358  ;;  %v1201_v53 = vmul.f32 1.442695, %v1121_v19  ;;  %v1203_v52 = vmul.f32 1.442695, %v1122_v30 }
 0x314   :  { %v4061_v9 = vpop.xlane.xlu0 %1705  ;;  %v4063_v12 = vpop.xlane.xlu1 %1045  ;;  %v1299_v44 = vadd.f32 %v2359_v35, %v2357_v57 }
 0x315   :  { %2372 = vpow2.f32 %v1201_v53  ;;  %v1123_v26 = vsub.f32 %v3668_v4, %v4063_v12  ;;  %v1124_v43 = vsub.f32 %v4578_v39, %v4063_v12 }
 0x316   :  { %v2361_v37 = vpop.eup %2360  ;;  %2374 = vpow2.f32 %v1203_v52  ;;  %1300 = vadd.xlane.f32.xlu0 %v1299_v44 }
 0x317   :  { %v2363_v63 = vpop.eup %2362  ;;  %v1205_v5 = vmul.f32 1.442695, %v1123_v26  ;;  %v1207_v54 = vmul.f32 1.442695, %v1124_v43 }
 0x318   :  { %v4069_v45 = vpop.xlane.xlu1 %1708  ;;  %v4071_v11 = vpop.xlane.xlu0 %1048  ;;  %v1302_v7 = vadd.f32 %v2363_v63, %v2361_v37  ;;  %v4579_v37 = vld [vmem:[#allocation52_spill] sm:$0xff] }
 0x319   :  { %2376 = vpow2.f32 %v1205_v5  ;;  %v1125_v33 = vsub.f32 %v3677_v28, %v4071_v11  ;;  %v1126_v4 = vsub.f32 %v3689_v50, %v4071_v11 }
 0x31a   :  { %v2365_v55 = vpop.eup %2364  ;;  %2378 = vpow2.f32 %v1207_v54  ;;  %1303 = vadd.xlane.f32.xlu1 %v1302_v7 }
 0x31b   :  { %v2367_v20 = vpop.eup %2366  ;;  %v1209_v46 = vmul.f32 1.442695, %v1125_v33  ;;  %v1211_v40 = vmul.f32 1.442695, %v1126_v4  ;;  %v4580_v4 = vld [vmem:[#allocation53_spill] sm:$0xff] }
 0x31c   :  { %v4077_v61 = vpop.xlane.xlu1 %1051  ;;  %v1305_v17 = vadd.f32 %v2367_v20, %v2365_v55  ;;  %v4581_v20 = vld [vmem:[#allocation54_spill] sm:$0xff] }
 0x31d   :  { %2380 = vpow2.f32 %v1209_v46  ;;  %v1127_v13 = vsub.f32 %v3693_v16, %v4077_v61  ;;  %v1128_v47 = vsub.f32 %v3704_v3, %v4077_v61 }
 0x31e   :  { %v2369_v28 = vpop.eup %2368  ;;  %2382 = vpow2.f32 %v1211_v40  ;;  %1306 = vadd.xlane.f32.xlu0 %v1305_v17 }
 0x31f   :  { %v2371_v50 = vpop.eup %2370  ;;  %v1213_v1 = vmul.f32 1.442695, %v1127_v13  ;;  %v1215_v19 = vmul.f32 1.442695, %v1128_v47 }
 0x320   :  { %v4083_v30 = vpop.xlane.xlu0 %1054  ;;  %v1308_v57 = vadd.f32 %v2371_v50, %v2369_v28  ;;  %v4582_v50 = vld [vmem:[#allocation55_spill] sm:$0xff] }
 0x321   :  { %2384 = vpow2.f32 %v1213_v1  ;;  %v1129_v35 = vsub.f32 %v3711_v25, %v4083_v30  ;;  %v1130_v53 = vsub.f32 %v3722_v2, %v4083_v30 }
 0x322   :  { %v2373_v16 = vpop.eup %2372  ;;  %2386 = vpow2.f32 %v1215_v19  ;;  %1309 = vadd.xlane.f32.xlu1 %v1308_v57 }
 0x323   :  { %v2375_v3 = vpop.eup %2374  ;;  %v1217_v52 = vmul.f32 1.442695, %v1129_v35  ;;  %v1219_v44 = vmul.f32 1.442695, %v1130_v53 }
 0x324   :  { %v4089_v26 = vpop.xlane.xlu1 %1057  ;;  %v1311_v39 = vadd.f32 %v2375_v3, %v2373_v16 }
 0x325   :  { %2388 = vpow2.f32 %v1217_v52  ;;  %v1131_v43 = vsub.f32 %v3729_v58, %v4089_v26  ;;  %v1132_v63 = vsub.f32 %v4579_v37, %v4089_v26 }
 0x326   :  { %v2377_v25 = vpop.eup %2376  ;;  %2390 = vpow2.f32 %v1219_v44  ;;  %1312 = vadd.xlane.f32.xlu0 %v1311_v39 }
 0x327   :  { %v2379_v2 = vpop.eup %2378  ;;  %v1221_v5 = vmul.f32 1.442695, %v1131_v43  ;;  %v1223_v54 = vmul.f32 1.442695, %v1132_v63 }
 0x328   :  { %v4095_v7 = vpop.xlane.xlu0 %1060  ;;  %v1314_v33 = vadd.f32 %v2379_v2, %v2377_v25 }
 0x329   :  { %2392 = vpow2.f32 %v1221_v5  ;;  %v1133_v55 = vsub.f32 %v4580_v4, %v4095_v7  ;;  %v1134_v46 = vsub.f32 %v4581_v20, %v4095_v7 }
 0x32a   :  { %v2381_v58 = vpop.eup %2380  ;;  %2394 = vpow2.f32 %v1223_v54  ;;  %1315 = vadd.xlane.f32.xlu1 %v1314_v33 }
 0x32b   :  { %v2383_v40 = vpop.eup %2382  ;;  %v1225_v17 = vmul.f32 1.442695, %v1133_v55  ;;  %v1227_v13 = vmul.f32 1.442695, %v1134_v46 }
 0x32c   :  { %v4101_v47 = vpop.xlane.xlu1 %1063  ;;  %v1317_v28 = vadd.f32 %v2383_v40, %v2381_v58  ;;  %v4583_v58 = vld [vmem:[#allocation59_spill] sm:$0xff] }
 0x32d   :  { %2396 = vpow2.f32 %v1225_v17  ;;  %v1135_v1 = vsub.f32 %v4582_v50, %v4101_v47  ;;  %v1136_v19 = vsub.f32 %v3776_v34, %v4101_v47 }
 0x32e   :  { %v2385_v57 = vpop.eup %2384  ;;  %2398 = vpow2.f32 %v1227_v13  ;;  %1318 = vadd.xlane.f32.xlu0 %v1317_v28 }
 0x32f   :  { %v2387_v35 = vpop.eup %2386  ;;  %v1229_v53 = vmul.f32 1.442695, %v1135_v1  ;;  %v1231_v16 = vmul.f32 1.442695, %v1136_v19  ;;  %v4584_v1 = vld [vmem:[#allocation60_spill] sm:$0xff] }
 0x330   :  { %v4107_v3 = vpop.xlane.xlu0 %1066  ;;  %v1320_v52 = vadd.f32 %v2387_v35, %v2385_v57  ;;  %v4585_v57 = vld [vmem:[#allocation61_spill] sm:$0xff] }
 0x331   :  { %2400 = vpow2.f32 %v1229_v53  ;;  %v1137_v44 = vsub.f32 %v3779_v23, %v4107_v3  ;;  %v1138_v39 = vsub.f32 %v3796_v60, %v4107_v3 }
 0x332   :  { %v2389_v43 = vpop.eup %2388  ;;  %2402 = vpow2.f32 %v1231_v16  ;;  %1321 = vadd.xlane.f32.xlu1 %v1320_v52 }
 0x333   :  { %v2391_v34 = vpop.eup %2390  ;;  %v1233_v37 = vmul.f32 1.442695, %v1137_v44  ;;  %v1235_v63 = vmul.f32 1.442695, %v1138_v39 }
 0x334   :  { %v4113_v25 = vpop.xlane.xlu1 %1069  ;;  %v1323_v2 = vadd.f32 %v2391_v34, %v2389_v43  ;;  %v4586_v43 = vld [vmem:[#allocation62_spill] sm:$0xff] }
 0x335   :  { %2404 = vpow2.f32 %v1233_v37  ;;  %v1139_v5 = vsub.f32 %v3799_v24, %v4113_v25  ;;  %v1140_v54 = vsub.f32 %v3816_v48, %v4113_v25  ;;  %v4587_v37 = vld [vmem:[#allocation63_spill] sm:$0xff] }
 0x336   :  { %v2393_v23 = vpop.eup %2392  ;;  %2406 = vpow2.f32 %v1235_v63  ;;  %1324 = vadd.xlane.f32.xlu0 %v1323_v2 }
 0x337   :  { %v2395_v60 = vpop.eup %2394  ;;  %v1237_v33 = vmul.f32 1.442695, %v1139_v5  ;;  %v1239_v4 = vmul.f32 1.442695, %v1140_v54 }
 0x338   :  { %v4119_v55 = vpop.xlane.xlu0 %1072  ;;  %v1326_v20 = vadd.f32 %v2395_v60, %v2393_v23 }
 0x339   :  { %2408 = vpow2.f32 %v1237_v33  ;;  %v1141_v46 = vsub.f32 %v3821_v29, %v4119_v55  ;;  %v1142_v40 = vsub.f32 %v4583_v58, %v4119_v55 }
 0x33a   :  { %v2397_v24 = vpop.eup %2396  ;;  %2410 = vpow2.f32 %v1239_v4  ;;  %1327 = vadd.xlane.f32.xlu1 %v1326_v20  ;;  %v4588_v4 = vld [vmem:[#allocation64_spill] sm:$0xff] }
 0x33b   :  { %v2399_v48 = vpop.eup %2398  ;;  %v1241_v17 = vmul.f32 1.442695, %v1141_v46  ;;  %v1243_v13 = vmul.f32 1.442695, %v1142_v40  ;;  %v4589_v46 = vld [vmem:[#allocation65_spill] sm:$0xff] }
 0x33c   :  { %v4125_v28 = vpop.xlane.xlu1 %1075  ;;  %v1329_v50 = vadd.f32 %v2399_v48, %v2397_v24 }
 0x33d   :  { %2412 = vpow2.f32 %v1241_v17  ;;  %v1143_v19 = vsub.f32 %v4584_v1, %v4125_v28  ;;  %v1144_v35 = vsub.f32 %v4585_v57, %v4125_v28  ;;  %v4590_v1 = vld [vmem:[#allocation35_spill] sm:$0xff]  ;;  %v4591_v57 = vld [vmem:[#allocation66_spill] sm:$0xff] }
 0x33e   :  { %v2401_v29 = vpop.eup %2400  ;;  %2414 = vpow2.f32 %v1243_v13  ;;  %1330 = vadd.xlane.f32.xlu0 %v1329_v50 }
 0x33f   :  { %v2403_v53 = vpop.eup %2402  ;;  %v1245_v16 = vmul.f32 1.442695, %v1143_v19  ;;  %v1247_v52 = vmul.f32 1.442695, %v1144_v35 }
 0x340   :  { %v4131_v44 = vpop.xlane.xlu0 %1078  ;;  %v1332_v39 = vadd.f32 %v2403_v53, %v2401_v29 }
 0x341   :  { %2416 = vpow2.f32 %v1245_v16  ;;  %v1145_v34 = vsub.f32 %v4586_v43, %v4131_v44  ;;  %v1146_v63 = vsub.f32 %v4587_v37, %v4131_v44 }
 0x342   :  { %v2405_v2 = vpop.eup %2404  ;;  %2418 = vpow2.f32 %v1247_v52  ;;  %1333 = vadd.xlane.f32.xlu1 %v1332_v39 }
 0x343   :  { %v2407_v5 = vpop.eup %2406  ;;  %v1249_v54 = vmul.f32 1.442695, %v1145_v34  ;;  %v1251_v23 = vmul.f32 1.442695, %v1146_v63  ;;  %v4592_v34 = vld [vmem:[#allocation36_spill] sm:$0xff]  ;;  %v4593_v63 = vld [vmem:[#allocation67_spill] sm:$0xff] }
 0x344   :  { %v4137_v60 = vpop.xlane.xlu1 %1081  ;;  %v1335_v33 = vadd.f32 %v2407_v5, %v2405_v2 }
 0x345   :  { %2420 = vpow2.f32 %v1249_v54  ;;  %v1147_v20 = vsub.f32 %v4588_v4, %v4137_v60  ;;  %v1148_v58 = vsub.f32 %v4589_v46, %v4137_v60 }
 0x346   :  { %v2409_v40 = vpop.eup %2408  ;;  %2422 = vpow2.f32 %v1251_v23  ;;  %1336 = vadd.xlane.f32.xlu0 %v1335_v33 }
 0x347   :  { %v2411_v24 = vpop.eup %2410  ;;  %v1253_v48 = vmul.f32 1.442695, %v1147_v20  ;;  %v1255_v17 = vmul.f32 1.442695, %v1148_v58  ;;  %v4594_v58 = vld [vmem:[#allocation37_spill] sm:$0xff] }
 0x348   :  { %v4143_v13 = vpop.xlane.xlu0 %1084  ;;  %v1338_v50 = vadd.f32 %v2411_v24, %v2409_v40 }
 0x349   :  { %2424 = vpow2.f32 %v1253_v48  ;;  %v1149_v19 = vsub.f32 %v4590_v1, %v4143_v13  ;;  %v1150_v35 = vsub.f32 %v4591_v57, %v4143_v13  ;;  %v4595_v57 = vld [vmem:[#allocation38_spill] sm:$0xff] }
 0x34a   :  { %v2413_v29 = vpop.eup %2412  ;;  %2426 = vpow2.f32 %v1255_v17  ;;  %1339 = vadd.xlane.f32.xlu1 %v1338_v50 }
 0x34b   :  { %v2415_v53 = vpop.eup %2414  ;;  %v1257_v16 = vmul.f32 1.442695, %v1149_v19  ;;  %v1259_v52 = vmul.f32 1.442695, %v1150_v35 }
 0x34c   :  { %v4149_v39 = vpop.xlane.xlu1 %1087  ;;  %v1341_v43 = vadd.f32 %v2415_v53, %v2413_v29 }
 0x34d   :  { %2428 = vpow2.f32 %v1257_v16  ;;  %v1151_v37 = vsub.f32 %v4592_v34, %v4149_v39  ;;  %v1152_v2 = vsub.f32 %v4593_v63, %v4149_v39 }
 0x34e   :  { %v2417_v5 = vpop.eup %2416  ;;  %2430 = vpow2.f32 %v1259_v52  ;;  %1342 = vadd.xlane.f32.xlu0 %v1341_v43 }
 0x34f   :  { %v2419_v54 = vpop.eup %2418  ;;  %v1261_v23 = vmul.f32 1.442695, %v1151_v37  ;;  %v1263_v33 = vmul.f32 1.442695, %v1152_v2 }
 0x350   :  { %v4155_v4 = vpop.xlane.xlu0 %1090  ;;  %v1344_v20 = vadd.f32 %v2419_v54, %v2417_v5 }
 0x351   :  { %2432 = vpow2.f32 %v1261_v23  ;;  %v1153_v46 = vsub.f32 %v3914_v38, %v4155_v4  ;;  %v1154_v40 = vsub.f32 %v4594_v58, %v4155_v4 }
 0x352   :  { %v2421_v24 = vpop.eup %2420  ;;  %2434 = vpow2.f32 %v1263_v33  ;;  %1345 = vadd.xlane.f32.xlu1 %v1344_v20 }
 0x353   :  { %v2423_v48 = vpop.eup %2422  ;;  %v1265_v17 = vmul.f32 1.442695, %v1153_v46  ;;  %v1267_v50 = vmul.f32 1.442695, %v1154_v40 }
 0x354   :  { %v4161_v1 = vpop.xlane.xlu1 %1093  ;;  %v1347_v19 = vadd.f32 %v2423_v48, %v2421_v24 }
 0x355   :  { %2436 = vpow2.f32 %v1265_v17  ;;  %v1155_v35 = vsub.f32 %v4595_v57, %v4161_v1  ;;  %v1156_v29 = vsub.f32 %v3934_v0, %v4161_v1 }
 0x356   :  { %v2425_v38 = vpop.eup %2424  ;;  %2438 = vpow2.f32 %v1267_v50  ;;  %1348 = vadd.xlane.f32.xlu0 %v1347_v19 }
 0x357   :  { %v2427_v53 = vpop.eup %2426  ;;  %v1269_v16 = vmul.f32 1.442695, %v1155_v35  ;;  %v1271_v52 = vmul.f32 1.442695, %v1156_v29 }
 0x358   :  { %v4167_v43 = vpop.xlane.xlu1 %1738  ;;  %v4169_v34 = vpop.xlane.xlu0 %1096  ;;  %v1350_v37 = vadd.f32 %v2427_v53, %v2425_v38 }
 0x359   :  { %2440 = vpow2.f32 %v1269_v16  ;;  %v1157_v63 = vsub.f32 %v3936_v14, %v4169_v34  ;;  %v1158_v2 = vsub.f32 %v3950_v59, %v4169_v34 }
 0x35a   :  { %v2429_v5 = vpop.eup %2428  ;;  %2442 = vpow2.f32 %v1271_v52  ;;  %1351 = vadd.xlane.f32.xlu1 %v1350_v37 }
 0x35b   :  { %v2431_v0 = vpop.eup %2430  ;;  %v1273_v54 = vmul.f32 1.442695, %v1157_v63  ;;  %v1275_v23 = vmul.f32 1.442695, %v1158_v2 }
 0x35c   :  { %v4175_v33 = vpop.xlane.xlu0 %1735  ;;  %v4177_v20 = vpop.xlane.xlu1 %1099  ;;  %v1353_v46 = vadd.f32 %v2431_v0, %v2429_v5 }
 0x35d   :  { %4596 = vst [vmem:[#allocation40_spill] sm:$0xff] %v4177_v20  ;;  %2444 = vpow2.f32 %v1273_v54  ;;  %v1159_v58 = vsub.f32 %v3952_v6, %v4177_v20  ;;  %v1160_v14 = vsub.f32 %v3966_v49, %v4177_v20  ;;  %v4607_v20 = vld [vmem:[#allocation2_spill] sm:$0xff] }
 0x35e   :  { %v2433_v40 = vpop.eup %2432  ;;  %2446 = vpow2.f32 %v1275_v23  ;;  %1354 = vadd.xlane.f32.xlu0 %v1353_v46  ;;  %vm4608_vm9 = vcmp.ne.s32.totalorder %v4607_v20, 4294967096 }
 0x35f   :  { %v2435_v59 = vpop.eup %2434  ;;  %v1277_v24 = vmul.f32 1.442695, %v1159_v58  ;;  %v1279_v48 = vmul.f32 1.442695, %v1160_v14  ;;  %v4597_v58 = vld [vmem:[#allocation68_spill] sm:$0xff] }
 0x360   :  { %v4183_v17 = vpop.xlane.xlu0 %1681  ;;  %v1356_v50 = vadd.f32 %v2435_v59, %v2433_v40  ;;  %v4185_v35 = vpop.xlane.xlu1 %1711  ;;  %v4598_v40 = vld [vmem:[#allocation56_spill] sm:$0xff] }
 0x361   :  { %2448 = vpow2.f32 %v1277_v24  ;;  %v4599_v59 = vld [vmem:[#allocation48_spill] sm:$0xff] }
 0x362   :  { %v2437_v19 = vpop.eup %2436  ;;  %2450 = vpow2.f32 %v1279_v48  ;;  %1357 = vadd.xlane.f32.xlu1 %v1356_v50  ;;  %v4600_v48 = vld [vmem:[#allocation49_spill] sm:$0xff]  ;;  %v4601_v50 = vld [vmem:[#allocation39_spill] sm:$0xff] }
 0x363   :  { %v2439_v57 = vpop.eup %2438 }
 0x364   :  { %v1359_v6 = vadd.f32 %v2439_v57, %v2437_v19  ;;  %v4187_v29 = vpop.xlane.xlu0 %1741  ;;  %v4189_v16 = vpop.xlane.xlu1 %1684 }
 0x366   :  { %v2441_v49 = vpop.eup %2440  ;;  %1360 = vadd.xlane.f32.xlu0 %v1359_v6  ;;  %v4602_v6 = vld [vmem:[#allocation57_spill] sm:$0xff] }
 0x367   :  { %v2443_v38 = vpop.eup %2442 }
 0x368   :  { %v1362_v53 = vadd.f32 %v2443_v38, %v2441_v49  ;;  %v4191_v63 = vpop.xlane.xlu0 %1714  ;;  %v4193_v54 = vpop.xlane.xlu1 %1744  ;;  %v4603_v38 = vld [vmem:[#allocation58_spill] sm:$0xff] }
 0x36a   :  { %v2445_v52 = vpop.eup %2444  ;;  %1363 = vadd.xlane.f32.xlu1 %v1362_v53  ;;  %v4604_v53 = vld [vmem:[#allocation50_spill] sm:$0xff] }
 0x36b   :  { %v2447_v37 = vpop.eup %2446 }
 0x36c   :  { %v1365_v2 = vadd.f32 %v2447_v37, %v2445_v52  ;;  %v4195_v46 = vpop.xlane.xlu0 %1687  ;;  %v4198_v14 = vpop.xlane.xlu1 %1717 }
 0x36e   :  { %v2449_v5 = vpop.eup %2448  ;;  %1366 = vadd.xlane.f32.xlu0 %v1365_v2 }
 0x36f   :  { %v2451_v0 = vpop.eup %2450 }
 0x370   :  { %v1368_v23 = vadd.f32 %v2451_v0, %v2449_v5  ;;  %v4202_v24 = vpop.xlane.xlu0 %1747  ;;  %v4206_v19 = vpop.xlane.xlu1 %1690 }
 0x372   :  { %1753 = vadd.xlane.f32.xlu0 %v4597_v58  ;;  %1369 = vadd.xlane.f32.xlu1 %v1368_v23 }
 0x374   :  { %v4208_v57 = vpop.xlane.xlu0 %1720  ;;  %v4212_v49 = vpop.xlane.xlu1 %1750 }
 0x376   :  { %1726 = vadd.xlane.f32.xlu0 %v4598_v40  ;;  %1696 = vadd.xlane.f32.xlu1 %v4599_v59 }
 0x378   :  { %v4216_v52 = vpop.xlane.xlu0 %1693  ;;  %v4219_v37 = vpop.xlane.xlu1 %1723 }
 0x37a   :  { %1699 = vadd.xlane.f32.xlu0 %v4600_v48  ;;  %1756 = vadd.xlane.f32.xlu1 %v4601_v50 }
 0x37e   :  { %1759 = vadd.xlane.f32.xlu0 %v3964_v21  ;;  %1729 = vadd.xlane.f32.xlu1 %v4602_v6 }
 0x382   :  { %1732 = vadd.xlane.f32.xlu0 %v4603_v38  ;;  %1702 = vadd.xlane.f32.xlu1 %v4604_v53 }
 0x386   :  { %1762 = vadd.xlane.f32.xlu1 %v3975_v62 }
 0x387   :  { %v1283_v2 = vpop.xlane.xlu0 %1282 }
 0x388   :  { %2452 = vlog2.f32 %v1283_v2  ;;  %v4605_v2 = vld [vmem:[#allocation9_spill] sm:$0xff] }
 0x389   :  { %vm4606_vm8 = vcmp.ne.s32.totalorder %v4605_v2, 4294967096 }
 0x38b   :  { %v1286_v5 = vpop.xlane.xlu1 %1285 }
 0x38c   :  { %2454 = vlog2.f32 %v1286_v5 }
 0x38f   :  { %v1289_v0 = vpop.xlane.xlu0 %1288 }
 0x390   :  { %2456 = vlog2.f32 %v1289_v0 }
 0x393   :  { %v1292_v21 = vpop.xlane.xlu1 %1291 }
 0x394   :  { %2458 = vlog2.f32 %v1292_v21 }
 0x395   :  { %v2453_v23 = vpop.eup %2452 }
 0x396   :  { %v1372_v58 = vmul.f32 0.6931472, %v2453_v23 }
 0x397   :  { %v1295_v40 = vpop.xlane.xlu0 %1294 }
 0x398   :  { %v1431_v59 = vadd.f32 %v1372_v58, %v3988_v18  ;;  %2460 = vlog2.f32 %v1295_v40 }
 0x399   :  { %v2455_v48 = vpop.eup %2454 }
 0x39a   :  { %v1764_v50 = vsub.f32 %v1431_v59, %v3995_v36  ;;  %v1374_v62 = vmul.f32 0.6931472, %v2455_v48 }
 0x39b   :  { %v1298_v6 = vpop.xlane.xlu1 %1297 }
 0x39c   :  { %v1432_v38 = vadd.f32 %v1374_v62, %v3997_v51  ;;  %2462 = vlog2.f32 %v1298_v6  ;;  %v1824_v5 = vsel %vm4606_vm8, %v1764_v50, 0.0  ;;  %v4611_v50 = vld [vmem:[#allocation3_spill] sm:$0xff]  ;;  %vm4630_vm8 = vmmov %vm4622_vm2 }
 0x39d   :  { %v2457_v53 = vpop.eup %2456  ;;  %v1855_v40 = vsel %vm4609_vm6, %v1824_v5, 0.0  ;;  %vm4612_vm7 = vcmp.ne.s32.totalorder %v4611_v50, 4294967096 }
 0x39e   :  { %v1765_v0 = vsub.f32 %v1432_v38, %v4011_v8  ;;  %v1376_v21 = vmul.f32 0.6931472, %v2457_v53 }
 0x39f   :  { %v1301_v23 = vpop.xlane.xlu0 %1300 }
 0x3a0   :  { %v1825_v18 = vsel %vm4608_vm9, %v1765_v0, 0.0  ;;  %v1433_v58 = vadd.f32 %v1376_v21, %v4005_v56  ;;  %2464 = vlog2.f32 %v1301_v23  ;;  %v4614_v0 = vld [vmem:[#allocation4_spill] sm:$0xff]  ;;  %vm4631_vm9 = vmmov %vm4622_vm2 }
 0x3a1   :  { %v2459_v36 = vpop.eup %2458  ;;  %v1856_v51 = vsel %vm4610_vm3, %v1825_v18, 0.0  ;;  %vm4615_vm14 = vcmp.ne.s32.totalorder %v4614_v0, 4294967096  ;;  %vm4634_vm3 = vmmov %vm4622_vm2 }
 0x3a2   :  { %v1857_v59 = vadd.f32 %v1856_v51, %v1855_v40  ;;  %v1766_v48 = vsub.f32 %v1433_v58, %v4183_v17  ;;  %v1378_v62 = vmul.f32 0.6931472, %v2459_v36  ;;  %v4617_v51 = vld [vmem:[#allocation5_spill] sm:$0xff] }
 0x3a3   :  { %vm4618_vm11 = vcmp.ne.s32.totalorder %v4617_v51, 4294967096 }
 0x3a4   :  { %v1826_v8 = vsel %vm4612_vm7, %v1766_v48, 0.0  ;;  %v1434_v6 = vadd.f32 %v1378_v62, %v4013_v32  ;;  %v4243_v32 = vpop.xlane.xlu1 %1303 }
 0x3a5   :  { %v2461_v38 = vpop.eup %2460  ;;  %v1858_v20 = vsel %vm4613_vm13, %v1826_v8, 0.0  ;;  %vm4637_vm13 = vmmov %vm4622_vm2 }
 0x3a6   :  { %v1859_v53 = vadd.f32 %v1858_v20, %v1857_v59  ;;  %v1767_v56 = vsub.f32 %v1434_v6, %v4189_v16  ;;  %v1380_v2 = vmul.f32 0.6931472, %v2461_v38  ;;  %v4620_v38 = vld [vmem:[#allocation17_spill] sm:$0xff] }
 0x3a7   :  { %v4245_v40 = vpop.xlane.xlu0 %1306  ;;  %vm4621_vm10 = vcmp.ne.s32.totalorder %v4620_v38, 4294967096 }
 0x3a8   :  { %v1827_v5 = vsel %vm4615_vm14, %v1767_v56, 0.0  ;;  %v1435_v21 = vadd.f32 %v1380_v2, %v4019_v41 }
 0x3a9   :  { %v2463_v23 = vpop.eup %2462  ;;  %v1860_v17 = vsel %vm4616_vm15, %v1827_v5, 0.0  ;;  %v4623_v5 = vld [vmem:[#allocation20_spill] sm:$0xff]  ;;  %vm4640_vm15 = vmmov %vm4622_vm2 }
 0x3aa   :  { %v1861_v18 = vadd.f32 %v1860_v17, %v1859_v53  ;;  %v1768_v58 = vsub.f32 %v1435_v21, %v4195_v46  ;;  %v1382_v36 = vmul.f32 0.6931472, %v2463_v23  ;;  %vm4624_vm4 = vcmp.ne.s32.totalorder %v4623_v5, 4294967096 }
 0x3ab   :  { %v4252_v6 = vpop.xlane.xlu1 %1309 }
 0x3ac   :  { %v1828_v16 = vsel %vm4618_vm11, %v1768_v58, 0.0  ;;  %v1436_v59 = vadd.f32 %v1382_v36, %v4025_v10 }
 0x3ad   :  { %v2465_v48 = vpop.eup %2464  ;;  %v1862_v62 = vsel %vm4619_vm5, %v1828_v16, 0.0  ;;  %vm4643_vm5 = vmmov %vm4622_vm2 }
 0x3ae   :  { %v1769_v41 = vsub.f32 %v1436_v59, %v4206_v19  ;;  %v1384_v50 = vmul.f32 0.6931472, %v2465_v48  ;;  %v1863_v8 = vadd.f32 %v1862_v62, %v1861_v18 }
 0x3af   :  { %v1313_v46 = vpop.xlane.xlu0 %1312 }
 0x3b0   :  { %v1829_v20 = vsel %vm4621_vm10, %v1769_v41, 0.0  ;;  %v1437_v53 = vadd.f32 %v1384_v50, %v4031_v42  ;;  %2466 = vlog2.f32 %v1313_v46  ;;  %v4626_v50 = vld [vmem:[#allocation6_spill] sm:$0xff] }
 0x3b1   :  { %v1864_v56 = vsel %vm4622_vm2, %v1829_v20, 0.0  ;;  %vm4627_vm0 = vcmp.ne.s32.totalorder %v4626_v50, 4294967096  ;;  %v4638_v50 = vld [vmem:[#allocation15_spill] sm:$0xff] }
 0x3b2   :  { %v1770_v10 = vsub.f32 %v1437_v53, %v4216_v52  ;;  %v1865_v2 = vadd.f32 %v1864_v56, %v1863_v8  ;;  %v4628_v53 = vld [vmem:[#allocation7_spill] sm:$0xff]  ;;  %vm4639_vm14 = vcmp.ne.s32.totalorder %v4638_v50, 4294967096 }
 0x3b3   :  { %v1316_v0 = vpop.xlane.xlu1 %1315  ;;  %vm4629_vm1 = vcmp.ne.s32.totalorder %v4628_v53, 4294967096 }
 0x3b4   :  { %2468 = vlog2.f32 %v1316_v0  ;;  %v1830_v19 = vsel %vm4624_vm4, %v1770_v10, 0.0 }
 0x3b5   :  { %v1866_v21 = vsel %vm4625_vm12, %v1830_v19, 0.0  ;;  %v4632_v19 = vld [vmem:[#allocation11_spill] sm:$0xff] }
 0x3b6   :  { %v4262_v23 = vadd.f32 %v1866_v21, %v1865_v2  ;;  %vm4633_vm6 = vcmp.ne.s32.totalorder %v4632_v19, 4294967096 }
 0x3b7   :  { %v1319_v17 = vpop.xlane.xlu0 %1318 }
 0x3b8   :  { %2470 = vlog2.f32 %v1319_v17 }
 0x3bb   :  { %v1322_v18 = vpop.xlane.xlu1 %1321 }
 0x3bc   :  { %2472 = vlog2.f32 %v1322_v18 }
 0x3bd   :  { %v2467_v42 = vpop.eup %2466 }
 0x3be   :  { %v1392_v58 = vmul.f32 0.6931472, %v2467_v42 }
 0x3bf   :  { %v1325_v36 = vpop.xlane.xlu0 %1324 }
 0x3c0   :  { %v1441_v51 = vadd.f32 %v1392_v58, %v4055_v27  ;;  %2474 = vlog2.f32 %v1325_v36  ;;  %v4635_v36 = vld [vmem:[#allocation13_spill] sm:$0xff] }
 0x3c1   :  { %v2469_v52 = vpop.eup %2468  ;;  %vm4636_vm7 = vcmp.ne.s32.totalorder %v4635_v36, 4294967096 }
 0x3c2   :  { %v1774_v16 = vsub.f32 %v1441_v51, %v4061_v9  ;;  %v1394_v59 = vmul.f32 0.6931472, %v2469_v52 }
 0x3c3   :  { %v1328_v48 = vpop.xlane.xlu1 %1327 }
 0x3c4   :  { %v1442_v62 = vadd.f32 %v1394_v59, %v4063_v12  ;;  %2476 = vlog2.f32 %v1328_v48  ;;  %v1834_v8 = vsel %vm4627_vm0, %v1774_v16, 0.0  ;;  %vm4653_vm0 = vmmov %vm4622_vm2 }
 0x3c5   :  { %v2471_v41 = vpop.eup %2470  ;;  %v1880_v10 = vsel %vm4630_vm8, %v1834_v8, 0.0 }
 0x3c6   :  { %v1775_v46 = vsub.f32 %v1442_v62, %v4069_v45  ;;  %v1396_v38 = vmul.f32 0.6931472, %v2471_v41 }
 0x3c7   :  { %v1331_v20 = vpop.xlane.xlu0 %1330 }
 0x3c8   :  { %v1835_v27 = vsel %vm4629_vm1, %v1775_v46, 0.0  ;;  %v1443_v56 = vadd.f32 %v1396_v38, %v4071_v11  ;;  %2478 = vlog2.f32 %v1331_v20  ;;  %vm4654_vm1 = vmmov %vm4653_vm0 }
 0x3c9   :  { %v2473_v9 = vpop.eup %2472  ;;  %v1881_v12 = vsel %vm4631_vm9, %v1835_v27, 0.0  ;;  %vm4657_vm9 = vmmov %vm4653_vm0 }
 0x3ca   :  { %v1882_v2 = vadd.f32 %v1881_v12, %v1880_v10  ;;  %v1776_v0 = vsub.f32 %v1443_v56, %v4185_v35  ;;  %v1398_v5 = vmul.f32 0.6931472, %v2473_v9  ;;  %v4641_v9 = vld [vmem:[#allocation18_spill] sm:$0xff] }
 0x3cb   :  { %vm4642_vm11 = vcmp.ne.s32.totalorder %v4641_v9, 4294967096 }
 0x3cc   :  { %v1836_v45 = vsel %vm4633_vm6, %v1776_v0, 0.0  ;;  %v1444_v21 = vadd.f32 %v1398_v5, %v4077_v61  ;;  %v1334_v61 = vpop.xlane.xlu1 %1333  ;;  %v4644_v5 = vld [vmem:[#allocation21_spill] sm:$0xff] }
 0x3cd   :  { %v2475_v17 = vpop.eup %2474  ;;  %v1883_v18 = vsel %vm4634_vm3, %v1836_v45, 0.0  ;;  %vm4645_vm10 = vcmp.ne.s32.totalorder %v4644_v5, 4294967096  ;;  %vm4660_vm3 = vmmov %vm4653_vm0 }
 0x3ce   :  { %v1884_v42 = vadd.f32 %v1883_v18, %v1882_v2  ;;  %v1777_v11 = vsub.f32 %v1444_v21, %v4191_v63  ;;  %v1400_v58 = vmul.f32 0.6931472, %v2475_v17 }
 0x3cf   :  { %v1337_v41 = vpop.xlane.xlu0 %1336 }
 0x3d0   :  { %v1837_v51 = vsel %vm4636_vm7, %v1777_v11, 0.0  ;;  %v1445_v52 = vadd.f32 %v1400_v58, %v4083_v30 }
 0x3d1   :  { %v2477_v16 = vpop.eup %2476  ;;  %v1885_v35 = vsel %vm4637_vm13, %v1837_v51, 0.0  ;;  %v4646_v51 = vld [vmem:[#allocation29_spill] sm:$0xff]  ;;  %vm4663_vm13 = vmmov %vm4653_vm0 }
 0x3d2   :  { %v1886_v59 = vadd.f32 %v1885_v35, %v1884_v42  ;;  %v1778_v48 = vsub.f32 %v1445_v52, %v4198_v14  ;;  %v1402_v62 = vmul.f32 0.6931472, %v2477_v16  ;;  %v2009_v52 = vrot.slane %v4646_v51, 4 }
 0x3d3   :  { %v1340_v27 = vpop.xlane.xlu1 %1339 }
 0x3d4   :  { %v1838_v8 = vsel %vm4639_vm14, %v1778_v48, 0.0  ;;  %v1446_v63 = vadd.f32 %v1402_v62, %v4089_v26  ;;  %v4647_v48 = vld [vmem:[#allocation8_spill] sm:$0xff] }
 0x3d5   :  { %v2479_v46 = vpop.eup %2478  ;;  %v1887_v38 = vsel %vm4640_vm15, %v1838_v8, 0.0  ;;  %vm4648_vm4 = vcmp.ne.s32.totalorder %v4647_v48, 4294967096  ;;  %vm4666_vm15 = vmmov %vm4653_vm0 }
 0x3d6   :  { %v1779_v20 = vsub.f32 %v1446_v63, %v4208_v57  ;;  %v1404_v30 = vmul.f32 0.6931472, %v2479_v46  ;;  %v1888_v53 = vadd.f32 %v1887_v38, %v1886_v59  ;;  %v4650_v63 = vld [vmem:[#allocation10_spill] sm:$0xff] }
 0x3d7   :  { %v1343_v56 = vpop.xlane.xlu0 %1342  ;;  %vm4651_vm12 = vcmp.ne.s32.totalorder %v4650_v63, 4294967096 }
 0x3d8   :  { %v1839_v14 = vsel %vm4642_vm11, %v1779_v20, 0.0  ;;  %v1447_v10 = vadd.f32 %v1404_v30, %v4095_v7  ;;  %2480 = vlog2.f32 %v1343_v56  ;;  %v4652_v20 = vld [vmem:[#allocation33_spill] sm:$0xff] }
 0x3d9   :  { %v1889_v12 = vsel %vm4643_vm5, %v1839_v14, 0.0  ;;  %vm4669_vm5 = vmmov %vm4653_vm0 }
 0x3da   :  { %v1780_v2 = vsub.f32 %v1447_v10, %v4219_v37  ;;  %v1890_v26 = vadd.f32 %v1889_v12, %v1888_v53 }
 0x3db   :  { %v1346_v0 = vpop.xlane.xlu1 %1345 }
 0x3dc   :  { %2482 = vlog2.f32 %v1346_v0  ;;  %v1840_v57 = vsel %vm4645_vm10, %v1780_v2, 0.0 }
 0x3dd   :  { %v1891_v19 = vsel %vm4622_vm2, %v1840_v57, 0.0 }
 0x3de   :  { %v4299_v45 = vadd.f32 %v1891_v19, %v1890_v26 }
 0x3df   :  { %v1349_v21 = vpop.xlane.xlu0 %1348 }
 0x3e0   :  { %2484 = vlog2.f32 %v1349_v21 }
 0x3e3   :  { %v1352_v17 = vpop.xlane.xlu1 %1351 }
 0x3e4   :  { %2486 = vlog2.f32 %v1352_v17 }
 0x3e5   :  { %v2481_v7 = vpop.eup %2480 }
 0x3e6   :  { %v1412_v18 = vmul.f32 0.6931472, %v2481_v7 }
 0x3e7   :  { %v1355_v42 = vpop.xlane.xlu0 %1354 }
 0x3e8   :  { %v1451_v11 = vadd.f32 %v1412_v18, %v4119_v55  ;;  %2488 = vlog2.f32 %v1355_v42  ;;  %v4658_v42 = vld [vmem:[#allocation14_spill] sm:$0xff] }
 0x3e9   :  { %v2483_v37 = vpop.eup %2482  ;;  %2490 = vlog2.f32 %v4243_v32  ;;  %v2010_v32 = vadd.f32 %v2009_v52, %v4646_v51  ;;  %vm4659_vm6 = vcmp.ne.s32.totalorder %v4658_v42, 4294967096 }
 0x3ea   :  { %2492 = vlog2.f32 %v1334_v61  ;;  %v1784_v58 = vsub.f32 %v1451_v11, %v4175_v33  ;;  %v1414_v36 = vmul.f32 0.6931472, %v2483_v37  ;;  %v4649_v61 = vld [vmem:[#allocation34_spill] sm:$0xff] }
 0x3eb   :  { %v1358_v16 = vpop.xlane.xlu1 %1357  ;;  %v2034_v33 = vrot.slane %v4649_v61, 4  ;;  %v2011_v14 = vrot.slane %v2010_v32, 2 }
 0x3ec   :  { %v1452_v35 = vadd.f32 %v1414_v36, %v4125_v28  ;;  %2494 = vlog2.f32 %v1358_v16  ;;  %v1844_v55 = vsel %vm4648_vm4, %v1784_v58, 0.0  ;;  %vm4674_vm4 = vmmov %vm4653_vm0 }
 0x3ed   :  { %v2485_v59 = vpop.eup %2484  ;;  %2496 = vlog2.f32 %v4245_v40  ;;  %v2059_v40 = vrot.slane %v4652_v20, 4  ;;  %v1905_v30 = vsel %vm4653_vm0, %v1844_v55, 0.0  ;;  %v2035_v10 = vadd.f32 %v2034_v33, %v4649_v61 }
 0x3ee   :  { %v1785_v62 = vsub.f32 %v1452_v35, %v4167_v43  ;;  %v1416_v50 = vmul.f32 0.6931472, %v2485_v59 }
 0x3ef   :  { %v1361_v8 = vpop.xlane.xlu0 %1360  ;;  %v2060_v0 = vadd.f32 %v2059_v40, %v4652_v20  ;;  %v2036_v7 = vrot.slane %v2035_v10, 2 }
 0x3f0   :  { %v1845_v46 = vsel %vm4651_vm12, %v1785_v62, 0.0  ;;  %v1453_v28 = vadd.f32 %v1416_v50, %v4131_v44  ;;  %2498 = vlog2.f32 %v1361_v8  ;;  %v4655_v44 = vld [vmem:[#allocation12_spill] sm:$0xff]  ;;  %vm4675_vm12 = vmmov %vm4653_vm0 }
 0x3f1   :  { %v2487_v38 = vpop.eup %2486  ;;  %2500 = vlog2.f32 %v1337_v41  ;;  %v1906_v43 = vsel %vm4654_vm1, %v1845_v46, 0.0  ;;  %vm4656_vm8 = vcmp.ne.s32.totalorder %v4655_v44, 4294967096  ;;  %v2061_v58 = vrot.slane %v2060_v0, 2  ;;  %v4661_v50 = vld [vmem:[#allocation16_spill] sm:$0xff] }
 0x3f2   :  { %v1907_v53 = vadd.f32 %v1906_v43, %v1905_v30  ;;  %v1786_v56 = vsub.f32 %v1453_v28, %v4187_v29  ;;  %v1418_v9 = vmul.f32 0.6931472, %v2487_v38  ;;  %2502 = vlog2.f32 %v4252_v6 }
 0x3f3   :  { %v1364_v12 = vpop.xlane.xlu1 %1363  ;;  %v2012_v6 = vadd.f32 %v2011_v14, %v2010_v32  ;;  %v2037_v48 = vadd.f32 %v2036_v7, %v2035_v10  ;;  %vm4662_vm7 = vcmp.ne.s32.totalorder %v4661_v50, 4294967096  ;;  %v2062_v33 = vadd.f32 %v2061_v58, %v2060_v0  ;;  %v4664_v14 = vld [vmem:[#allocation19_spill] sm:$0xff] }
 0x3f4   :  { %v1846_v2 = vsel %vm4656_vm8, %v1786_v56, 0.0  ;;  %v1454_v26 = vadd.f32 %v1418_v9, %v4137_v60  ;;  %2504 = vlog2.f32 %v1364_v12  ;;  %vm4665_vm14 = vcmp.ne.s32.totalorder %v4664_v14, 4294967096 }
 0x3f5   :  { %v2489_v41 = vpop.eup %2488  ;;  %2506 = vlog2.f32 %v1340_v27  ;;  %v1908_v5 = vsel %vm4657_vm9, %v1846_v2, 0.0  ;;  %v2013_v59 = vrot.slane %v2012_v6, 1  ;;  %v2038_v43 = vrot.slane %v2037_v48, 1  ;;  %vm4680_vm9 = vmmov %vm4654_vm1 }
 0x3f6   :  { %v2491_v29 = vpop.eup %2490  ;;  %v1909_v57 = vadd.f32 %v1908_v5, %v1907_v53  ;;  %v1787_v19 = vsub.f32 %v1454_v26, %v4193_v54  ;;  %v1420_v21 = vmul.f32 0.6931472, %v2489_v41  ;;  %v2063_v2 = vrot.slane %v2062_v33, 1 }
 0x3f7   :  { %v2493_v17 = vpop.eup %2492  ;;  %v1367_v18 = vpop.xlane.xlu0 %1366  ;;  %v1386_v27 = vmul.f32 0.6931472, %v2491_v29  ;;  %v2014_v30 = vadd.f32 %v2013_v59, %v2012_v6  ;;  %v4670_v6 = vld [vmem:[#allocation23_spill] sm:$0xff]  ;;  %v4676_v59 = vld [vmem:[#allocation26_spill] sm:$0xff] }
 0x3f8   :  { %v1847_v11 = vsel %vm4659_vm6, %v1787_v19, 0.0  ;;  %v1455_v60 = vadd.f32 %v1420_v21, %v4143_v13  ;;  %2508 = vlog2.f32 %v1367_v18  ;;  %v1406_v52 = vmul.f32 0.6931472, %v2493_v17 }
 0x3f9   :  { %v2495_v37 = vpop.eup %2494  ;;  %v1910_v36 = vsel %vm4660_vm3, %v1847_v11, 0.0  ;;  %v1438_v46 = vadd.f32 %v1386_v27, %v4037_v31  ;;  %vm4671_vm10 = vcmp.ne.s32.totalorder %v4670_v6, 4294967096  ;;  %v4672_v11 = vld [vmem:[#allocation22_spill] sm:$0xff]  ;;  %vm4677_vm0 = vcmp.ne.s32.totalorder %v4676_v59, 4294967096  ;;  %vm4683_vm3 = vmmov %vm4654_vm1 }
 0x3fa   :  { %v2497_v51 = vpop.eup %2496  ;;  %v1788_v54 = vsub.f32 %v1455_v60, %v4202_v24  ;;  %v1422_v16 = vmul.f32 0.6931472, %v2495_v37  ;;  %v1911_v35 = vadd.f32 %v1910_v36, %v1909_v57  ;;  %v1448_v40 = vadd.f32 %v1406_v52, %v4101_v47  ;;  %v4667_v57 = vld [vmem:[#allocation24_spill] sm:$0xff] }
 0x3fb   :  { %v1754_v55 = vpop.xlane.xlu0 %1753  ;;  %v1370_v62 = vpop.xlane.xlu1 %1369  ;;  %v1388_v8 = vmul.f32 0.6931472, %v2497_v51  ;;  %vm4668_vm11 = vcmp.ne.s32.totalorder %v4667_v57, 4294967096  ;;  %vm4673_vm2 = vcmp.ne.s32.totalorder %v4672_v11, 4294967096 }
 0x3fc   :  { %v1848_v32 = vsel %vm4662_vm7, %v1788_v54, 0.0  ;;  %v1456_v13 = vadd.f32 %v1422_v16, %v4149_v39  ;;  %2510 = vlog2.f32 %v1370_v62  ;;  %v2065_v62 = vmax.f32 %v2014_v30, 1.0 }
 0x3fd   :  { %v2499_v61 = vpop.eup %2498  ;;  %v1912_v63 = vsel %vm4663_vm13, %v1848_v32, 0.0  ;;  %v1439_v41 = vadd.f32 %v1388_v8, %v4043_v22  ;;  %vm4686_vm13 = vmmov %vm4654_vm1 }
 0x3fe   :  { %v2501_v24 = vpop.eup %2500  ;;  %v1789_v28 = vsub.f32 %v1456_v13, %v4212_v49  ;;  %v1424_v38 = vmul.f32 0.6931472, %v2499_v61  ;;  %v1913_v20 = vadd.f32 %v1912_v63, %v1911_v35  ;;  %v2064_v61 = vadd.f32 %v2063_v2, %v2062_v33  ;;  %v4687_v2 = vld [vmem:[#allocation32_spill] sm:$0xff] }
 0x3ff   :  { %v1727_v53 = vpop.xlane.xlu0 %1726  ;;  %v1697_v56 = vpop.xlane.xlu1 %1696  ;;  %v1408_v26 = vmul.f32 0.6931472, %v2501_v24  ;;  %v4678_v24 = vld [vmem:[#allocation25_spill] sm:$0xff]  ;;  %2512 = vrcp.f32 %v2065_v62 }
 0x400   :  { %v2503_v39 = vpop.eup %2502  ;;  %v1457_v9 = vadd.f32 %v1424_v38, %v4155_v4  ;;  %v1849_v10 = vsel %vm4665_vm14, %v1789_v28, 0.0  ;;  %v1781_v12 = vsub.f32 %v1448_v40, %v1727_v53  ;;  %v1771_v44 = vsub.f32 %v1438_v46, %v1697_v56 }
 0x401   :  { %v2505_v31 = vpop.eup %2504  ;;  %v1914_v49 = vsel %vm4666_vm15, %v1849_v10, 0.0  ;;  %v2039_v4 = vadd.f32 %v2038_v43, %v2037_v48  ;;  %v1390_v21 = vmul.f32 0.6931472, %v2503_v39  ;;  %vm4679_vm8 = vcmp.ne.s32.totalorder %v4678_v24, 4294967096  ;;  %v4681_v43 = vld [vmem:[#allocation27_spill] sm:$0xff] }
 0x402   :  { %v2507_v47 = vpop.eup %2506  ;;  %v1426_v0 = vmul.f32 0.6931472, %v2505_v31  ;;  %v1790_v5 = vsub.f32 %v1457_v9, %v1754_v55  ;;  %v1915_v29 = vadd.f32 %v1914_v49, %v1913_v20  ;;  %v1841_v19 = vsel %vm4668_vm11, %v1781_v12, 0.0  ;;  %v4684_v9 = vld [vmem:[#allocation31_spill] sm:$0xff]  ;;  %v4689_v49 = vld [vmem:[#allocation28_spill] sm:$0xff]  ;;  %vm4692_vm11 = vmmov %vm4654_vm1 }
 0x403   :  { %v1893_v17 = vsel %vm4669_vm5, %v1841_v19, 0.0  ;;  %v1831_v7 = vsel %vm4671_vm10, %v1771_v44, 0.0  ;;  %v1700_v18 = vpop.xlane.xlu0 %1699  ;;  %v1757_v42 = vpop.xlane.xlu1 %1756  ;;  %v1410_v36 = vmul.f32 0.6931472, %v2507_v47  ;;  %v1449_v55 = vadd.f32 %v1408_v26, %v4107_v3  ;;  %v4691_v47 = vld [vmem:[#allocation40_spill] sm:$0xff]  ;;  %vm4693_vm5 = vmmov %vm4654_vm1 }
 0x404   :  { %v1850_v60 = vsel %vm4673_vm2, %v1790_v5, 0.0  ;;  %v1894_v22 = vadd.f32 %v1893_v17, %v4299_v45  ;;  %v1868_v37 = vsel %vm4674_vm4, %v1831_v7, 0.0  ;;  %v1772_v58 = vsub.f32 %v1439_v41, %v1700_v18  ;;  %v4694_v7 = vld [vmem:[#allocation30_spill] sm:$0xff]  ;;  %vm4696_vm2 = vmmov %vm4654_vm1 }
 0x405   :  { %v2509_v27 = vpop.eup %2508  ;;  %v1916_v51 = vsel %vm4675_vm12, %v1850_v60, 0.0  ;;  %v1869_v52 = vadd.f32 %v1868_v37, %v4262_v23  ;;  %v1458_v54 = vadd.f32 %v1426_v0, %v4161_v1  ;;  %v2066_v1 = vmax.f32 %v2039_v4, 1.0 }
 0x406   :  { %v1428_v16 = vmul.f32 0.6931472, %v2509_v27  ;;  %v1917_v35 = vadd.f32 %v1916_v51, %v1915_v29  ;;  %v1832_v48 = vsel %vm4677_vm0, %v1772_v58, 0.0  ;;  %v1450_v38 = vadd.f32 %v1410_v36, %v4113_v25 }
 0x407   :  { %v1870_v45 = vsel %vm4654_vm1, %v1832_v48, 0.0  ;;  %v1791_v50 = vsub.f32 %v1458_v54, %v1757_v42  ;;  %v1760_v32 = vpop.xlane.xlu0 %1759  ;;  %v1730_v13 = vpop.xlane.xlu1 %1729  ;;  %v1440_v3 = vadd.f32 %v1390_v21, %v4049_v15  ;;  %vm4682_vm6 = vcmp.ne.s32.totalorder %v4681_v43, 4294967096 }
 0x408   :  { %v1871_v8 = vadd.f32 %v1870_v45, %v1869_v52  ;;  %v1459_v63 = vadd.f32 %v1428_v16, %v4169_v34  ;;  %v1782_v23 = vsub.f32 %v1449_v55, %v1730_v13  ;;  %vm4685_vm7 = vcmp.ne.s32.totalorder %v4684_v9, 4294967096 }
 0x409   :  { %v2511_v46 = vpop.eup %2510  ;;  %v1851_v28 = vsel %vm4679_vm8, %v1791_v50, 0.0  ;;  %v2067_v15 = vmax.f32 %v2064_v61, 1.0  ;;  %2514 = vrcp.f32 %v2066_v1  ;;  %vm4688_vm14 = vcmp.ne.s32.totalorder %v4687_v2, 4294967096 }
 0x40a   :  { %v1430_v20 = vmul.f32 0.6931472, %v2511_v46  ;;  %v1918_v40 = vsel %vm4680_vm9, %v1851_v28, 0.0  ;;  %v1792_v30 = vsub.f32 %v1459_v63, %v1760_v32  ;;  %v1842_v33 = vsel %vm4682_vm6, %v1782_v23, 0.0 }
 0x40b   :  { %v1919_v53 = vadd.f32 %v1918_v40, %v1917_v35  ;;  %v1895_v34 = vsel %vm4683_vm3, %v1842_v33, 0.0  ;;  %v1733_v56 = vpop.xlane.xlu0 %1732  ;;  %v1703_v39 = vpop.xlane.xlu1 %1702  ;;  %vm4690_vm15 = vcmp.ne.s32.totalorder %v4689_v49, 4294967096  ;;  %2516 = vrcp.f32 %v2067_v15 }
 0x40c   :  { %v1852_v14 = vsel %vm4685_vm7, %v1792_v30, 0.0  ;;  %v1896_v10 = vadd.f32 %v1895_v34, %v1894_v22  ;;  %v1783_v25 = vsub.f32 %v1450_v38, %v1733_v56  ;;  %v1773_v12 = vsub.f32 %v1440_v3, %v1703_v39  ;;  %v2513_v36 = vpop.eup %2512 }
 0x40d   :  { %v1920_v44 = vsel %vm4686_vm13, %v1852_v14, 0.0  ;;  %v1460_v0 = vadd.f32 %v1430_v20, %v4691_v47  ;;  %vm4695_vm10 = vcmp.ne.s32.totalorder %v4694_v7, 4294967096  ;;  %vm2077_vm4 = vcmask 1041409  }
 0x40e   :  { %v1921_v31 = vadd.f32 %v1920_v44, %v1919_v53  ;;  %v1843_v26 = vsel %vm4688_vm14, %v1783_v25, 0.0  ;;  %v1833_v41 = vsel %vm4690_vm15, %v1773_v12, 0.0  ;;  %vm2079_vm12 = vcmask 1042434  }
 0x40f   :  { %v1897_v5 = vsel %vm4692_vm11, %v1843_v26, 0.0  ;;  %v1872_v29 = vsel %vm4693_vm5, %v1833_v41, 0.0  ;;  %v1763_v57 = vpop.xlane.xlu1 %1762  ;;  %vm2082_vm0 = vcmask 2048  }
 0x410   :  { %v1898_v19 = vadd.f32 %v1897_v5, %v1896_v10  ;;  %v1873_v4 = vadd.f32 %v1872_v29, %v1871_v8  ;;  %v1793_v21 = vsub.f32 %v1460_v0, %v1763_v57 }
 0x412   :  { %v1899_v17 = vrot.slane %v1898_v19, 4  ;;  %v1874_v6 = vrot.slane %v1873_v4, 4  ;;  %v1853_v18 = vsel %vm4695_vm10, %v1793_v21, 0.0 }
 0x413   :  { %v1922_v42 = vsel %vm4696_vm2, %v1853_v18, 0.0 }
 0x414   :  { %v1900_v11 = vadd.f32 %v1899_v17, %v1898_v19  ;;  %v1875_v60 = vadd.f32 %v1874_v6, %v1873_v4  ;;  %v1923_v22 = vadd.f32 %v1922_v42, %v1921_v31 }
 0x416   :  { %v1901_v37 = vrot.slane %v1900_v11, 2  ;;  %v1876_v58 = vrot.slane %v1875_v60, 2  ;;  %v1924_v27 = vrot.slane %v1923_v22, 4  ;;  %v2515_v16 = vpop.eup %2514 }
 0x418   :  { %v1902_v51 = vadd.f32 %v1901_v37, %v1900_v11  ;;  %v1877_v52 = vadd.f32 %v1876_v58, %v1875_v60  ;;  %v1925_v54 = vadd.f32 %v1924_v27, %v1923_v22  ;;  %v2517_v61 = vpop.eup %2516 }
 0x41a   :  { %v1903_v35 = vrot.slane %v1902_v51, 1  ;;  %v1878_v59 = vrot.slane %v1877_v52, 1  ;;  %v1926_v48 = vrot.slane %v1925_v54, 2 }
 0x41c   :  { %v1904_v55 = vadd.f32 %v1903_v35, %v1902_v51  ;;  %v1879_v62 = vadd.f32 %v1878_v59, %v1877_v52  ;;  %v1927_v45 = vadd.f32 %v1926_v48, %v1925_v54 }
 0x41e   :  { %v2071_v50 = vmul.f32 %v2515_v16, %v1904_v55  ;;  %v2069_v32 = vmul.f32 %v2513_v36, %v1879_v62  ;;  %v1928_v13 = vrot.slane %v1927_v45, 1 }
 0x420   :  { %v2078_v8 = vsel %vm2077_vm4, %v2071_v50, %v2069_v32  ;;  %v1929_v63 = vadd.f32 %v1928_v13, %v1927_v45 }
 0x422   :  { %v2073_v23 = vmul.f32 %v2517_v61, %v1929_v63 }
 0x424   :  { %v2080_v46 = vsel %vm2079_vm12, %v2073_v23, %v2078_v8 }
 0x425   :  { %2083 = vst.msk [vmem:[%s4392_s7] sm:$0x7] %vm2082_vm0, %v2080_v46 }

</bundles_post_ra>
